<compile_context>
chip_gen: v7x
topology: tpu7x:2x2x1
jax: 0.10.0
libtpu: 0.0.40
codegen_flags: <defaults>
</compile_context>

<pallas_src>
import functools

import jax
import jax.numpy as jnp
from jax.experimental import pallas as pl
from jax.experimental.pallas import tpu as pltpu


# ----------------------------------------------------------------------------
# Fused Pallas kernel
# ----------------------------------------------------------------------------

def _full_spec(shape):
    n = len(shape)
    return pl.BlockSpec(shape, lambda: (0,) * n)


def _make_fused_kernel(n, s):
    """n: batch, s: board size. Returns the fused forward kernel."""
    p = s * s

    def kernel(x_ref,
               w1_ref, b1_ref, w2_ref, b2_ref, w3_ref, b3_ref,
               wht_ref, bh_ref,
               afw_ref, afb_ref, vfw_ref, vfb_ref, v2w_ref, v2b_ref,
               act_out_ref, val_out_ref,
               pad1, pad2, pad3):

        def conv3x3_relu(pad_ref, w_ref, b_ref, cin):
            # im2col: build one (n*p, 9*cin) patch matrix -> one MXU matmul.
            cols = []
            for dy in range(3):
                for dx in range(3):
                    cols.append(
                        pad_ref[:, dy:dy + s, dx:dx + s, :].reshape(n * p, cin))
            col = jnp.concatenate(cols, axis=-1)            # (n*p, 9*cin)
            z = jnp.dot(col, w_ref[...],
                        preferred_element_type=jnp.float32) + b_ref[...]
            return jnp.maximum(z, 0.0)                      # (n*p, cout)

        # ---- conv trunk (all activations stay in VMEM) ----
        pad1[...] = jnp.zeros(pad1.shape, jnp.float32)
        pad1[:, 1:s + 1, 1:s + 1, :] = x_ref[...]
        h1 = conv3x3_relu(pad1, w1_ref, b1_ref, 4)          # (n*p, 32)

        pad2[...] = jnp.zeros(pad2.shape, jnp.float32)
        pad2[:, 1:s + 1, 1:s + 1, :] = h1.reshape(n, s, s, 32)
        h2 = conv3x3_relu(pad2, w2_ref, b2_ref, 32)         # (n*p, 64)

        pad3[...] = jnp.zeros(pad3.shape, jnp.float32)
        pad3[:, 1:s + 1, 1:s + 1, :] = h2.reshape(n, s, s, 64)
        h3 = conv3x3_relu(pad3, w3_ref, b3_ref, 64)         # (n*p, 128)

        # ---- merged 1x1 head convs (act: 4 ch, val: 2 ch) ----
        # Computed transposed: ht[c, b*p + pix] so the PyTorch (c, h, w)
        # flatten order is a simple lane-wise concatenation per batch row.
        h3_t = jnp.transpose(h3)                            # (128, n*p)
        ht = jnp.dot(wht_ref[...], h3_t,
                     preferred_element_type=jnp.float32) + bh_ref[...]
        ht = jnp.maximum(ht, 0.0)                           # (6, n*p)

        def flat_head(c0, c1):
            # -> (n, (c1-c0)*p), per-batch flatten in (c, h, w) order.
            rows = []
            for bi in range(n):
                chunks = [ht[c:c + 1, bi * p:(bi + 1) * p]
                          for c in range(c0, c1)]
                rows.append(jnp.concatenate(chunks, axis=-1))
            return jnp.concatenate(rows, axis=0)

        x_act = flat_head(0, 4)                             # (n, 4*p)
        x_val = flat_head(4, 6)                             # (n, 2*p)

        # ---- policy head: fc + log_softmax ----
        za = jnp.dot(x_act, afw_ref[...],
                     preferred_element_type=jnp.float32) + afb_ref[...]
        za = za - jnp.max(za, axis=-1, keepdims=True)
        za = za - jnp.log(jnp.sum(jnp.exp(za), axis=-1, keepdims=True))
        act_out_ref[...] = za.astype(act_out_ref.dtype)

        # ---- value head: fc + relu, fc + tanh ----
        zv = jnp.dot(x_val, vfw_ref[...],
                     preferred_element_type=jnp.float32) + vfb_ref[...]
        zv = jnp.maximum(zv, 0.0)
        v = jnp.dot(zv, v2w_ref[...],
                    preferred_element_type=jnp.float32) + v2b_ref[...]
        val_out_ref[...] = jnp.tanh(v).astype(val_out_ref.dtype)

    return kernel


# ----------------------------------------------------------------------------
# Parameter init (deterministic, synthetic, PyTorch-like layout)
# ----------------------------------------------------------------------------

def init_params(size, key):
    ks = jax.random.split(key, 16)
    s = size

    def conv_w(k, kh, kw, cin, cout):      # HWIO
        return 0.05 * jax.random.normal(k, (kh, kw, cin, cout), jnp.float32)

    def fc_w(k, fin, fout):                # (in, out)
        return 0.05 * jax.random.normal(k, (fin, fout), jnp.float32)

    def bias(k, c):
        return 0.01 * jax.random.normal(k, (c,), jnp.float32)

    return dict(
        conv1_w=conv_w(ks[0], 3, 3, 4, 32),   conv1_b=bias(ks[1], 32),
        conv2_w=conv_w(ks[2], 3, 3, 32, 64),  conv2_b=bias(ks[3], 64),
        conv3_w=conv_w(ks[4], 3, 3, 64, 128), conv3_b=bias(ks[5], 128),
        act_conv1_w=fc_w(ks[6], 128, 4),      act_conv1_b=bias(ks[7], 4),
        act_fc1_w=fc_w(ks[8], s * s * 4, s * s), act_fc1_b=bias(ks[9], s * s),
        val_conv1_w=fc_w(ks[10], 128, 2),     val_conv1_b=bias(ks[11], 2),
        val_fc1_w=fc_w(ks[12], s * s * 2, 64), val_fc1_b=bias(ks[13], 64),
        val_fc2_w=fc_w(ks[14], 64, 1),        val_fc2_b=bias(ks[15], 1),
    )


_PARAM_ORDER = ("w1", "b1", "w2", "b2", "w3", "b3", "wht", "bh",
                "afw", "afb", "vfw", "vfb", "v2w", "v2b")


def prepare_params(params, size):
    """One-time host-side re-layout into kernel-ready form.

    * conv weights -> im2col (9*Cin, Cout), row order (dy, dx, cin)
    * act_conv1 / val_conv1 merged & transposed to a single (6, 128) matrix
    * biases reshaped to 2-D row/column vectors
    FC weights need no permutation: the kernel produces the flattened head
    activations already in PyTorch (c, h, w) order.
    """
    s = size
    wh = jnp.concatenate([params["act_conv1_w"], params["val_conv1_w"]],
                         axis=1)                                   # (128, 6)
    bh = jnp.concatenate([params["act_conv1_b"], params["val_conv1_b"]],
                         axis=0)                                   # (6,)
    return dict(
        w1=params["conv1_w"].reshape(9 * 4, 32),
        b1=params["conv1_b"].reshape(1, 32),
        w2=params["conv2_w"].reshape(9 * 32, 64),
        b2=params["conv2_b"].reshape(1, 64),
        w3=params["conv3_w"].reshape(9 * 64, 128),
        b3=params["conv3_b"].reshape(1, 128),
        wht=wh.T,                                                  # (6, 128)
        bh=bh.reshape(6, 1),
        afw=params["act_fc1_w"],
        afb=params["act_fc1_b"].reshape(1, s * s),
        vfw=params["val_fc1_w"],
        vfb=params["val_fc1_b"].reshape(1, 64),
        v2w=params["val_fc2_w"],
        v2b=params["val_fc2_b"].reshape(1, 1),
    )


# ----------------------------------------------------------------------------
# Forward pass: one pallas_call
# ----------------------------------------------------------------------------

@functools.partial(jax.jit, static_argnames=("size",))
def plain_net_forward(kparams, x_nchw, *, size):
    n = x_nchw.shape[0]
    s = size
    # NCHW -> NHWC (channels on the lane axis); the only op outside the kernel.
    x_nhwc = jnp.transpose(x_nchw, (0, 2, 3, 1)).astype(jnp.float32)

    args = [x_nhwc] + [kparams[k] for k in _PARAM_ORDER]
    act_prob, state_val = pl.pallas_call(
        _make_fused_kernel(n, s),
        out_shape=(jax.ShapeDtypeStruct((n, s * s), jnp.float32),
                   jax.ShapeDtypeStruct((n, 1), jnp.float32)),
        in_specs=[_full_spec(a.shape) for a in args],
        out_specs=(_full_spec((n, s * s)), _full_spec((n, 1))),
        scratch_shapes=[
            pltpu.VMEM((n, s + 2, s + 2, 4), jnp.float32),   # padded conv1 in
            pltpu.VMEM((n, s + 2, s + 2, 32), jnp.float32),  # padded conv2 in
            pltpu.VMEM((n, s + 2, s + 2, 64), jnp.float32),  # padded conv3 in
        ],
    )(*args)
    return act_prob, state_val


# ----------------------------------------------------------------------------
# Plain-JAX reference of the original PyTorch graph (for self-check)
# ----------------------------------------------------------------------------

def reference_forward(params, x_nchw, size):
    x = jnp.transpose(x_nchw, (0, 2, 3, 1))

    def conv(x, w, b):
        y = jax.lax.conv_general_dilated(
            x, w, (1, 1), ((1, 1), (1, 1)),
            dimension_numbers=("NHWC", "HWIO", "NHWC"))
        return jax.nn.relu(y + b)

    x = conv(x, params["conv1_w"], params["conv1_b"])
    x = conv(x, params["conv2_w"], params["conv2_b"])
    x = conv(x, params["conv3_w"], params["conv3_b"])            # (N,S,S,128)

    n = x.shape[0]
    xa = jax.nn.relu(jnp.einsum("nhwk,kc->nhwc", x, params["act_conv1_w"])
                     + params["act_conv1_b"])
    xa = jnp.transpose(xa, (0, 3, 1, 2)).reshape(n, -1)          # (c,h,w) order
    act = jax.nn.log_softmax(xa @ params["act_fc1_w"] + params["act_fc1_b"],
                             axis=-1)

    xv = jax.nn.relu(jnp.einsum("nhwk,kc->nhwc", x, params["val_conv1_w"])
                     + params["val_conv1_b"])
    xv = jnp.transpose(xv, (0, 3, 1, 2)).reshape(n, -1)
    xv = jax.nn.relu(xv @ params["val_fc1_w"] + params["val_fc1_b"])
    val = jnp.tanh(xv @ params["val_fc2_w"] + params["val_fc2_b"])
    return act, val


# ----------------------------------------------------------------------------

if __name__ == "__main__":
    size = 8          # chess-board size
    batch = 2

    key = jax.random.PRNGKey(0)
    k_param, k_input = jax.random.split(key)

    params = init_params(size, k_param)
    kparams = prepare_params(params, size)          # one-time weight re-layout
    x = jax.random.normal(k_input, (batch, 4, size, size), jnp.float32)  # NCHW

    act_prob, state_val = plain_net_forward(kparams, x, size=size)
    jax.block_until_ready((act_prob, state_val))

    assert act_prob.shape == (batch, size * size)
    assert state_val.shape == (batch, 1)
    # log_softmax rows should (approximately) sum to 1 after exp
    assert jnp.allclose(jnp.sum(jnp.exp(act_prob), axis=-1), 1.0, atol=1e-4)
    # tanh output in [-1, 1]
    assert bool(jnp.all(jnp.abs(state_val) <= 1.0))

    # numerical check against a plain-JAX (XLA) reference of the PyTorch graph
    with jax.default_matmul_precision("highest"):
        ref_act, ref_val = reference_forward(params, x, size)
    assert jnp.allclose(act_prob, ref_act, atol=2e-3, rtol=2e-3), \
        float(jnp.max(jnp.abs(act_prob - ref_act)))
    assert jnp.allclose(state_val, ref_val, atol=2e-3, rtol=2e-3), \
        float(jnp.max(jnp.abs(state_val - ref_val)))

    print("KERNEL_OK")
</pallas_src>

<mosaic_0001>
module attributes {stable_mosaic.version = 11 : i64} {
  func.func @kernel(%arg0: memref<2x8x8x4xf32, #tpu.memory_space<vmem>>, %arg1: memref<36x32xf32, #tpu.memory_space<vmem>>, %arg2: memref<1x32xf32, #tpu.memory_space<vmem>>, %arg3: memref<288x64xf32, #tpu.memory_space<vmem>>, %arg4: memref<1x64xf32, #tpu.memory_space<vmem>>, %arg5: memref<576x128xf32, #tpu.memory_space<vmem>>, %arg6: memref<1x128xf32, #tpu.memory_space<vmem>>, %arg7: memref<6x128xf32, #tpu.memory_space<vmem>>, %arg8: memref<6x1xf32, #tpu.memory_space<vmem>>, %arg9: memref<256x64xf32, #tpu.memory_space<vmem>>, %arg10: memref<1x64xf32, #tpu.memory_space<vmem>>, %arg11: memref<128x64xf32, #tpu.memory_space<vmem>>, %arg12: memref<1x64xf32, #tpu.memory_space<vmem>>, %arg13: memref<64x1xf32, #tpu.memory_space<vmem>>, %arg14: memref<1x1xf32, #tpu.memory_space<vmem>>, %arg15: memref<2x64xf32, #tpu.memory_space<vmem>>, %arg16: memref<2x1xf32, #tpu.memory_space<vmem>>, %arg17: memref<2x10x10x4xf32, #tpu.memory_space<vmem>>, %arg18: memref<2x10x10x32xf32, #tpu.memory_space<vmem>>, %arg19: memref<2x10x10x64xf32, #tpu.memory_space<vmem>>) attributes {dimension_semantics = [], scalar_prefetch = 0 : i64, scratch_operands = 3 : i64, tpu.core_type = #tpu.core_type<tc>} {
    %cst = arith.constant 0.000000e+00 : f32
    %0 = vector.broadcast %cst : f32 to vector<2x10x10x4xf32>
    %c0 = arith.constant 0 : index
    %c0_0 = arith.constant 0 : index
    %c0_1 = arith.constant 0 : index
    %c0_2 = arith.constant 0 : index
    %1 = vector.load %arg17[%c0, %c0_0, %c0_1, %c0_2] : memref<2x10x10x4xf32, #tpu.memory_space<vmem>>, vector<2x10x10x4xf32>
    tpu.vector_store %arg17[%c0, %c0_0, %c0_1, %c0_2], %0 {strides = array<i32>} : memref<2x10x10x4xf32, #tpu.memory_space<vmem>>, vector<2x10x10x4xf32>,
    %c0_3 = arith.constant 0 : index
    %c0_4 = arith.constant 0 : index
    %c0_5 = arith.constant 0 : index
    %c0_6 = arith.constant 0 : index
    %2 = vector.load %arg0[%c0_3, %c0_4, %c0_5, %c0_6] : memref<2x8x8x4xf32, #tpu.memory_space<vmem>>, vector<2x8x8x4xf32>
    %c0_7 = arith.constant 0 : index
    %c1 = arith.constant 1 : index
    %c1_8 = arith.constant 1 : index
    %c0_9 = arith.constant 0 : index
    %3 = vector.load %arg17[%c0_7, %c1, %c1_8, %c0_9] : memref<2x10x10x4xf32, #tpu.memory_space<vmem>>, vector<2x8x8x4xf32>
    tpu.vector_store %arg17[%c0_7, %c1, %c1_8, %c0_9], %2 {strides = array<i32>} : memref<2x10x10x4xf32, #tpu.memory_space<vmem>>, vector<2x8x8x4xf32>,
    %c0_10 = arith.constant 0 : index
    %c0_11 = arith.constant 0 : index
    %c0_12 = arith.constant 0 : index
    %c0_13 = arith.constant 0 : index
    %4 = vector.load %arg17[%c0_10, %c0_11, %c0_12, %c0_13] : memref<2x10x10x4xf32, #tpu.memory_space<vmem>>, vector<2x8x8x4xf32>
    %5 = vector.shape_cast %4 : vector<2x8x8x4xf32> to vector<128x4xf32>
    %c0_14 = arith.constant 0 : index
    %c0_15 = arith.constant 0 : index
    %c1_16 = arith.constant 1 : index
    %c0_17 = arith.constant 0 : index
    %6 = vector.load %arg17[%c0_14, %c0_15, %c1_16, %c0_17] : memref<2x10x10x4xf32, #tpu.memory_space<vmem>>, vector<2x8x8x4xf32>
    %7 = vector.shape_cast %6 : vector<2x8x8x4xf32> to vector<128x4xf32>
    %c0_18 = arith.constant 0 : index
    %c0_19 = arith.constant 0 : index
    %c2 = arith.constant 2 : index
    %c0_20 = arith.constant 0 : index
    %8 = vector.load %arg17[%c0_18, %c0_19, %c2, %c0_20] : memref<2x10x10x4xf32, #tpu.memory_space<vmem>>, vector<2x8x8x4xf32>
    %9 = vector.shape_cast %8 : vector<2x8x8x4xf32> to vector<128x4xf32>
    %c0_21 = arith.constant 0 : index
    %c1_22 = arith.constant 1 : index
    %c0_23 = arith.constant 0 : index
    %c0_24 = arith.constant 0 : index
    %10 = vector.load %arg17[%c0_21, %c1_22, %c0_23, %c0_24] : memref<2x10x10x4xf32, #tpu.memory_space<vmem>>, vector<2x8x8x4xf32>
    %11 = vector.shape_cast %10 : vector<2x8x8x4xf32> to vector<128x4xf32>
    %c0_25 = arith.constant 0 : index
    %c1_26 = arith.constant 1 : index
    %c1_27 = arith.constant 1 : index
    %c0_28 = arith.constant 0 : index
    %12 = vector.load %arg17[%c0_25, %c1_26, %c1_27, %c0_28] : memref<2x10x10x4xf32, #tpu.memory_space<vmem>>, vector<2x8x8x4xf32>
    %13 = vector.shape_cast %12 : vector<2x8x8x4xf32> to vector<128x4xf32>
    %c0_29 = arith.constant 0 : index
    %c1_30 = arith.constant 1 : index
    %c2_31 = arith.constant 2 : index
    %c0_32 = arith.constant 0 : index
    %14 = vector.load %arg17[%c0_29, %c1_30, %c2_31, %c0_32] : memref<2x10x10x4xf32, #tpu.memory_space<vmem>>, vector<2x8x8x4xf32>
    %15 = vector.shape_cast %14 : vector<2x8x8x4xf32> to vector<128x4xf32>
    %c0_33 = arith.constant 0 : index
    %c2_34 = arith.constant 2 : index
    %c0_35 = arith.constant 0 : index
    %c0_36 = arith.constant 0 : index
    %16 = vector.load %arg17[%c0_33, %c2_34, %c0_35, %c0_36] : memref<2x10x10x4xf32, #tpu.memory_space<vmem>>, vector<2x8x8x4xf32>
    %17 = vector.shape_cast %16 : vector<2x8x8x4xf32> to vector<128x4xf32>
    %c0_37 = arith.constant 0 : index
    %c2_38 = arith.constant 2 : index
    %c1_39 = arith.constant 1 : index
    %c0_40 = arith.constant 0 : index
    %18 = vector.load %arg17[%c0_37, %c2_38, %c1_39, %c0_40] : memref<2x10x10x4xf32, #tpu.memory_space<vmem>>, vector<2x8x8x4xf32>
    %19 = vector.shape_cast %18 : vector<2x8x8x4xf32> to vector<128x4xf32>
    %c0_41 = arith.constant 0 : index
    %c2_42 = arith.constant 2 : index
    %c2_43 = arith.constant 2 : index
    %c0_44 = arith.constant 0 : index
    %20 = vector.load %arg17[%c0_41, %c2_42, %c2_43, %c0_44] : memref<2x10x10x4xf32, #tpu.memory_space<vmem>>, vector<2x8x8x4xf32>
    %21 = vector.shape_cast %20 : vector<2x8x8x4xf32> to vector<128x4xf32>
    %22 = tpu.concatenate %5, %7, %9, %11, %13, %15, %17, %19, %21 in 1 : vector<128x4xf32>, vector<128x4xf32>, vector<128x4xf32>, vector<128x4xf32>, vector<128x4xf32>, vector<128x4xf32>, vector<128x4xf32>, vector<128x4xf32>, vector<128x4xf32> -> vector<128x36xf32>
    %c0_45 = arith.constant 0 : index
    %c0_46 = arith.constant 0 : index
    %23 = vector.load %arg1[%c0_45, %c0_46] : memref<36x32xf32, #tpu.memory_space<vmem>>, vector<36x32xf32>
    %cst_47 = arith.constant dense<0.000000e+00> : vector<128x32xf32>
    %24 = tpu.matmul %22, %23, %cst_47 {dimension_numbers = #tpu.dot_dimension_numbers<[1], [0], [0], [1], [0, 0, 1, 1], [], []>} : vector<128x36xf32>, vector<36x32xf32>, vector<128x32xf32> -> vector<128x32xf32>
    %c0_48 = arith.constant 0 : index
    %c0_49 = arith.constant 0 : index
    %25 = vector.load %arg2[%c0_48, %c0_49] : memref<1x32xf32, #tpu.memory_space<vmem>>, vector<1x32xf32>
    %26 = vector.broadcast %25 : vector<1x32xf32> to vector<128x32xf32>
    %27 = arith.addf %24, %26 : vector<128x32xf32>
    %cst_50 = arith.constant 0.000000e+00 : f32
    %28 = vector.broadcast %cst_50 : f32 to vector<128x32xf32>
    %29 = arith.maximumf %27, %28 : vector<128x32xf32>
    %cst_51 = arith.constant 0.000000e+00 : f32
    %30 = vector.broadcast %cst_51 : f32 to vector<2x10x10x32xf32>
    %c0_52 = arith.constant 0 : index
    %c0_53 = arith.constant 0 : index
    %c0_54 = arith.constant 0 : index
    %c0_55 = arith.constant 0 : index
    %31 = vector.load %arg18[%c0_52, %c0_53, %c0_54, %c0_55] : memref<2x10x10x32xf32, #tpu.memory_space<vmem>>, vector<2x10x10x32xf32>
    tpu.vector_store %arg18[%c0_52, %c0_53, %c0_54, %c0_55], %30 {strides = array<i32>} : memref<2x10x10x32xf32, #tpu.memory_space<vmem>>, vector<2x10x10x32xf32>,
    %32 = vector.shape_cast %29 : vector<128x32xf32> to vector<2x8x8x32xf32>
    %c0_56 = arith.constant 0 : index
    %c1_57 = arith.constant 1 : index
    %c1_58 = arith.constant 1 : index
    %c0_59 = arith.constant 0 : index
    %33 = vector.load %arg18[%c0_56, %c1_57, %c1_58, %c0_59] : memref<2x10x10x32xf32, #tpu.memory_space<vmem>>, vector<2x8x8x32xf32>
    tpu.vector_store %arg18[%c0_56, %c1_57, %c1_58, %c0_59], %32 {strides = array<i32>} : memref<2x10x10x32xf32, #tpu.memory_space<vmem>>, vector<2x8x8x32xf32>,
    %c0_60 = arith.constant 0 : index
    %c0_61 = arith.constant 0 : index
    %c0_62 = arith.constant 0 : index
    %c0_63 = arith.constant 0 : index
    %34 = vector.load %arg18[%c0_60, %c0_61, %c0_62, %c0_63] : memref<2x10x10x32xf32, #tpu.memory_space<vmem>>, vector<2x8x8x32xf32>
    %35 = vector.shape_cast %34 : vector<2x8x8x32xf32> to vector<128x32xf32>
    %c0_64 = arith.constant 0 : index
    %c0_65 = arith.constant 0 : index
    %c1_66 = arith.constant 1 : index
    %c0_67 = arith.constant 0 : index
    %36 = vector.load %arg18[%c0_64, %c0_65, %c1_66, %c0_67] : memref<2x10x10x32xf32, #tpu.memory_space<vmem>>, vector<2x8x8x32xf32>
    %37 = vector.shape_cast %36 : vector<2x8x8x32xf32> to vector<128x32xf32>
    %c0_68 = arith.constant 0 : index
    %c0_69 = arith.constant 0 : index
    %c2_70 = arith.constant 2 : index
    %c0_71 = arith.constant 0 : index
    %38 = vector.load %arg18[%c0_68, %c0_69, %c2_70, %c0_71] : memref<2x10x10x32xf32, #tpu.memory_space<vmem>>, vector<2x8x8x32xf32>
    %39 = vector.shape_cast %38 : vector<2x8x8x32xf32> to vector<128x32xf32>
    %c0_72 = arith.constant 0 : index
    %c1_73 = arith.constant 1 : index
    %c0_74 = arith.constant 0 : index
    %c0_75 = arith.constant 0 : index
    %40 = vector.load %arg18[%c0_72, %c1_73, %c0_74, %c0_75] : memref<2x10x10x32xf32, #tpu.memory_space<vmem>>, vector<2x8x8x32xf32>
    %41 = vector.shape_cast %40 : vector<2x8x8x32xf32> to vector<128x32xf32>
    %c0_76 = arith.constant 0 : index
    %c1_77 = arith.constant 1 : index
    %c1_78 = arith.constant 1 : index
    %c0_79 = arith.constant 0 : index
    %42 = vector.load %arg18[%c0_76, %c1_77, %c1_78, %c0_79] : memref<2x10x10x32xf32, #tpu.memory_space<vmem>>, vector<2x8x8x32xf32>
    %43 = vector.shape_cast %42 : vector<2x8x8x32xf32> to vector<128x32xf32>
    %c0_80 = arith.constant 0 : index
    %c1_81 = arith.constant 1 : index
    %c2_82 = arith.constant 2 : index
    %c0_83 = arith.constant 0 : index
    %44 = vector.load %arg18[%c0_80, %c1_81, %c2_82, %c0_83] : memref<2x10x10x32xf32, #tpu.memory_space<vmem>>, vector<2x8x8x32xf32>
    %45 = vector.shape_cast %44 : vector<2x8x8x32xf32> to vector<128x32xf32>
    %c0_84 = arith.constant 0 : index
    %c2_85 = arith.constant 2 : index
    %c0_86 = arith.constant 0 : index
    %c0_87 = arith.constant 0 : index
    %46 = vector.load %arg18[%c0_84, %c2_85, %c0_86, %c0_87] : memref<2x10x10x32xf32, #tpu.memory_space<vmem>>, vector<2x8x8x32xf32>
    %47 = vector.shape_cast %46 : vector<2x8x8x32xf32> to vector<128x32xf32>
    %c0_88 = arith.constant 0 : index
    %c2_89 = arith.constant 2 : index
    %c1_90 = arith.constant 1 : index
    %c0_91 = arith.constant 0 : index
    %48 = vector.load %arg18[%c0_88, %c2_89, %c1_90, %c0_91] : memref<2x10x10x32xf32, #tpu.memory_space<vmem>>, vector<2x8x8x32xf32>
    %49 = vector.shape_cast %48 : vector<2x8x8x32xf32> to vector<128x32xf32>
    %c0_92 = arith.constant 0 : index
    %c2_93 = arith.constant 2 : index
    %c2_94 = arith.constant 2 : index
    %c0_95 = arith.constant 0 : index
    %50 = vector.load %arg18[%c0_92, %c2_93, %c2_94, %c0_95] : memref<2x10x10x32xf32, #tpu.memory_space<vmem>>, vector<2x8x8x32xf32>
    %51 = vector.shape_cast %50 : vector<2x8x8x32xf32> to vector<128x32xf32>
    %52 = tpu.concatenate %35, %37, %39, %41, %43, %45, %47, %49, %51 in 1 : vector<128x32xf32>, vector<128x32xf32>, vector<128x32xf32>, vector<128x32xf32>, vector<128x32xf32>, vector<128x32xf32>, vector<128x32xf32>, vector<128x32xf32>, vector<128x32xf32> -> vector<128x288xf32>
    %c0_96 = arith.constant 0 : index
    %c0_97 = arith.constant 0 : index
    %53 = vector.load %arg3[%c0_96, %c0_97] : memref<288x64xf32, #tpu.memory_space<vmem>>, vector<288x64xf32>
    %cst_98 = arith.constant dense<0.000000e+00> : vector<128x64xf32>
    %54 = tpu.matmul %52, %53, %cst_98 {dimension_numbers = #tpu.dot_dimension_numbers<[1], [0], [0], [1], [0, 0, 1, 1], [], []>} : vector<128x288xf32>, vector<288x64xf32>, vector<128x64xf32> -> vector<128x64xf32>
    %c0_99 = arith.constant 0 : index
    %c0_100 = arith.constant 0 : index
    %55 = vector.load %arg4[%c0_99, %c0_100] : memref<1x64xf32, #tpu.memory_space<vmem>>, vector<1x64xf32>
    %56 = vector.broadcast %55 : vector<1x64xf32> to vector<128x64xf32>
    %57 = arith.addf %54, %56 : vector<128x64xf32>
    %cst_101 = arith.constant 0.000000e+00 : f32
    %58 = vector.broadcast %cst_101 : f32 to vector<128x64xf32>
    %59 = arith.maximumf %57, %58 : vector<128x64xf32>
    %cst_102 = arith.constant 0.000000e+00 : f32
    %60 = vector.broadcast %cst_102 : f32 to vector<2x10x10x64xf32>
    %c0_103 = arith.constant 0 : index
    %c0_104 = arith.constant 0 : index
    %c0_105 = arith.constant 0 : index
    %c0_106 = arith.constant 0 : index
    %61 = vector.load %arg19[%c0_103, %c0_104, %c0_105, %c0_106] : memref<2x10x10x64xf32, #tpu.memory_space<vmem>>, vector<2x10x10x64xf32>
    tpu.vector_store %arg19[%c0_103, %c0_104, %c0_105, %c0_106], %60 {strides = array<i32>} : memref<2x10x10x64xf32, #tpu.memory_space<vmem>>, vector<2x10x10x64xf32>,
    %62 = vector.shape_cast %59 : vector<128x64xf32> to vector<2x8x8x64xf32>
    %c0_107 = arith.constant 0 : index
    %c1_108 = arith.constant 1 : index
    %c1_109 = arith.constant 1 : index
    %c0_110 = arith.constant 0 : index
    %63 = vector.load %arg19[%c0_107, %c1_108, %c1_109, %c0_110] : memref<2x10x10x64xf32, #tpu.memory_space<vmem>>, vector<2x8x8x64xf32>
    tpu.vector_store %arg19[%c0_107, %c1_108, %c1_109, %c0_110], %62 {strides = array<i32>} : memref<2x10x10x64xf32, #tpu.memory_space<vmem>>, vector<2x8x8x64xf32>,
    %c0_111 = arith.constant 0 : index
    %c0_112 = arith.constant 0 : index
    %c0_113 = arith.constant 0 : index
    %c0_114 = arith.constant 0 : index
    %64 = vector.load %arg19[%c0_111, %c0_112, %c0_113, %c0_114] : memref<2x10x10x64xf32, #tpu.memory_space<vmem>>, vector<2x8x8x64xf32>
    %65 = vector.shape_cast %64 : vector<2x8x8x64xf32> to vector<128x64xf32>
    %c0_115 = arith.constant 0 : index
    %c0_116 = arith.constant 0 : index
    %c1_117 = arith.constant 1 : index
    %c0_118 = arith.constant 0 : index
    %66 = vector.load %arg19[%c0_115, %c0_116, %c1_117, %c0_118] : memref<2x10x10x64xf32, #tpu.memory_space<vmem>>, vector<2x8x8x64xf32>
    %67 = vector.shape_cast %66 : vector<2x8x8x64xf32> to vector<128x64xf32>
    %c0_119 = arith.constant 0 : index
    %c0_120 = arith.constant 0 : index
    %c2_121 = arith.constant 2 : index
    %c0_122 = arith.constant 0 : index
    %68 = vector.load %arg19[%c0_119, %c0_120, %c2_121, %c0_122] : memref<2x10x10x64xf32, #tpu.memory_space<vmem>>, vector<2x8x8x64xf32>
    %69 = vector.shape_cast %68 : vector<2x8x8x64xf32> to vector<128x64xf32>
    %c0_123 = arith.constant 0 : index
    %c1_124 = arith.constant 1 : index
    %c0_125 = arith.constant 0 : index
    %c0_126 = arith.constant 0 : index
    %70 = vector.load %arg19[%c0_123, %c1_124, %c0_125, %c0_126] : memref<2x10x10x64xf32, #tpu.memory_space<vmem>>, vector<2x8x8x64xf32>
    %71 = vector.shape_cast %70 : vector<2x8x8x64xf32> to vector<128x64xf32>
    %c0_127 = arith.constant 0 : index
    %c1_128 = arith.constant 1 : index
    %c1_129 = arith.constant 1 : index
    %c0_130 = arith.constant 0 : index
    %72 = vector.load %arg19[%c0_127, %c1_128, %c1_129, %c0_130] : memref<2x10x10x64xf32, #tpu.memory_space<vmem>>, vector<2x8x8x64xf32>
    %73 = vector.shape_cast %72 : vector<2x8x8x64xf32> to vector<128x64xf32>
    %c0_131 = arith.constant 0 : index
    %c1_132 = arith.constant 1 : index
    %c2_133 = arith.constant 2 : index
    %c0_134 = arith.constant 0 : index
    %74 = vector.load %arg19[%c0_131, %c1_132, %c2_133, %c0_134] : memref<2x10x10x64xf32, #tpu.memory_space<vmem>>, vector<2x8x8x64xf32>
    %75 = vector.shape_cast %74 : vector<2x8x8x64xf32> to vector<128x64xf32>
    %c0_135 = arith.constant 0 : index
    %c2_136 = arith.constant 2 : index
    %c0_137 = arith.constant 0 : index
    %c0_138 = arith.constant 0 : index
    %76 = vector.load %arg19[%c0_135, %c2_136, %c0_137, %c0_138] : memref<2x10x10x64xf32, #tpu.memory_space<vmem>>, vector<2x8x8x64xf32>
    %77 = vector.shape_cast %76 : vector<2x8x8x64xf32> to vector<128x64xf32>
    %c0_139 = arith.constant 0 : index
    %c2_140 = arith.constant 2 : index
    %c1_141 = arith.constant 1 : index
    %c0_142 = arith.constant 0 : index
    %78 = vector.load %arg19[%c0_139, %c2_140, %c1_141, %c0_142] : memref<2x10x10x64xf32, #tpu.memory_space<vmem>>, vector<2x8x8x64xf32>
    %79 = vector.shape_cast %78 : vector<2x8x8x64xf32> to vector<128x64xf32>
    %c0_143 = arith.constant 0 : index
    %c2_144 = arith.constant 2 : index
    %c2_145 = arith.constant 2 : index
    %c0_146 = arith.constant 0 : index
    %80 = vector.load %arg19[%c0_143, %c2_144, %c2_145, %c0_146] : memref<2x10x10x64xf32, #tpu.memory_space<vmem>>, vector<2x8x8x64xf32>
    %81 = vector.shape_cast %80 : vector<2x8x8x64xf32> to vector<128x64xf32>
    %82 = tpu.concatenate %65, %67, %69, %71, %73, %75, %77, %79, %81 in 1 : vector<128x64xf32>, vector<128x64xf32>, vector<128x64xf32>, vector<128x64xf32>, vector<128x64xf32>, vector<128x64xf32>, vector<128x64xf32>, vector<128x64xf32>, vector<128x64xf32> -> vector<128x576xf32>
    %c0_147 = arith.constant 0 : index
    %c0_148 = arith.constant 0 : index
    %83 = vector.load %arg5[%c0_147, %c0_148] : memref<576x128xf32, #tpu.memory_space<vmem>>, vector<576x128xf32>
    %cst_149 = arith.constant dense<0.000000e+00> : vector<128x128xf32>
    %84 = tpu.matmul %82, %83, %cst_149 {dimension_numbers = #tpu.dot_dimension_numbers<[1], [0], [0], [1], [0, 0, 1, 1], [], []>} : vector<128x576xf32>, vector<576x128xf32>, vector<128x128xf32> -> vector<128x128xf32>
    %c0_150 = arith.constant 0 : index
    %c0_151 = arith.constant 0 : index
    %85 = vector.load %arg6[%c0_150, %c0_151] : memref<1x128xf32, #tpu.memory_space<vmem>>, vector<1x128xf32>
    %86 = vector.broadcast %85 : vector<1x128xf32> to vector<128x128xf32>
    %87 = arith.addf %84, %86 : vector<128x128xf32>
    %cst_152 = arith.constant 0.000000e+00 : f32
    %88 = vector.broadcast %cst_152 : f32 to vector<128x128xf32>
    %89 = arith.maximumf %87, %88 : vector<128x128xf32>
    %90 = tpu.transpose %89, [1, 0] : vector<128x128xf32> -> vector<128x128xf32>
    %c0_153 = arith.constant 0 : index
    %c0_154 = arith.constant 0 : index
    %91 = vector.load %arg7[%c0_153, %c0_154] : memref<6x128xf32, #tpu.memory_space<vmem>>, vector<6x128xf32>
    %cst_155 = arith.constant dense<0.000000e+00> : vector<6x128xf32>
    %92 = tpu.matmul %91, %90, %cst_155 {dimension_numbers = #tpu.dot_dimension_numbers<[1], [0], [0], [1], [0, 0, 1, 1], [], []>} : vector<6x128xf32>, vector<128x128xf32>, vector<6x128xf32> -> vector<6x128xf32>
    %c0_156 = arith.constant 0 : index
    %c0_157 = arith.constant 0 : index
    %93 = vector.load %arg8[%c0_156, %c0_157] : memref<6x1xf32, #tpu.memory_space<vmem>>, vector<6x1xf32>
    %94 = vector.broadcast %93 : vector<6x1xf32> to vector<6x128xf32>
    %95 = arith.addf %92, %94 : vector<6x128xf32>
    %cst_158 = arith.constant 0.000000e+00 : f32
    %96 = vector.broadcast %cst_158 : f32 to vector<6x128xf32>
    %97 = arith.maximumf %95, %96 : vector<6x128xf32>
    %98 = vector.extract_strided_slice %97 {offsets = [0, 0], sizes = [1, 64], strides = [1, 1]} : vector<6x128xf32> to vector<1x64xf32>
    %99 = vector.extract_strided_slice %97 {offsets = [1, 0], sizes = [1, 64], strides = [1, 1]} : vector<6x128xf32> to vector<1x64xf32>
    %100 = vector.extract_strided_slice %97 {offsets = [2, 0], sizes = [1, 64], strides = [1, 1]} : vector<6x128xf32> to vector<1x64xf32>
    %101 = vector.extract_strided_slice %97 {offsets = [3, 0], sizes = [1, 64], strides = [1, 1]} : vector<6x128xf32> to vector<1x64xf32>
    %102 = tpu.concatenate %98, %99, %100, %101 in 1 : vector<1x64xf32>, vector<1x64xf32>, vector<1x64xf32>, vector<1x64xf32> -> vector<1x256xf32>
    %103 = vector.extract_strided_slice %97 {offsets = [0, 64], sizes = [1, 64], strides = [1, 1]} : vector<6x128xf32> to vector<1x64xf32>
    %104 = vector.extract_strided_slice %97 {offsets = [1, 64], sizes = [1, 64], strides = [1, 1]} : vector<6x128xf32> to vector<1x64xf32>
    %105 = vector.extract_strided_slice %97 {offsets = [2, 64], sizes = [1, 64], strides = [1, 1]} : vector<6x128xf32> to vector<1x64xf32>
    %106 = vector.extract_strided_slice %97 {offsets = [3, 64], sizes = [1, 64], strides = [1, 1]} : vector<6x128xf32> to vector<1x64xf32>
    %107 = tpu.concatenate %103, %104, %105, %106 in 1 : vector<1x64xf32>, vector<1x64xf32>, vector<1x64xf32>, vector<1x64xf32> -> vector<1x256xf32>
    %108 = tpu.concatenate %102, %107 in 0 : vector<1x256xf32>, vector<1x256xf32> -> vector<2x256xf32>
    %109 = vector.extract_strided_slice %97 {offsets = [4, 0], sizes = [1, 64], strides = [1, 1]} : vector<6x128xf32> to vector<1x64xf32>
    %110 = vector.extract_strided_slice %97 {offsets = [5, 0], sizes = [1, 64], strides = [1, 1]} : vector<6x128xf32> to vector<1x64xf32>
    %111 = tpu.concatenate %109, %110 in 1 : vector<1x64xf32>, vector<1x64xf32> -> vector<1x128xf32>
    %112 = vector.extract_strided_slice %97 {offsets = [4, 64], sizes = [1, 64], strides = [1, 1]} : vector<6x128xf32> to vector<1x64xf32>
    %113 = vector.extract_strided_slice %97 {offsets = [5, 64], sizes = [1, 64], strides = [1, 1]} : vector<6x128xf32> to vector<1x64xf32>
    %114 = tpu.concatenate %112, %113 in 1 : vector<1x64xf32>, vector<1x64xf32> -> vector<1x128xf32>
    %115 = tpu.concatenate %111, %114 in 0 : vector<1x128xf32>, vector<1x128xf32> -> vector<2x128xf32>
    %c0_159 = arith.constant 0 : index
    %c0_160 = arith.constant 0 : index
    %116 = vector.load %arg9[%c0_159, %c0_160] : memref<256x64xf32, #tpu.memory_space<vmem>>, vector<256x64xf32>
    %cst_161 = arith.constant dense<0.000000e+00> : vector<2x64xf32>
    %117 = tpu.matmul %108, %116, %cst_161 {dimension_numbers = #tpu.dot_dimension_numbers<[1], [0], [0], [1], [0, 0, 1, 1], [], []>} : vector<2x256xf32>, vector<256x64xf32>, vector<2x64xf32> -> vector<2x64xf32>
    %c0_162 = arith.constant 0 : index
    %c0_163 = arith.constant 0 : index
    %118 = vector.load %arg10[%c0_162, %c0_163] : memref<1x64xf32, #tpu.memory_space<vmem>>, vector<1x64xf32>
    %119 = vector.broadcast %118 : vector<1x64xf32> to vector<2x64xf32>
    %120 = arith.addf %117, %119 : vector<2x64xf32>
    %cst_164 = arith.constant dense<0xFF800000> : vector<2xf32>
    %121 = vector.multi_reduction <maximumf>, %120, %cst_164 [1] : vector<2x64xf32> to vector<2xf32>
    %122 = vector.shape_cast %121 : vector<2xf32> to vector<2x1xf32>
    %123 = vector.broadcast %122 : vector<2x1xf32> to vector<2x64xf32>
    %124 = arith.subf %120, %123 : vector<2x64xf32>
    %125 = math.exp %124 : vector<2x64xf32>
    %cst_165 = arith.constant dense<0.000000e+00> : vector<2xf32>
    %126 = vector.multi_reduction <add>, %125, %cst_165 [1] : vector<2x64xf32> to vector<2xf32>
    %127 = vector.shape_cast %126 : vector<2xf32> to vector<2x1xf32>
    %128 = math.log %127 : vector<2x1xf32>
    %129 = vector.broadcast %128 : vector<2x1xf32> to vector<2x64xf32>
    %130 = arith.subf %124, %129 : vector<2x64xf32>
    %c0_166 = arith.constant 0 : index
    %c0_167 = arith.constant 0 : index
    %131 = vector.load %arg15[%c0_166, %c0_167] : memref<2x64xf32, #tpu.memory_space<vmem>>, vector<2x64xf32>
    tpu.vector_store %arg15[%c0_166, %c0_167], %130 {strides = array<i32>} : memref<2x64xf32, #tpu.memory_space<vmem>>, vector<2x64xf32>,
    %c0_168 = arith.constant 0 : index
    %c0_169 = arith.constant 0 : index
    %132 = vector.load %arg11[%c0_168, %c0_169] : memref<128x64xf32, #tpu.memory_space<vmem>>, vector<128x64xf32>
    %cst_170 = arith.constant dense<0.000000e+00> : vector<2x64xf32>
    %133 = tpu.matmul %115, %132, %cst_170 {dimension_numbers = #tpu.dot_dimension_numbers<[1], [0], [0], [1], [0, 0, 1, 1], [], []>} : vector<2x128xf32>, vector<128x64xf32>, vector<2x64xf32> -> vector<2x64xf32>
    %c0_171 = arith.constant 0 : index
    %c0_172 = arith.constant 0 : index
    %134 = vector.load %arg12[%c0_171, %c0_172] : memref<1x64xf32, #tpu.memory_space<vmem>>, vector<1x64xf32>
    %135 = vector.broadcast %134 : vector<1x64xf32> to vector<2x64xf32>
    %136 = arith.addf %133, %135 : vector<2x64xf32>
    %cst_173 = arith.constant 0.000000e+00 : f32
    %137 = vector.broadcast %cst_173 : f32 to vector<2x64xf32>
    %138 = arith.maximumf %136, %137 : vector<2x64xf32>
    %c0_174 = arith.constant 0 : index
    %c0_175 = arith.constant 0 : index
    %139 = vector.load %arg13[%c0_174, %c0_175] : memref<64x1xf32, #tpu.memory_space<vmem>>, vector<64x1xf32>
    %cst_176 = arith.constant dense<0.000000e+00> : vector<2x1xf32>
    %140 = tpu.matmul %138, %139, %cst_176 {dimension_numbers = #tpu.dot_dimension_numbers<[1], [0], [0], [1], [0, 0, 1, 1], [], []>} : vector<2x64xf32>, vector<64x1xf32>, vector<2x1xf32> -> vector<2x1xf32>
    %c0_177 = arith.constant 0 : index
    %c0_178 = arith.constant 0 : index
    %141 = vector.load %arg14[%c0_177, %c0_178] : memref<1x1xf32, #tpu.memory_space<vmem>>, vector<1x1xf32>
    %142 = vector.broadcast %141 : vector<1x1xf32> to vector<2x1xf32>
    %143 = arith.addf %140, %142 : vector<2x1xf32>
    %144 = math.tanh %143 : vector<2x1xf32>
    %c0_179 = arith.constant 0 : index
    %c0_180 = arith.constant 0 : index
    %145 = vector.load %arg16[%c0_179, %c0_180] : memref<2x1xf32, #tpu.memory_space<vmem>>, vector<2x1xf32>
    tpu.vector_store %arg16[%c0_179, %c0_180], %144 {strides = array<i32>} : memref<2x1xf32, #tpu.memory_space<vmem>>, vector<2x1xf32>,
    return
  }
}

</mosaic_0001>

<bundles_post_ra>
// kernel: plain_net_forward.1
= control target key start
LH: loop header
LB: loop body
LE: loop exit
PB: predicated region body
PF: predicated region fallthrough
CT: control target
= control target key end

     0   :  { %s7270_s0 = inlined_call_operand.vmem [shape: f32[2,8,8,4], index: 0, kind: input, shape index: {}]   ;;  %s7271_s1 = inlined_call_operand.vmem [shape: f32[36,32], index: 1, kind: input, shape index: {}]   ;;  %s7272_s2 = inlined_call_operand.vmem [shape: f32[1,32], index: 2, kind: input, shape index: {}]   ;;  %s7273_s3 = inlined_call_operand.vmem [shape: f32[288,64], index: 3, kind: input, shape index: {}]   ;;  %s7274_s4 = inlined_call_operand.vmem [shape: f32[1,64], index: 4, kind: input, shape index: {}]   ;;  %s7275_s5 = inlined_call_operand.vmem [shape: f32[576,128], index: 5, kind: input, shape index: {}]   ;;  %s7276_s6 = inlined_call_operand.vmem [shape: f32[1,128], index: 6, kind: input, shape index: {}]   ;;  %s7277_s7 = inlined_call_operand.vmem [shape: f32[6,128], index: 7, kind: input, shape index: {}]   ;;  %s7278_s8 = inlined_call_operand.vmem [shape: f32[6,1], index: 8, kind: input, shape index: {}]   ;;  %s7279_s9 = inlined_call_operand.vmem [shape: f32[256,64], index: 9, kind: input, shape index: {}]   ;;  %s7280_s10 = inlined_call_operand.vmem [shape: f32[1,64], index: 10, kind: input, shape index: {}]   ;;  %s7281_s11 = inlined_call_operand.vmem [shape: f32[128,64], index: 11, kind: input, shape index: {}]   ;;  %s7282_s12 = inlined_call_operand.vmem [shape: f32[1,64], index: 12, kind: input, shape index: {}]   ;;  %s7283_s13 = inlined_call_operand.vmem [shape: f32[64,1], index: 13, kind: input, shape index: {}]   ;;  %s7284_s14 = inlined_call_operand.<no memory space> [shape: f32[1,1], index: 14, kind: input, shape index: {}]   ;;  %s7285_s15 = inlined_call_operand.hbm [shape: f32[2,64], index: 15, kind: output, shape index: {0}]   ;;  %s7286_s16 = inlined_call_operand.vmem [shape: f32[2,1], index: 16, kind: output, shape index: {1}]  }
   0x1   :  { %7288 = sst [smem:[#allocation9_spill]] %s7270_s0  ;;  %v22_v0 = vstv %s7284_s14 }
   0x2   :  { %23 = vst [vmem:[#allocation5] sm:$0x1] %v22_v0 }
   0x3   :  { %vm55_vm0 = vcmask 31744   ;;  %vm57_vm1 = vcmask 25600   ;;  %s7289_s25 = sld [smem:[#allocation9_spill]]  ;;  %v5077_v2 = vmov 0.0  }
   0x4   :  { %56 = vst.msk [vmem:[#allocation2] sm:$0xff] %vm55_vm0, %v5077_v2  ;;  %59 = vst.msk [vmem:[#allocation2 + $0x10] sm:$0xff] %vm55_vm0, %v5077_v2 }
   0x5   :  { %58 = vst.msk [vmem:[#allocation2 + $0x8] sm:$0x3] %vm57_vm1, %v5077_v2  ;;  %60 = vst.msk [vmem:[#allocation2 + $0x18] sm:$0x3] %vm57_vm1, %v5077_v2 }
   0x6   :  { %61 = vst.msk [vmem:[#allocation2 + $0x20] sm:$0xff] %vm55_vm0, %v5077_v2  ;;  %63 = vst.msk [vmem:[#allocation2 + $0x30] sm:$0xff] %vm55_vm0, %v5077_v2 }
   0x7   :  { %62 = vst.msk [vmem:[#allocation2 + $0x28] sm:$0x3] %vm57_vm1, %v5077_v2  ;;  %64 = vst.msk [vmem:[#allocation2 + $0x38] sm:$0x3] %vm57_vm1, %v5077_v2 }
   0x8   :  { %65 = vst.msk [vmem:[#allocation2 + $0x40] sm:$0xff] %vm55_vm0, %v5077_v2  ;;  %67 = vst.msk [vmem:[#allocation2 + $0x50] sm:$0xff] %vm55_vm0, %v5077_v2 }
   0x9   :  { %v97_v1 = vld [vmem:[%s7289_s25] sm:$0xff]  ;;  %66 = vst.msk [vmem:[#allocation2 + $0x48] sm:$0x3] %vm57_vm1, %v5077_v2  ;;  %68 = vst.msk [vmem:[#allocation2 + $0x58] sm:$0x3] %vm57_vm1, %v5077_v2  ;;  %v98_v3 = vld [vmem:[%s7289_s25 + $0x8] sm:$0xff] }
   0xa   :  { %69 = vst.msk [vmem:[#allocation2 + $0x60] sm:$0xff] %vm55_vm0, %v5077_v2  ;;  %71 = vst.msk [vmem:[#allocation2 + $0x70] sm:$0xff] %vm55_vm0, %v5077_v2  ;;  %v99_v4 = vld [vmem:[%s7289_s25 + $0x10] sm:$0xff]  ;;  %v100_v5 = vld [vmem:[%s7289_s25 + $0x18] sm:$0xff] }
   0xb   :  { %70 = vst.msk [vmem:[#allocation2 + $0x68] sm:$0x3] %vm57_vm1, %v5077_v2  ;;  %72 = vst.msk [vmem:[#allocation2 + $0x78] sm:$0x3] %vm57_vm1, %v5077_v2  ;;  %v101_v6 = vld [vmem:[%s7289_s25 + $0x20] sm:$0xff]  ;;  %v102_v7 = vld [vmem:[%s7289_s25 + $0x28] sm:$0xff] }
   0xc   :  { %73 = vst.msk [vmem:[#allocation2 + $0x80] sm:$0xff] %vm55_vm0, %v5077_v2  ;;  %75 = vst.msk [vmem:[#allocation2 + $0x90] sm:$0xff] %vm55_vm0, %v5077_v2  ;;  %v103_v8 = vld [vmem:[%s7289_s25 + $0x30] sm:$0xff]  ;;  %v104_v9 = vld [vmem:[%s7289_s25 + $0x38] sm:$0xff] }
   0xd   :  { %74 = vst.msk [vmem:[#allocation2 + $0x88] sm:$0x3] %vm57_vm1, %v5077_v2  ;;  %76 = vst.msk [vmem:[#allocation2 + $0x98] sm:$0x3] %vm57_vm1, %v5077_v2  ;;  %v105_v10 = vld [vmem:[%s7289_s25 + $0x40] sm:$0xff] }
   0xe   :  { %77 = vst.msk [vmem:[#allocation2 + $0xa0] sm:$0xff] %vm55_vm0, %v5077_v2  ;;  %79 = vst.msk [vmem:[#allocation2 + $0xb0] sm:$0xff] %vm55_vm0, %v5077_v2 }
   0xf   :  { %78 = vst.msk [vmem:[#allocation2 + $0xa8] sm:$0x3] %vm57_vm1, %v5077_v2  ;;  %80 = vst.msk [vmem:[#allocation2 + $0xb8] sm:$0x3] %vm57_vm1, %v5077_v2 }
  0x10   :  { %81 = vst.msk [vmem:[#allocation2 + $0xc0] sm:$0xff] %vm55_vm0, %v5077_v2  ;;  %83 = vst.msk [vmem:[#allocation2 + $0xd0] sm:$0xff] %vm55_vm0, %v5077_v2 }
  0x11   :  { %82 = vst.msk [vmem:[#allocation2 + $0xc8] sm:$0x3] %vm57_vm1, %v5077_v2  ;;  %84 = vst.msk [vmem:[#allocation2 + $0xd8] sm:$0x3] %vm57_vm1, %v5077_v2 }
  0x12   :  { %85 = vst.msk [vmem:[#allocation2 + $0xe0] sm:$0xff] %vm55_vm0, %v5077_v2  ;;  %87 = vst.msk [vmem:[#allocation2 + $0xf0] sm:$0xff] %vm55_vm0, %v5077_v2 }
  0x13   :  { %86 = vst.msk [vmem:[#allocation2 + $0xe8] sm:$0x3] %vm57_vm1, %v5077_v2  ;;  %88 = vst.msk [vmem:[#allocation2 + $0xf8] sm:$0x3] %vm57_vm1, %v5077_v2 }
  0x14   :  { %89 = vst.msk [vmem:[#allocation2 + $0x100] sm:$0xff] %vm55_vm0, %v5077_v2  ;;  %91 = vst.msk [vmem:[#allocation2 + $0x110] sm:$0xff] %vm55_vm0, %v5077_v2 }
  0x15   :  { %90 = vst.msk [vmem:[#allocation2 + $0x108] sm:$0x3] %vm57_vm1, %v5077_v2  ;;  %92 = vst.msk [vmem:[#allocation2 + $0x118] sm:$0x3] %vm57_vm1, %v5077_v2 }
  0x16   :  { %93 = vst.msk [vmem:[#allocation2 + $0x120] sm:$0xff] %vm55_vm0, %v5077_v2  ;;  %95 = vst.msk [vmem:[#allocation2 + $0x130] sm:$0xff] %vm55_vm0, %v5077_v2 }
  0x17   :  { %94 = vst.msk [vmem:[#allocation2 + $0x128] sm:$0x3] %vm57_vm1, %v5077_v2  ;;  %96 = vst.msk [vmem:[#allocation2 + $0x138] sm:$0x3] %vm57_vm1, %v5077_v2 }
  0x18   :  { %114 = vst.msk [vmem:[#allocation2 + $0x11] sm:$0xff] %vm55_vm0, %v97_v1  ;;  %115 = vst.msk [vmem:[#allocation2 + $0x21] sm:$0xff] %vm55_vm0, %v98_v3 }
  0x19   :  { %116 = vst.msk [vmem:[#allocation2 + $0x31] sm:$0xff] %vm55_vm0, %v99_v4  ;;  %117 = vst.msk [vmem:[#allocation2 + $0x41] sm:$0xff] %vm55_vm0, %v100_v5 }
  0x1a   :  { %118 = vst.msk [vmem:[#allocation2 + $0x51] sm:$0xff] %vm55_vm0, %v101_v6  ;;  %119 = vst.msk [vmem:[#allocation2 + $0x61] sm:$0xff] %vm55_vm0, %v102_v7 }
  0x1b   :  { %120 = vst.msk [vmem:[#allocation2 + $0x71] sm:$0xff] %vm55_vm0, %v103_v8 }
  0x1c   :  { %24 = vsyncpa [#allocation7], 0  ;;  %121 = vst.msk [vmem:[#allocation2 + $0x81] sm:$0xff] %vm55_vm0, %v104_v9  ;;  %v162_v11 = vld [vmem:[#allocation2 + $0x2] sm:$0xff]  ;;  %s5078_s26 = smov 8   ;;  %s5079_s27 = smov 4  }
  0x1d   :  { %122 = vst.msk [vmem:[#allocation2 + $0xb1] sm:$0xff] %vm55_vm0, %v105_v10  ;;  %v146_v12 = vld [vmem:[#allocation2 + $0x1] sm:$0xff]  ;;  %355 = vrot.lane.b32.xlu1 %v162_v11, %s5078_s26  ;;  %s5080_s28 = smov 12   ;;  %s5081_s0 = smov 16   ;;  %v107_v19 = vld [vmem:[%s7289_s25 + $0x50] sm:$0xff]  ;;  %vm905_vm2 = vcmask 261120  }
  0x1e   :  { %291 = vrot.lane.b32.xlu0 %v146_v12, %s5079_s27  ;;  %v106_v18 = vld [vmem:[%s7289_s25 + $0x48] sm:$0xff]  ;;  %s5082_s19 = smov 20   ;;  %124 = vst.msk [vmem:[#allocation2 + $0xd1] sm:$0xff] %vm55_vm0, %v107_v19  ;;  %v922_v21 = vld [vmem:[%s7271_s1] sm:$0xff]  ;;  %s5083_s24 = smov 24   ;;  %v924_v25 = vld [vmem:[%s7271_s1 + $0x10] sm:$0xff] }
  0x1f   :  { %v163_v13 = vld [vmem:[#allocation2 + $0x12] sm:$0xff]  ;;  %v5300_v15 = vld [vmem:[#allocation2 + $0x20] sm:$0xff]  ;;  %123 = vst.msk [vmem:[#allocation2 + $0xc1] sm:$0xff] %vm55_vm0, %v106_v18  ;;  %v923_v22 = vld [vmem:[%s7271_s1 + $0x8] sm:$0xff]  ;;  %s5084_s18 = smov 28   ;;  %vm983_vm3 = vcmask 1043456  }
  0x20   :  { %v147_v14 = vld [vmem:[#allocation2 + $0x11] sm:$0xff]  ;;  %v195_v17 = vld [vmem:[#allocation2 + $0x21] sm:$0xff]  ;;  %v4406_v23 = vpack.c.bf16 %v923_v22, %v922_v21  ;;  %1148 = vst.msk [vmem:[#allocation3] sm:$0xff] %vm905_vm2, %v5077_v2  ;;  %1151 = vst.msk [vmem:[#allocation3 + $0x10] sm:$0xff] %vm905_vm2, %v5077_v2  ;;  %s5085_s14 = smov 32   ;;  %vm803_vm4 = vcmask 64512  }
  0x21   :  { %357 = vrot.lane.b32.xlu1 %v163_v13, %s5078_s26  ;;  %v5302_v16 = vld [vmem:[#allocation2 + $0x10] sm:$0xff]  ;;  %v211_v20 = vld [vmem:[#allocation2 + $0x22] sm:$0xff]  ;;  %1153 = vst.msk [vmem:[#allocation3 + $0x20] sm:$0xff] %vm905_vm2, %v5077_v2  ;;  %1155 = vst.msk [vmem:[#allocation3 + $0x30] sm:$0xff] %vm905_vm2, %v5077_v2  ;;  %vm820_vm5 = vcmask 97280   ;;  %vm837_vm6 = vcmask 130048  }
  0x22   :  { %293 = vrot.lane.b32.xlu0 %v147_v14, %s5079_s27  ;;  %v149_v24 = vld [vmem:[#allocation2 + $0x31] sm:$0xff]  ;;  %4407 = vmatprep.subr.bf16.mxu0 %v4406_v23  ;;  %1157 = vst.msk [vmem:[#allocation3 + $0x40] sm:$0xff] %vm905_vm2, %v5077_v2  ;;  %1159 = vst.msk [vmem:[#allocation3 + $0x50] sm:$0xff] %vm905_vm2, %v5077_v2  ;;  %v926_v29 = vld [vmem:[%s7271_s1 + $0x20] sm:$0xf]  ;;  %vm854_vm7 = vcmask 162816  }
  0x23   :  { %4409 = vmatpush3.bf16.msra.mxu0 %v4406_v23  ;;  %1161 = vst.msk [vmem:[#allocation3 + $0x60] sm:$0xff] %vm905_vm2, %v5077_v2  ;;  %1163 = vst.msk [vmem:[#allocation3 + $0x70] sm:$0xff] %vm905_vm2, %v5077_v2  ;;  %v925_v26 = vld [vmem:[%s7271_s1 + $0x18] sm:$0xff]  ;;  %v5377_v27 = vld [vmem:[#allocation2 + $0x30] sm:$0xff]  ;;  %vm871_vm8 = vcmask 195584   ;;  %vm888_vm9 = vcmask 228352  }
  0x24   :  { %1165 = vst.msk [vmem:[#allocation3 + $0x80] sm:$0xff] %vm905_vm2, %v5077_v2  ;;  %1167 = vst.msk [vmem:[#allocation3 + $0x90] sm:$0xff] %vm905_vm2, %v5077_v2  ;;  %v4410_v28 = vpack.c.bf16 %v925_v26, %v924_v25  ;;  %v165_v30 = vld [vmem:[#allocation2 + $0x32] sm:$0xff]  ;;  %v5394_v32 = vld [vmem:[#allocation2 + $0x40] sm:$0xff]  ;;  %vm934_vm10 = vcmask 293888   ;;  %vm1149_vm11 = vcmask 254976  }
  0x25   :  { %421 = vrot.lane.b32.xlu1 %v5300_v15, %s5080_s28  ;;  %1169 = vst.msk [vmem:[#allocation3 + $0xa0] sm:$0xff] %vm905_vm2, %v5077_v2  ;;  %1171 = vst.msk [vmem:[#allocation3 + $0xb0] sm:$0xff] %vm905_vm2, %v5077_v2  ;;  %v108_v31 = vld [vmem:[%s7289_s25 + $0x58] sm:$0xff]  ;;  %v197_v33 = vld [vmem:[#allocation2 + $0x41] sm:$0xff]  ;;  %vm1751_vm12 = vcmask 523264   ;;  %s5087_s29 = smov 96  }
  0x26   :  { %419 = vrot.lane.b32.xlu0 %v5302_v16, %s5080_s28  ;;  %1173 = vst.msk [vmem:[#allocation3 + $0xc0] sm:$0xff] %vm905_vm2, %v5077_v2  ;;  %1175 = vst.msk [vmem:[#allocation3 + $0xd0] sm:$0xff] %vm905_vm2, %v5077_v2  ;;  %4411 = vmatprep.subr.bf16.mxu0 %v4410_v28  ;;  %v109_v34 = vld [vmem:[%s7289_s25 + $0x60] sm:$0xff]  ;;  %v5407_v36 = vld [vmem:[#allocation2 + $0x50] sm:$0xff]  ;;  %vm1768_vm13 = vcmask 785408   ;;  %vm2231_vm14 = vcmask 517120  }
  0x27   :  { %1177 = vst.msk [vmem:[#allocation3 + $0xe0] sm:$0xff] %vm905_vm2, %v5077_v2  ;;  %1179 = vst.msk [vmem:[#allocation3 + $0xf0] sm:$0xff] %vm905_vm2, %v5077_v2  ;;  %4413 = vmatpush3.bf16.msra.mxu0 %v4410_v28  ;;  %v213_v35 = vld [vmem:[#allocation2 + $0x42] sm:$0xff]  ;;  %v246_v37 = vld [vmem:[#allocation2 + $0x51] sm:$0xff]  ;;  %vm5089_vm15 = vmmov 0   ;;  %vm3752_vm1 = vcmask 1024  }
  0x28   :  { %1181 = vst.msk [vmem:[#allocation3 + $0x100] sm:$0xff] %vm905_vm2, %v5077_v2  ;;  %1183 = vst.msk [vmem:[#allocation3 + $0x110] sm:$0xff] %vm905_vm2, %v5077_v2  ;;  %4219 = vmatprep.subr.msk.mxu0 %vm983_vm3, %v926_v29  ;;  %v262_v38 = vld [vmem:[#allocation2 + $0x52] sm:$0xff]  ;;  %v110_v39 = vld [vmem:[%s7289_s25 + $0x68] sm:$0xff] }
  0x29   :  { %485 = vrot.lane.b32.xlu1 %v195_v17, %s5081_s0  ;;  %1185 = vst.msk [vmem:[#allocation3 + $0x120] sm:$0xff] %vm905_vm2, %v5077_v2  ;;  %1187 = vst.msk [vmem:[#allocation3 + $0x130] sm:$0xff] %vm905_vm2, %v5077_v2  ;;  %v5425_v40 = vld [vmem:[#allocation2 + $0x60] sm:$0xff]  ;;  %v111_v42 = vld [vmem:[%s7289_s25 + $0x70] sm:$0xff] }
  0x2a   :  { %483 = vrot.lane.b32.xlu0 %v147_v14, %s5081_s0  ;;  %125 = vst.msk [vmem:[#allocation2 + $0xe1] sm:$0xff] %vm55_vm0, %v108_v31  ;;  %126 = vst.msk [vmem:[#allocation2 + $0xf1] sm:$0xff] %vm55_vm0, %v109_v34  ;;  %v199_v41 = vld [vmem:[#allocation2 + $0x61] sm:$0xff]  ;;  %v5439_v44 = vld [vmem:[#allocation2 + $0x70] sm:$0xff] }
  0x2b   :  { %4220 = vmatpush3.msk.msra.mxu0 %vm983_vm3, %v926_v29  ;;  %127 = vst.msk [vmem:[#allocation2 + $0x101] sm:$0xff] %vm55_vm0, %v110_v39  ;;  %v215_v43 = vld [vmem:[#allocation2 + $0x62] sm:$0xff]  ;;  %128 = vst.msk [vmem:[#allocation2 + $0x111] sm:$0xff] %vm55_vm0, %v111_v42  ;;  %v248_v45 = vld [vmem:[#allocation2 + $0x71] sm:$0xff] }
  0x2c   :  { %v264_v46 = vld [vmem:[#allocation2 + $0x72] sm:$0xff]  ;;  %v185_v48 = vld [vmem:[#allocation2 + $0x80] sm:$0xff]  ;;  %1154 = vst.msk [vmem:[#allocation3 + $0x28] sm:$0x3] %vm1149_vm11, %v5077_v2  ;;  %1150 = vst.msk [vmem:[#allocation3 + $0x8] sm:$0x3] %vm1149_vm11, %v5077_v2 }
  0x2d   :  { %295 = vrot.lane.b32.xlu1 %v195_v17, %s5079_s27  ;;  %v112_v47 = vld [vmem:[%s7289_s25 + $0x78] sm:$0xff]  ;;  %v201_v49 = vld [vmem:[#allocation2 + $0x81] sm:$0xff]  ;;  %v234_v51 = vld [vmem:[#allocation2 + $0x90] sm:$0xff]  ;;  %1152 = vst.msk [vmem:[#allocation3 + $0x18] sm:$0x3] %vm1149_vm11, %v5077_v2 }
  0x2e   :  { %547 = vrot.lane.b32.xlu0 %v163_v13, %s5082_s19  ;;  %129 = vst.msk [vmem:[#allocation2 + $0x121] sm:$0xff] %vm55_vm0, %v112_v47  ;;  %v217_v50 = vld [vmem:[#allocation2 + $0x82] sm:$0xff]  ;;  %v250_v54 = vld [vmem:[#allocation2 + $0x91] sm:$0xff] }
  0x2f   :  { %v266_v57 = vld [vmem:[#allocation2 + $0x92] sm:$0xff]  ;;  %v154_v61 = vld [vmem:[#allocation2 + $0xa1] sm:$0xff]  ;;  %1156 = vst.msk [vmem:[#allocation3 + $0x38] sm:$0x3] %vm1149_vm11, %v5077_v2  ;;  %1158 = vst.msk [vmem:[#allocation3 + $0x48] sm:$0x3] %vm1149_vm11, %v5077_v2 }
  0x30   :  { %v155_v60 = vld [vmem:[#allocation2 + $0xb1] sm:$0xff]  ;;  %v170_v1 = vld [vmem:[#allocation2 + $0xa2] sm:$0xff]  ;;  %1160 = vst.msk [vmem:[#allocation3 + $0x58] sm:$0x3] %vm1149_vm11, %v5077_v2  ;;  %1162 = vst.msk [vmem:[#allocation3 + $0x68] sm:$0x3] %vm1149_vm11, %v5077_v2 }
  0x31   :  { %611 = vrot.lane.b32.xlu1 %v5300_v15, %s5083_s24  ;;  %v171_v0 = vld [vmem:[#allocation2 + $0xb2] sm:$0xff]  ;;  %v5478_v5 = vld [vmem:[#allocation2 + $0xc0] sm:$0xff]  ;;  %1164 = vst.msk [vmem:[#allocation3 + $0x78] sm:$0x3] %vm1149_vm11, %v5077_v2  ;;  %1166 = vst.msk [vmem:[#allocation3 + $0x88] sm:$0x3] %vm1149_vm11, %v5077_v2 }
  0x32   :  { %549 = vrot.lane.b32.xlu0 %v211_v20, %s5082_s19  ;;  %v5480_v6 = vld [vmem:[#allocation2 + $0xb0] sm:$0xff]  ;;  %v203_v9 = vld [vmem:[#allocation2 + $0xc1] sm:$0xff]  ;;  %1168 = vst.msk [vmem:[#allocation3 + $0x98] sm:$0x3] %vm1149_vm11, %v5077_v2  ;;  %1170 = vst.msk [vmem:[#allocation3 + $0xa8] sm:$0x3] %vm1149_vm11, %v5077_v2 }
  0x33   :  { %v130_v12 = vld [vmem:[#allocation2] sm:$0xff]  ;;  %v157_v26 = vld [vmem:[#allocation2 + $0xd1] sm:$0xff]  ;;  %1172 = vst.msk [vmem:[#allocation3 + $0xb8] sm:$0x3] %vm1149_vm11, %v5077_v2  ;;  %1174 = vst.msk [vmem:[#allocation3 + $0xc8] sm:$0x3] %vm1149_vm11, %v5077_v2 }
  0x34   :  { %v219_v19 = vld [vmem:[#allocation2 + $0xc2] sm:$0xff]  ;;  %1176 = vst.msk [vmem:[#allocation3 + $0xd8] sm:$0x3] %vm1149_vm11, %v5077_v2  ;;  %1178 = vst.msk [vmem:[#allocation3 + $0xe8] sm:$0x3] %vm1149_vm11, %v5077_v2 }
  0x35   :  { %359 = vrot.lane.b32.xlu1 %v211_v20, %s5078_s26  ;;  %1180 = vst.msk [vmem:[#allocation3 + $0xf8] sm:$0x3] %vm1149_vm11, %v5077_v2  ;;  %1182 = vst.msk [vmem:[#allocation3 + $0x108] sm:$0x3] %vm1149_vm11, %v5077_v2 }
  0x36   :  { %297 = vrot.lane.b32.xlu0 %v149_v24, %s5079_s27  ;;  %1184 = vst.msk [vmem:[#allocation3 + $0x118] sm:$0x3] %vm1149_vm11, %v5077_v2  ;;  %1186 = vst.msk [vmem:[#allocation3 + $0x128] sm:$0x3] %vm1149_vm11, %v5077_v2 }
  0x37   :  { %1188 = vst.msk [vmem:[#allocation3 + $0x138] sm:$0x3] %vm1149_vm11, %v5077_v2 }
  0x38   :  { %2230 = vst.msk [vmem:[#allocation4] sm:$0xff] %vm1751_vm12, %v5077_v2  ;;  %2233 = vst.msk [vmem:[#allocation4 + $0x10] sm:$0xff] %vm1751_vm12, %v5077_v2 }
  0x39   :  { %675 = vrot.lane.b32.xlu1 %v195_v17, %s5084_s18  ;;  %2235 = vst.msk [vmem:[#allocation4 + $0x20] sm:$0xff] %vm1751_vm12, %v5077_v2  ;;  %2237 = vst.msk [vmem:[#allocation4 + $0x30] sm:$0xff] %vm1751_vm12, %v5077_v2 }
  0x3a   :  { %613 = vrot.lane.b32.xlu0 %v5377_v27, %s5083_s24  ;;  %2239 = vst.msk [vmem:[#allocation4 + $0x40] sm:$0xff] %vm1751_vm12, %v5077_v2  ;;  %2241 = vst.msk [vmem:[#allocation4 + $0x50] sm:$0xff] %vm1751_vm12, %v5077_v2 }
  0x3b   :  { %2243 = vst.msk [vmem:[#allocation4 + $0x60] sm:$0xff] %vm1751_vm12, %v5077_v2  ;;  %2245 = vst.msk [vmem:[#allocation4 + $0x70] sm:$0xff] %vm1751_vm12, %v5077_v2 }
  0x3c   :  { %2247 = vst.msk [vmem:[#allocation4 + $0x80] sm:$0xff] %vm1751_vm12, %v5077_v2  ;;  %2249 = vst.msk [vmem:[#allocation4 + $0x90] sm:$0xff] %vm1751_vm12, %v5077_v2 }
  0x3d   :  { %423 = vrot.lane.b32.xlu1 %v5377_v27, %s5080_s28  ;;  %2251 = vst.msk [vmem:[#allocation4 + $0xa0] sm:$0xff] %vm1751_vm12, %v5077_v2  ;;  %2253 = vst.msk [vmem:[#allocation4 + $0xb0] sm:$0xff] %vm1751_vm12, %v5077_v2 }
  0x3e   :  { %361 = vrot.lane.b32.xlu0 %v165_v30, %s5078_s26  ;;  %2255 = vst.msk [vmem:[#allocation4 + $0xc0] sm:$0xff] %vm1751_vm12, %v5077_v2  ;;  %2257 = vst.msk [vmem:[#allocation4 + $0xd0] sm:$0xff] %vm1751_vm12, %v5077_v2 }
  0x3f   :  { %2259 = vst.msk [vmem:[#allocation4 + $0xe0] sm:$0xff] %vm1751_vm12, %v5077_v2  ;;  %2261 = vst.msk [vmem:[#allocation4 + $0xf0] sm:$0xff] %vm1751_vm12, %v5077_v2 }
  0x40   :  { %2263 = vst.msk [vmem:[#allocation4 + $0x100] sm:$0xff] %vm1751_vm12, %v5077_v2  ;;  %2265 = vst.msk [vmem:[#allocation4 + $0x110] sm:$0xff] %vm1751_vm12, %v5077_v2 }
  0x41   :  { %739 = vrot.lane.b32.xlu1 %v211_v20, %s5085_s14  ;;  %2267 = vst.msk [vmem:[#allocation4 + $0x120] sm:$0xff] %vm1751_vm12, %v5077_v2  ;;  %2269 = vst.msk [vmem:[#allocation4 + $0x130] sm:$0xff] %vm1751_vm12, %v5077_v2 }
  0x42   :  { %677 = vrot.lane.b32.xlu0 %v149_v24, %s5084_s18  ;;  %2234 = vst.msk [vmem:[#allocation4 + $0x18] sm:$0x3] %vm2231_vm14, %v5077_v2  ;;  %2232 = vst.msk [vmem:[#allocation4 + $0x8] sm:$0x3] %vm2231_vm14, %v5077_v2 }
  0x43   :  { %2236 = vst.msk [vmem:[#allocation4 + $0x28] sm:$0x3] %vm2231_vm14, %v5077_v2  ;;  %2238 = vst.msk [vmem:[#allocation4 + $0x38] sm:$0x3] %vm2231_vm14, %v5077_v2 }
  0x44   :  { %2240 = vst.msk [vmem:[#allocation4 + $0x48] sm:$0x3] %vm2231_vm14, %v5077_v2  ;;  %2242 = vst.msk [vmem:[#allocation4 + $0x58] sm:$0x3] %vm2231_vm14, %v5077_v2 }
  0x45   :  { %487 = vrot.lane.b32.xlu1 %v149_v24, %s5081_s0  ;;  %2244 = vst.msk [vmem:[#allocation4 + $0x68] sm:$0x3] %vm2231_vm14, %v5077_v2  ;;  %2246 = vst.msk [vmem:[#allocation4 + $0x78] sm:$0x3] %vm2231_vm14, %v5077_v2 }
  0x46   :  { %425 = vrot.lane.b32.xlu0 %v5394_v32, %s5080_s28  ;;  %2248 = vst.msk [vmem:[#allocation4 + $0x88] sm:$0x3] %vm2231_vm14, %v5077_v2  ;;  %2250 = vst.msk [vmem:[#allocation4 + $0x98] sm:$0x3] %vm2231_vm14, %v5077_v2 }
  0x47   :  { %2252 = vst.msk [vmem:[#allocation4 + $0xa8] sm:$0x3] %vm2231_vm14, %v5077_v2  ;;  %2254 = vst.msk [vmem:[#allocation4 + $0xb8] sm:$0x3] %vm2231_vm14, %v5077_v2 }
  0x48   :  { %2256 = vst.msk [vmem:[#allocation4 + $0xc8] sm:$0x3] %vm2231_vm14, %v5077_v2  ;;  %2258 = vst.msk [vmem:[#allocation4 + $0xd8] sm:$0x3] %vm2231_vm14, %v5077_v2 }
  0x49   :  { %489 = vrot.lane.b32.xlu1 %v197_v33, %s5081_s0  ;;  %2260 = vst.msk [vmem:[#allocation4 + $0xe8] sm:$0x3] %vm2231_vm14, %v5077_v2  ;;  %2262 = vst.msk [vmem:[#allocation4 + $0xf8] sm:$0x3] %vm2231_vm14, %v5077_v2 }
  0x4a   :  { %741 = vrot.lane.b32.xlu0 %v165_v30, %s5085_s14  ;;  %2264 = vst.msk [vmem:[#allocation4 + $0x108] sm:$0x3] %vm2231_vm14, %v5077_v2  ;;  %2266 = vst.msk [vmem:[#allocation4 + $0x118] sm:$0x3] %vm2231_vm14, %v5077_v2 }
  0x4b   :  { %2268 = vst.msk [vmem:[#allocation4 + $0x128] sm:$0x3] %vm2231_vm14, %v5077_v2  ;;  %2270 = vst.msk [vmem:[#allocation4 + $0x138] sm:$0x3] %vm2231_vm14, %v5077_v2 }
  0x4d   :  { %553 = vrot.lane.b32.xlu1 %v213_v35, %s5082_s19 }
  0x4e   :  { %551 = vrot.lane.b32.xlu0 %v165_v30, %s5082_s19 }
  0x51   :  { %617 = vrot.lane.b32.xlu1 %v5407_v36, %s5083_s24 }
  0x52   :  { %615 = vrot.lane.b32.xlu0 %v5394_v32, %s5083_s24 }
  0x55   :  { %681 = vrot.lane.b32.xlu1 %v246_v37, %s5084_s18 }
  0x56   :  { %679 = vrot.lane.b32.xlu0 %v197_v33, %s5084_s18 }
  0x59   :  { %299 = vrot.lane.b32.xlu1 %v197_v33, %s5079_s27 }
  0x5a   :  { %743 = vrot.lane.b32.xlu0 %v213_v35, %s5085_s14 }
  0x5d   :  { %301 = vrot.lane.b32.xlu1 %v246_v37, %s5079_s27 }
  0x5e   :  { %745 = vrot.lane.b32.xlu0 %v262_v38, %s5085_s14 }
  0x61   :  { %365 = vrot.lane.b32.xlu1 %v262_v38, %s5078_s26 }
  0x62   :  { %363 = vrot.lane.b32.xlu0 %v213_v35, %s5078_s26  ;;  %v5512_v35 = vld [vmem:[#allocation2 + $0xd0] sm:$0xff] }
  0x65   :  { %429 = vrot.lane.b32.xlu1 %v5425_v40, %s5080_s28 }
  0x66   :  { %427 = vrot.lane.b32.xlu0 %v5407_v36, %s5080_s28 }
  0x69   :  { %493 = vrot.lane.b32.xlu1 %v199_v41, %s5081_s0 }
  0x6a   :  { %491 = vrot.lane.b32.xlu0 %v246_v37, %s5081_s0 }
  0x6d   :  { %557 = vrot.lane.b32.xlu1 %v215_v43, %s5082_s19 }
  0x6e   :  { %555 = vrot.lane.b32.xlu0 %v262_v38, %s5082_s19 }
  0x71   :  { %621 = vrot.lane.b32.xlu1 %v5439_v44, %s5083_s24 }
  0x72   :  { %619 = vrot.lane.b32.xlu0 %v5425_v40, %s5083_s24 }
  0x75   :  { %685 = vrot.lane.b32.xlu1 %v248_v45, %s5084_s18 }
  0x76   :  { %683 = vrot.lane.b32.xlu0 %v199_v41, %s5084_s18 }
  0x79   :  { %303 = vrot.lane.b32.xlu1 %v199_v41, %s5079_s27 }
  0x7a   :  { %747 = vrot.lane.b32.xlu0 %v215_v43, %s5085_s14 }
  0x7d   :  { %305 = vrot.lane.b32.xlu1 %v248_v45, %s5079_s27 }
  0x7e   :  { %749 = vrot.lane.b32.xlu0 %v264_v46, %s5085_s14 }
  0x81   :  { %369 = vrot.lane.b32.xlu1 %v264_v46, %s5078_s26 }
  0x82   :  { %367 = vrot.lane.b32.xlu0 %v215_v43, %s5078_s26  ;;  %v173_v43 = vld [vmem:[#allocation2 + $0xd2] sm:$0xff] }
  0x85   :  { %433 = vrot.lane.b32.xlu1 %v185_v48, %s5080_s28 }
  0x86   :  { %431 = vrot.lane.b32.xlu0 %v5439_v44, %s5080_s28 }
  0x89   :  { %497 = vrot.lane.b32.xlu1 %v201_v49, %s5081_s0 }
  0x8a   :  { %495 = vrot.lane.b32.xlu0 %v248_v45, %s5081_s0 }
  0x8d   :  { %561 = vrot.lane.b32.xlu1 %v217_v50, %s5082_s19 }
  0x8e   :  { %559 = vrot.lane.b32.xlu0 %v264_v46, %s5082_s19 }
  0x8f   :  { %v356_v52 = vpop.permute.xlu1 %355 }
  0x90   :  { %v292_v53 = vpop.permute.xlu0 %291 }
  0x91   :  { %625 = vrot.lane.b32.xlu1 %v234_v51, %s5083_s24  ;;  %v787_v13 = vsel %vm55_vm0, %v130_v12, %v292_v53  ;;  %v5529_v51 = vld [vmem:[#allocation2 + $0xe0] sm:$0xff] }
  0x92   :  { %623 = vrot.lane.b32.xlu0 %v185_v48, %s5083_s24  ;;  %v804_v18 = vsel %vm803_vm4, %v787_v13, %v356_v52 }
  0x93   :  { %v5466_v55 = vpop.permute.xlu1 %357 }
  0x94   :  { %v294_v56 = vpop.permute.xlu0 %293 }
  0x95   :  { %689 = vrot.lane.b32.xlu1 %v250_v54, %s5084_s18  ;;  %v788_v28 = vsel %vm55_vm0, %v5302_v16, %v294_v56  ;;  %v205_v56 = vld [vmem:[#allocation2 + $0xe1] sm:$0xff] }
  0x96   :  { %687 = vrot.lane.b32.xlu0 %v201_v49, %s5084_s18  ;;  %v805_v34 = vsel %vm803_vm4, %v788_v28, %v5466_v55 }
  0x97   :  { %v422_v58 = vpop.permute.xlu1 %421 }
  0x98   :  { %v420_v59 = vpop.permute.xlu0 %419  ;;  %v822_v16 = vsel %vm820_vm5, %v805_v34, %v422_v58 }
  0x99   :  { %753 = vrot.lane.b32.xlu1 %v266_v57, %s5085_s14  ;;  %v821_v20 = vsel %vm820_vm5, %v804_v18, %v420_v59  ;;  %v254_v18 = vld [vmem:[#allocation2 + $0xf1] sm:$0xff] }
  0x9a   :  { %751 = vrot.lane.b32.xlu0 %v217_v50, %s5085_s14 }
  0x9b   :  { %v486_v62 = vpop.permute.xlu1 %485 }
  0x9c   :  { %v484_v63 = vpop.permute.xlu0 %483  ;;  %v839_v39 = vsel %vm837_vm6, %v822_v16, %v486_v62  ;;  %v207_v16 = vld [vmem:[#allocation2 + $0x101] sm:$0xff] }
  0x9d   :  { %309 = vrot.lane.b32.xlu1 %v155_v60, %s5079_s27  ;;  %v838_v23 = vsel %vm837_vm6, %v821_v20, %v484_v63 }
  0x9e   :  { %307 = vrot.lane.b32.xlu0 %v154_v61, %s5079_s27 }
  0x9f   :  { %v5474_v3 = vpop.permute.xlu1 %295 }
  0xa0   :  { %v548_v4 = vpop.permute.xlu0 %547  ;;  %v789_v54 = vsel %vm55_vm0, %v5300_v15, %v5474_v3 }
  0xa1   :  { %373 = vrot.lane.b32.xlu1 %v171_v0, %s5078_s26  ;;  %v855_v24 = vsel %vm854_vm7, %v838_v23, %v548_v4  ;;  %v270_v23 = vld [vmem:[#allocation2 + $0xf2] sm:$0xff] }
  0xa2   :  { %371 = vrot.lane.b32.xlu0 %v170_v1, %s5078_s26 }
  0xa3   :  { %v612_v7 = vpop.permute.xlu1 %611 }
  0xa4   :  { %v550_v8 = vpop.permute.xlu0 %549  ;;  %v872_v25 = vsel %vm871_vm8, %v855_v24, %v612_v7 }
  0xa5   :  { %437 = vrot.lane.b32.xlu1 %v5478_v5, %s5080_s28  ;;  %v856_v41 = vsel %vm854_vm7, %v839_v39, %v550_v8 }
  0xa6   :  { %435 = vrot.lane.b32.xlu0 %v5480_v6, %s5080_s28 }
  0xa7   :  { %v5486_v10 = vpop.permute.xlu1 %359 }
  0xa8   :  { %v5488_v11 = vpop.permute.xlu0 %297  ;;  %v806_v55 = vsel %vm803_vm4, %v789_v54, %v5486_v10 }
  0xa9   :  { %501 = vrot.lane.b32.xlu1 %v203_v9, %s5081_s0  ;;  %v790_v61 = vsel %vm55_vm0, %v5377_v27, %v5488_v11  ;;  %v5558_v11 = vld [vmem:[#allocation2 + $0xf0] sm:$0xff] }
  0xaa   :  { %499 = vrot.lane.b32.xlu0 %v155_v60, %s5081_s0 }
  0xab   :  { %v676_v14 = vpop.permute.xlu1 %675 }
  0xac   :  { %v614_v17 = vpop.permute.xlu0 %613  ;;  %v889_v29 = vsel %vm888_vm9, %v872_v25, %v676_v14 }
  0xad   :  { %311 = vrot.lane.b32.xlu1 %v203_v9, %s5079_s27  ;;  %v873_v42 = vsel %vm871_vm8, %v856_v41, %v614_v17 }
  0xae   :  { %563 = vrot.lane.b32.xlu0 %v171_v0, %s5082_s19  ;;  %v221_v0 = vld [vmem:[#allocation2 + $0xe2] sm:$0xff] }
  0xaf   :  { %v424_v21 = vpop.permute.xlu1 %423 }
  0xb0   :  { %v362_v22 = vpop.permute.xlu0 %361  ;;  %v823_v57 = vsel %vm820_vm5, %v806_v55, %v424_v21  ;;  %v5602_v55 = vld [vmem:[#allocation2 + $0x110] sm:$0xff] }
  0xb1   :  { %627 = vrot.lane.b32.xlu1 %v5478_v5, %s5083_s24  ;;  %v807_v62 = vsel %vm803_vm4, %v790_v61, %v362_v22 }
  0xb2   :  { %565 = vrot.lane.b32.xlu0 %v219_v19, %s5082_s19 }
  0xb3   :  { %v740_v30 = vpop.permute.xlu1 %739 }
  0xb4   :  { %v678_v31 = vpop.permute.xlu0 %677  ;;  %v906_v33 = vsel %vm905_vm2, %v889_v29, %v740_v30  ;;  %v5575_v29 = vld [vmem:[#allocation2 + $0x100] sm:$0xff] }
  0xb5   :  { %375 = vrot.lane.b32.xlu1 %v219_v19, %s5078_s26  ;;  %4221 = vmatprep.mubr.msk.f32.mxu0 %vm934_vm10, %v906_v33  ;;  %v890_v45 = vsel %vm888_vm9, %v873_v42, %v678_v31 }
  0xb6   :  { %313 = vrot.lane.b32.xlu0 %v157_v26, %s5079_s27 }
  0xb7   :  { %v488_v37 = vpop.permute.xlu1 %487 }
  0xb8   :  { %v426_v38 = vpop.permute.xlu0 %425  ;;  %v840_v60 = vsel %vm837_vm6, %v823_v57, %v488_v37 }
  0xb9   :  { %691 = vrot.lane.b32.xlu1 %v203_v9, %s5084_s18  ;;  %v824_v1 = vsel %vm820_vm5, %v807_v62, %v426_v38 }
  0xba   :  { %629 = vrot.lane.b32.xlu0 %v5512_v35, %s5083_s24 }
  0xbb   :  { %v490_v46 = vpop.permute.xlu1 %489 }
  0xbc   :  { %v742_v47 = vpop.permute.xlu0 %741  ;;  %v841_v8 = vsel %vm837_vm6, %v824_v1, %v490_v46  ;;  %v223_v46 = vld [vmem:[#allocation2 + $0x102] sm:$0xff] }
  0xbd   :  { %v907_v48 = vsel %vm905_vm2, %v890_v45, %v742_v47  ;;  %439 = vrot.lane.b32.xlu1 %v5512_v35, %s5080_s28 }
  0xbe   :  { %377 = vrot.lane.b32.xlu0 %v173_v43, %s5078_s26  ;;  %4222 = vmatmul.mubr.msk.f32.vlgmr.msra.gmra.mrb[0].mxu0 %vm934_vm10, %v907_v48 }
  0xbf   :  { %v554_v49 = vpop.permute.xlu1 %553 }
  0xc0   :  { %v552_v50 = vpop.permute.xlu0 %551  ;;  %v858_v9 = vsel %vm854_vm7, %v841_v8, %v554_v49  ;;  %v193_v8 = vld [vmem:[#allocation2 + $0x120] sm:$0xff] }
  0xc1   :  { %755 = vrot.lane.b32.xlu1 %v219_v19, %s5085_s14  ;;  %v857_v15 = vsel %vm854_vm7, %v840_v60, %v552_v50  ;;  %v256_v60 = vld [vmem:[#allocation2 + $0x111] sm:$0xff] }
  0xc2   :  { %693 = vrot.lane.b32.xlu0 %v157_v26, %s5084_s18 }
  0xc3   :  { %v618_v52 = vpop.permute.xlu1 %617 }
  0xc4   :  { %v616_v53 = vpop.permute.xlu0 %615  ;;  %v875_v10 = vsel %vm871_vm8, %v858_v9, %v618_v52 }
  0xc5   :  { %503 = vrot.lane.b32.xlu1 %v157_v26, %s5081_s0  ;;  %v874_v63 = vsel %vm871_vm8, %v857_v15, %v616_v53 }
  0xc6   :  { %441 = vrot.lane.b32.xlu0 %v5529_v51, %s5080_s28 }
  0xc7   :  { %v682_v58 = vpop.permute.xlu1 %681 }
  0xc8   :  { %v680_v59 = vpop.permute.xlu0 %679  ;;  %v892_v12 = vsel %vm888_vm9, %v875_v10, %v682_v58 }
  0xc9   :  { %505 = vrot.lane.b32.xlu1 %v205_v56, %s5081_s0  ;;  %v891_v3 = vsel %vm888_vm9, %v874_v63, %v680_v59 }
  0xca   :  { %757 = vrot.lane.b32.xlu0 %v173_v43, %s5085_s14 }
  0xcb   :  { %v300_v4 = vpop.permute.xlu1 %299 }
  0xcc   :  { %v744_v7 = vpop.permute.xlu0 %743  ;;  %v791_v33 = vsel %vm55_vm0, %v5394_v32, %v300_v4 }
  0xcd   :  { %v908_v27 = vsel %vm905_vm2, %v891_v3, %v744_v7  ;;  %569 = vrot.lane.b32.xlu1 %v221_v0, %s5082_s19 }
  0xce   :  { %567 = vrot.lane.b32.xlu0 %v173_v43, %s5082_s19  ;;  %4224 = vmatprep.mubr.msk.f32.mxu0 %vm934_vm10, %v908_v27 }
  0xcf   :  { %v302_v13 = vpop.permute.xlu1 %301 }
  0xd0   :  { %v746_v14 = vpop.permute.xlu0 %745  ;;  %v792_v42 = vsel %vm55_vm0, %v5407_v36, %v302_v13 }
  0xd1   :  { %v909_v17 = vsel %vm905_vm2, %v892_v12, %v746_v14  ;;  %633 = vrot.lane.b32.xlu1 %v5558_v11, %s5083_s24 }
  0xd2   :  { %631 = vrot.lane.b32.xlu0 %v5529_v51, %s5083_s24  ;;  %4225 = vmatmul.mubr.msk.f32.gmra.mrb[2].mxu0 %vm934_vm10, %v909_v17  ;;  %v209_v17 = vld [vmem:[#allocation2 + $0x121] sm:$0xff] }
  0xd3   :  { %v366_v19 = vpop.permute.xlu1 %365 }
  0xd4   :  { %v364_v20 = vpop.permute.xlu0 %363  ;;  %v809_v43 = vsel %vm803_vm4, %v792_v42, %v366_v19 }
  0xd5   :  { %697 = vrot.lane.b32.xlu1 %v254_v18, %s5084_s18  ;;  %v808_v34 = vsel %vm803_vm4, %v791_v33, %v364_v20 }
  0xd6   :  { %695 = vrot.lane.b32.xlu0 %v205_v56, %s5084_s18 }
  0xd7   :  { %v430_v21 = vpop.permute.xlu1 %429 }
  0xd8   :  { %v428_v22 = vpop.permute.xlu0 %427  ;;  %v826_v47 = vsel %vm820_vm5, %v809_v43, %v430_v21  ;;  %v274_v43 = vld [vmem:[#allocation2 + $0x132] sm:$0xff] }
  0xd9   :  { %315 = vrot.lane.b32.xlu1 %v205_v56, %s5079_s27  ;;  %v825_v37 = vsel %vm820_vm5, %v808_v34, %v428_v22 }
  0xda   :  { %759 = vrot.lane.b32.xlu0 %v221_v0, %s5085_s14 }
  0xdb   :  { %v494_v24 = vpop.permute.xlu1 %493 }
  0xdc   :  { %v492_v25 = vpop.permute.xlu0 %491  ;;  %v843_v52 = vsel %vm837_vm6, %v826_v47, %v494_v24 }
  0xdd   :  { %317 = vrot.lane.b32.xlu1 %v254_v18, %s5079_s27  ;;  %v842_v41 = vsel %vm837_vm6, %v825_v37, %v492_v25  ;;  %v242_v37 = vld [vmem:[#allocation2 + $0x130] sm:$0xff] }
  0xde   :  { %761 = vrot.lane.b32.xlu0 %v270_v23, %s5085_s14 }
  0xdf   :  { %v558_v26 = vpop.permute.xlu1 %557 }
  0xe0   :  { %v556_v28 = vpop.permute.xlu0 %555  ;;  %v860_v53 = vsel %vm854_vm7, %v843_v52, %v558_v26  ;;  %v225_v26 = vld [vmem:[#allocation2 + $0x122] sm:$0xff] }
  0xe1   :  { %381 = vrot.lane.b32.xlu1 %v270_v23, %s5078_s26  ;;  %v859_v32 = vsel %vm854_vm7, %v842_v41, %v556_v28  ;;  %v258_v41 = vld [vmem:[#allocation2 + $0x131] sm:$0xff] }
  0xe2   :  { %379 = vrot.lane.b32.xlu0 %v221_v0, %s5078_s26  ;;  %v272_v0 = vld [vmem:[#allocation2 + $0x112] sm:$0xff] }
  0xe3   :  { %v622_v30 = vpop.permute.xlu1 %621 }
  0xe4   :  { %v620_v31 = vpop.permute.xlu0 %619  ;;  %v877_v54 = vsel %vm871_vm8, %v860_v53, %v622_v30 }
  0xe5   :  { %445 = vrot.lane.b32.xlu1 %v5575_v29, %s5080_s28  ;;  %v876_v45 = vsel %vm871_vm8, %v859_v32, %v620_v31 }
  0xe6   :  { %443 = vrot.lane.b32.xlu0 %v5558_v11, %s5080_s28 }
  0xe7   :  { %v686_v38 = vpop.permute.xlu1 %685 }
  0xe8   :  { %v684_v39 = vpop.permute.xlu0 %683  ;;  %v894_v56 = vsel %vm888_vm9, %v877_v54, %v686_v38 }
  0xe9   :  { %509 = vrot.lane.b32.xlu1 %v207_v16, %s5081_s0  ;;  %v893_v48 = vsel %vm888_vm9, %v876_v45, %v684_v39 }
  0xea   :  { %507 = vrot.lane.b32.xlu0 %v254_v18, %s5081_s0 }
  0xeb   :  { %v304_v49 = vpop.permute.xlu1 %303 }
  0xec   :  { %v748_v50 = vpop.permute.xlu0 %747  ;;  %v793_v10 = vsel %vm55_vm0, %v5425_v40, %v304_v49 }
  0xed   :  { %v910_v36 = vsel %vm905_vm2, %v893_v48, %v748_v50  ;;  %573 = vrot.lane.b32.xlu1 %v223_v46, %s5082_s19 }
  0xee   :  { %571 = vrot.lane.b32.xlu0 %v270_v23, %s5082_s19  ;;  %4227 = vmatprep.mubr.msk.f32.mxu0 %vm934_vm10, %v910_v36 }
  0xef   :  { %v306_v57 = vpop.permute.xlu1 %305 }
  0xf0   :  { %v750_v58 = vpop.permute.xlu0 %749  ;;  %v794_v12 = vsel %vm55_vm0, %v5439_v44, %v306_v57  ;;  %v1866_v57 = vld [vmem:[%s7273_s3 + $0x108] sm:$0xff] }
  0xf1   :  { %v911_v59 = vsel %vm905_vm2, %v894_v56, %v750_v58  ;;  %637 = vrot.lane.b32.xlu1 %v5602_v55, %s5083_s24  ;;  %v1865_v56 = vld [vmem:[%s7273_s3 + $0x100] sm:$0xff] }
  0xf2   :  { %635 = vrot.lane.b32.xlu0 %v5575_v29, %s5083_s24  ;;  %4228 = vmatmul.mubr.msk.f32.gmra.mrb[4].mxu0 %vm934_vm10, %v911_v59  ;;  %v4446_v58 = vpack.c.bf16 %v1866_v57, %v1865_v56  ;;  %v138_v59 = vld [vmem:[#allocation2 + $0xa0] sm:$0xff] }
  0xf3   :  { %v370_v61 = vpop.permute.xlu1 %369 }
  0xf4   :  { %v368_v15 = vpop.permute.xlu0 %367  ;;  %v811_v13 = vsel %vm803_vm4, %v794_v12, %v370_v61  ;;  %4447 = vmatprep.subr.bf16.mxu0 %v4446_v58 }
  0xf5   :  { %701 = vrot.lane.b32.xlu1 %v256_v60, %s5084_s18  ;;  %v810_v14 = vsel %vm803_vm4, %v793_v10, %v368_v15  ;;  %v1867_v15 = vld [vmem:[%s7273_s3 + $0x110] sm:$0xff]  ;;  %4449 = vmatpush3.bf16.msra.mxu0 %v4446_v58 }
  0xf6   :  { %699 = vrot.lane.b32.xlu0 %v207_v16, %s5084_s18 }
  0xf7   :  { %v434_v62 = vpop.permute.xlu1 %433 }
  0xf8   :  { %v432_v63 = vpop.permute.xlu0 %431  ;;  %v828_v18 = vsel %vm820_vm5, %v811_v13, %v434_v62  ;;  %v1868_v62 = vld [vmem:[%s7273_s3 + $0x118] sm:$0xff] }
  0xf9   :  { %319 = vrot.lane.b32.xlu1 %v207_v16, %s5079_s27  ;;  %v827_v19 = vsel %vm820_vm5, %v810_v14, %v432_v63  ;;  %v4450_v63 = vpack.c.bf16 %v1868_v62, %v1867_v15 }
  0xfa   :  { %763 = vrot.lane.b32.xlu0 %v223_v46, %s5085_s14 }
  0xfb   :  { %v498_v1 = vpop.permute.xlu1 %497  ;;  %4451 = vmatprep.subr.bf16.mxu0 %v4450_v63 }
  0xfc   :  { %v496_v3 = vpop.permute.xlu0 %495  ;;  %v845_v40 = vsel %vm837_vm6, %v828_v18, %v498_v1  ;;  %4453 = vmatpush3.bf16.msra.mxu0 %v4450_v63 }
  0xfd   :  { %321 = vrot.lane.b32.xlu1 %v256_v60, %s5079_s27  ;;  %v844_v44 = vsel %vm837_vm6, %v827_v19, %v496_v3 }
  0xfe   :  { %765 = vrot.lane.b32.xlu0 %v272_v0, %s5085_s14 }
  0xff   :  { %v562_v4 = vpop.permute.xlu1 %561 }
 0x100   :  { %v560_v7 = vpop.permute.xlu0 %559  ;;  %v862_v22 = vsel %vm854_vm7, %v845_v40, %v562_v4 }
 0x101   :  { %385 = vrot.lane.b32.xlu1 %v272_v0, %s5078_s26  ;;  %v861_v23 = vsel %vm854_vm7, %v844_v44, %v560_v7 }
 0x102   :  { %383 = vrot.lane.b32.xlu0 %v223_v46, %s5078_s26 }
 0x103   :  { %v626_v27 = vpop.permute.xlu1 %625 }
 0x104   :  { %v624_v9 = vpop.permute.xlu0 %623  ;;  %v879_v24 = vsel %vm871_vm8, %v862_v22, %v626_v27 }
 0x105   :  { %449 = vrot.lane.b32.xlu1 %v193_v8, %s5080_s28  ;;  %v878_v25 = vsel %vm871_vm8, %v861_v23, %v624_v9 }
 0x106   :  { %447 = vrot.lane.b32.xlu0 %v5602_v55, %s5080_s28 }
 0x107   :  { %v690_v20 = vpop.permute.xlu1 %689 }
 0x108   :  { %v688_v21 = vpop.permute.xlu0 %687  ;;  %v896_v28 = vsel %vm888_vm9, %v879_v24, %v690_v20 }
 0x109   :  { %513 = vrot.lane.b32.xlu1 %v209_v17, %s5081_s0  ;;  %v895_v30 = vsel %vm888_vm9, %v878_v25, %v688_v21 }
 0x10a   :  { %511 = vrot.lane.b32.xlu0 %v256_v60, %s5081_s0 }
 0x10b   :  { %v754_v31 = vpop.permute.xlu1 %753 }
 0x10c   :  { %v752_v33 = vpop.permute.xlu0 %751  ;;  %v913_v34 = vsel %vm905_vm2, %v896_v28, %v754_v31 }
 0x10d   :  { %v912_v16 = vsel %vm905_vm2, %v895_v30, %v752_v33  ;;  %577 = vrot.lane.b32.xlu1 %v225_v26, %s5082_s19 }
 0x10e   :  { %575 = vrot.lane.b32.xlu0 %v272_v0, %s5082_s19  ;;  %4230 = vmatprep.mubr.msk.f32.mxu0 %vm934_vm10, %v912_v16 }
 0x10f   :  { %4231 = vmatmul.mubr.msk.f32.gmra.mrb[6].mxu0 %vm934_vm10, %v913_v34  ;;  %v5646_v38 = vpop.permute.xlu1 %309 }
 0x110   :  { %v308_v39 = vpop.permute.xlu0 %307 }
 0x111   :  { %641 = vrot.lane.b32.xlu1 %v242_v37, %s5083_s24  ;;  %v795_v0 = vsel %vm55_vm0, %v138_v59, %v308_v39 }
 0x112   :  { %639 = vrot.lane.b32.xlu0 %v193_v8, %s5083_s24 }
 0x113   :  { %v5650_v42 = vpop.permute.xlu1 %373 }
 0x114   :  { %v372_v32 = vpop.permute.xlu0 %371 }
 0x115   :  { %705 = vrot.lane.b32.xlu1 %v258_v41, %s5084_s18  ;;  %v812_v1 = vsel %vm803_vm4, %v795_v0, %v372_v32 }
 0x116   :  { %703 = vrot.lane.b32.xlu0 %v209_v17, %s5084_s18  ;;  %v796_v17 = vsel %vm55_vm0, %v5480_v6, %v5646_v38 }
 0x117   :  { %v438_v45 = vpop.permute.xlu1 %437  ;;  %v813_v18 = vsel %vm803_vm4, %v796_v17, %v5650_v42 }
 0x118   :  { %v436_v46 = vpop.permute.xlu0 %435  ;;  %v830_v19 = vsel %vm820_vm5, %v813_v18, %v438_v45 }
 0x119   :  { %769 = vrot.lane.b32.xlu1 %v274_v43, %s5085_s14  ;;  %v829_v3 = vsel %vm820_vm5, %v812_v1, %v436_v46 }
 0x11a   :  { %767 = vrot.lane.b32.xlu0 %v225_v26, %s5085_s14 }
 0x11b   :  { %v502_v47 = vpop.permute.xlu1 %501 }
 0x11c   :  { %v500_v48 = vpop.permute.xlu0 %499  ;;  %v847_v40 = vsel %vm837_vm6, %v830_v19, %v502_v47 }
 0x11d   :  { %v846_v8 = vsel %vm837_vm6, %v829_v3, %v500_v48 }
 0x11f   :  { %v312_v49 = vpop.permute.xlu1 %311 }
 0x120   :  { %v564_v50 = vpop.permute.xlu0 %563  ;;  %v797_v33 = vsel %vm55_vm0, %v5478_v5, %v312_v49 }
 0x121   :  { %v863_v27 = vsel %vm854_vm7, %v846_v8, %v564_v50 }
 0x123   :  { %v628_v52 = vpop.permute.xlu1 %627 }
 0x124   :  { %v566_v36 = vpop.permute.xlu0 %565  ;;  %v880_v9 = vsel %vm871_vm8, %v863_v27, %v628_v52 }
 0x125   :  { %v864_v44 = vsel %vm854_vm7, %v847_v40, %v566_v36 }
 0x127   :  { %v376_v53 = vpop.permute.xlu1 %375 }
 0x128   :  { %v314_v54 = vpop.permute.xlu0 %313  ;;  %v814_v34 = vsel %vm803_vm4, %v797_v33, %v376_v53 }
 0x129   :  { %v798_v41 = vsel %vm55_vm0, %v5512_v35, %v314_v54 }
 0x12b   :  { %v692_v60 = vpop.permute.xlu1 %691 }
 0x12c   :  { %v630_v61 = vpop.permute.xlu0 %629  ;;  %v897_v10 = vsel %vm888_vm9, %v880_v9, %v692_v60 }
 0x12d   :  { %v881_v22 = vsel %vm871_vm8, %v864_v44, %v630_v61 }
 0x12f   :  { %v440_v4 = vpop.permute.xlu1 %439 }
 0x130   :  { %v378_v7 = vpop.permute.xlu0 %377  ;;  %v831_v16 = vsel %vm820_vm5, %v814_v34, %v440_v4 }
 0x131   :  { %v815_v32 = vsel %vm803_vm4, %v798_v41, %v378_v7  ;;  %v1852_v41 = vld [vmem:[%s7273_s3 + $0x98] sm:$0xff] }
 0x133   :  { %v756_v12 = vpop.permute.xlu1 %755 }
 0x134   :  { %v694_v13 = vpop.permute.xlu0 %693  ;;  %v914_v14 = vsel %vm905_vm2, %v897_v10, %v756_v12 }
 0x135   :  { %4233 = vmatprep.mubr.msk.f32.mxu0 %vm934_vm10, %v914_v14  ;;  %v898_v23 = vsel %vm888_vm9, %v881_v22, %v694_v13 }
 0x137   :  { %v504_v20 = vpop.permute.xlu1 %503 }
 0x138   :  { %v442_v21 = vpop.permute.xlu0 %441  ;;  %v848_v39 = vsel %vm837_vm6, %v831_v16, %v504_v20 }
 0x139   :  { %v832_v45 = vsel %vm820_vm5, %v815_v32, %v442_v21 }
 0x13b   :  { %v506_v24 = vpop.permute.xlu1 %505 }
 0x13c   :  { %v758_v25 = vpop.permute.xlu0 %757  ;;  %v849_v48 = vsel %vm837_vm6, %v832_v45, %v506_v24 }
 0x13d   :  { %v915_v6 = vsel %vm905_vm2, %v898_v23, %v758_v25 }
 0x13e   :  { %4234 = vmatmul.mubr.msk.f32.gmra.mrb[8].mxu0 %vm934_vm10, %v915_v6 }
 0x13f   :  { %v570_v26 = vpop.permute.xlu1 %569 }
 0x140   :  { %v568_v28 = vpop.permute.xlu0 %567  ;;  %v866_v50 = vsel %vm854_vm7, %v849_v48, %v570_v26 }
 0x141   :  { %v865_v42 = vsel %vm854_vm7, %v848_v39, %v568_v28  ;;  %v1849_v28 = vld [vmem:[%s7273_s3 + $0x80] sm:$0xff]  ;;  %v1851_v39 = vld [vmem:[%s7273_s3 + $0x90] sm:$0xff] }
 0x142   :  { %v4418_v45 = vpack.c.bf16 %v1852_v41, %v1851_v39  ;;  %v1846_v39 = vld [vmem:[%s7273_s3 + $0x68] sm:$0xff] }
 0x143   :  { %v634_v30 = vpop.permute.xlu1 %633 }
 0x144   :  { %v632_v31 = vpop.permute.xlu0 %631  ;;  %v883_v35 = vsel %vm871_vm8, %v866_v50, %v634_v30  ;;  %v1850_v30 = vld [vmem:[%s7273_s3 + $0x88] sm:$0xff]  ;;  %v1837_v50 = vld [vmem:[%s7273_s3 + $0x20] sm:$0xff] }
 0x145   :  { %v882_v43 = vsel %vm871_vm8, %v865_v42, %v632_v31  ;;  %v1833_v31 = vld [vmem:[%s7273_s3] sm:$0xff]  ;;  %v4414_v16 = vpack.c.bf16 %v1850_v30, %v1849_v28  ;;  %v1835_v42 = vld [vmem:[%s7273_s3 + $0x10] sm:$0xff] }
 0x147   :  { %v698_v37 = vpop.permute.xlu1 %697  ;;  %4415 = vmatprep.subr.bf16.mxu1 %v4414_v16 }
 0x148   :  { %v696_v38 = vpop.permute.xlu0 %695  ;;  %v900_v52 = vsel %vm888_vm9, %v883_v35, %v698_v37  ;;  %v1834_v37 = vld [vmem:[%s7273_s3 + $0x8] sm:$0xff] }
 0x149   :  { %v899_v5 = vsel %vm888_vm9, %v882_v43, %v696_v38  ;;  %v4416_v38 = vpack.c.bf16 %v1834_v37, %v1833_v31  ;;  %v1838_v35 = vld [vmem:[%s7273_s3 + $0x28] sm:$0xff] }
 0x14b   :  { %v316_v46 = vpop.permute.xlu1 %315  ;;  %4417 = vmatpush3.bf16.msra.mxu1 %v4416_v38  ;;  %v1845_v38 = vld [vmem:[%s7273_s3 + $0x60] sm:$0xff] }
 0x14c   :  { %v760_v47 = vpop.permute.xlu0 %759  ;;  %v799_v1 = vsel %vm55_vm0, %v5529_v51, %v316_v46  ;;  %v1853_v46 = vld [vmem:[%s7273_s3 + $0xa0] sm:$0xff]  ;;  %4419 = vmatprep.subr.bf16.mxu1 %v4418_v45  ;;  %v1864_v45 = vld [vmem:[%s7273_s3 + $0xf8] sm:$0xff] }
 0x14d   :  { %v916_v49 = vsel %vm905_vm2, %v899_v5, %v760_v47  ;;  %v1836_v5 = vld [vmem:[%s7273_s3 + $0x18] sm:$0xff]  ;;  %v1854_v47 = vld [vmem:[%s7273_s3 + $0xa8] sm:$0xff] }
 0x14e   :  { %4236 = vmatprep.mubr.msk.f32.mxu0 %vm934_vm10, %v916_v49  ;;  %v4420_v48 = vpack.c.bf16 %v1836_v5, %v1835_v42  ;;  %v4422_v49 = vpack.c.bf16 %v1854_v47, %v1853_v46  ;;  %v4440_v42 = vpack.c.bf16 %v1846_v39, %v1845_v38  ;;  %v1847_v46 = vld [vmem:[%s7273_s3 + $0x70] sm:$0xff]  ;;  %v1848_v47 = vld [vmem:[%s7273_s3 + $0x78] sm:$0xff] }
 0x14f   :  { %v318_v36 = vpop.permute.xlu1 %317 }
 0x150   :  { %v762_v53 = vpop.permute.xlu0 %761  ;;  %v800_v9 = vsel %vm55_vm0, %v5558_v11, %v318_v36  ;;  %v1856_v36 = vld [vmem:[%s7273_s3 + $0xb8] sm:$0xff]  ;;  %4421 = vmatpush3.bf16.msra.mxu1 %v4420_v48  ;;  %v4444_v48 = vpack.c.bf16 %v1848_v47, %v1847_v46 }
 0x151   :  { %v917_v54 = vsel %vm905_vm2, %v900_v52, %v762_v53  ;;  %v1855_v52 = vld [vmem:[%s7273_s3 + $0xb0] sm:$0xff]  ;;  %v4424_v53 = vpack.c.bf16 %v1838_v35, %v1837_v50  ;;  %4423 = vmatprep.subr.bf16.mxu1 %v4422_v49  ;;  %v1238_v49 = vld [vmem:[#allocation3 + $0x2] sm:$0xff] }
 0x152   :  { %4237 = vmatmul.mubr.msk.f32.gmra.mrb[10].mxu0 %vm934_vm10, %v917_v54  ;;  %v1222_v50 = vld [vmem:[#allocation3 + $0x1] sm:$0xff]  ;;  %v1326_v47 = vld [vmem:[#allocation3 + $0x91] sm:$0xff] }
 0x153   :  { %v382_v56 = vpop.permute.xlu1 %381 }
 0x154   :  { %v380_v57 = vpop.permute.xlu0 %379  ;;  %v817_v12 = vsel %vm803_vm4, %v800_v9, %v382_v56  ;;  %4425 = vmatpush3.bf16.msra.mxu1 %v4424_v53 }
 0x155   :  { %v816_v3 = vsel %vm803_vm4, %v799_v1, %v380_v57  ;;  %v4426_v57 = vpack.c.bf16 %v1856_v36, %v1855_v52 }
 0x157   :  { %v446_v58 = vpop.permute.xlu1 %445  ;;  %4427 = vmatprep.subr.bf16.mxu1 %v4426_v57 }
 0x158   :  { %v444_v59 = vpop.permute.xlu0 %443  ;;  %v834_v14 = vsel %vm820_vm5, %v817_v12, %v446_v58  ;;  %v1839_v58 = vld [vmem:[%s7273_s3 + $0x30] sm:$0xff] }
 0x159   :  { %v833_v4 = vsel %vm820_vm5, %v816_v3, %v444_v59  ;;  %v1840_v59 = vld [vmem:[%s7273_s3 + $0x38] sm:$0xff]  ;;  %v1859_v12 = vld [vmem:[%s7273_s3 + $0xd0] sm:$0xff] }
 0x15a   :  { %v4428_v1 = vpack.c.bf16 %v1840_v59, %v1839_v58 }
 0x15b   :  { %v510_v60 = vpop.permute.xlu1 %509 }
 0x15c   :  { %v508_v61 = vpop.permute.xlu0 %507  ;;  %v851_v19 = vsel %vm837_vm6, %v834_v14, %v510_v60  ;;  %v1857_v60 = vld [vmem:[%s7273_s3 + $0xc0] sm:$0xff]  ;;  %4429 = vmatpush3.bf16.msra.mxu1 %v4428_v1 }
 0x15d   :  { %v850_v27 = vsel %vm837_vm6, %v833_v4, %v508_v61  ;;  %v1858_v61 = vld [vmem:[%s7273_s3 + $0xc8] sm:$0xff] }
 0x15f   :  { %v574_v15 = vpop.permute.xlu1 %573 }
 0x160   :  { %v572_v62 = vpop.permute.xlu0 %571  ;;  %v868_v21 = vsel %vm854_vm7, %v851_v19, %v574_v15 }
 0x161   :  { %v867_v10 = vsel %vm854_vm7, %v850_v27, %v572_v62  ;;  %v4430_v27 = vpack.c.bf16 %v1858_v61, %v1857_v60 }
 0x163   :  { %v638_v63 = vpop.permute.xlu1 %637  ;;  %4431 = vmatprep.subr.bf16.mxu1 %v4430_v27 }
 0x164   :  { %v636_v0 = vpop.permute.xlu0 %635  ;;  %v885_v11 = vsel %vm871_vm8, %v868_v21, %v638_v63 }
 0x165   :  { %v884_v13 = vsel %vm871_vm8, %v867_v10, %v636_v0 }
 0x167   :  { %v702_v7 = vpop.permute.xlu1 %701 }
 0x168   :  { %v700_v8 = vpop.permute.xlu0 %699  ;;  %v902_v40 = vsel %vm888_vm9, %v885_v11, %v702_v7 }
 0x169   :  { %v901_v51 = vsel %vm888_vm9, %v884_v13, %v700_v8  ;;  %v1860_v13 = vld [vmem:[%s7273_s3 + $0xd8] sm:$0xff] }
 0x16b   :  { %v320_v17 = vpop.permute.xlu1 %319 }
 0x16c   :  { %v764_v18 = vpop.permute.xlu0 %763  ;;  %v801_v15 = vsel %vm55_vm0, %v5575_v29, %v320_v17  ;;  %v1841_v29 = vld [vmem:[%s7273_s3 + $0x40] sm:$0xff] }
 0x16d   :  { %v918_v20 = vsel %vm905_vm2, %v901_v51, %v764_v18 }
 0x16e   :  { %4239 = vmatprep.mubr.msk.f32.mxu0 %vm934_vm10, %v918_v20 }
 0x16f   :  { %v322_v44 = vpop.permute.xlu1 %321 }
 0x170   :  { %v766_v22 = vpop.permute.xlu0 %765  ;;  %v802_v62 = vsel %vm55_vm0, %v5602_v55, %v322_v44  ;;  %v1842_v55 = vld [vmem:[%s7273_s3 + $0x48] sm:$0xff]  ;;  %v4434_v44 = vpack.c.bf16 %v1860_v13, %v1859_v12  ;;  %vm3438_vm0 = vcmask 1040384  }
 0x171   :  { %v919_v23 = vsel %vm905_vm2, %v902_v40, %v766_v22  ;;  %v4432_v19 = vpack.c.bf16 %v1842_v55, %v1841_v29 }
 0x172   :  { %4240 = vmatmul.mubr.msk.f32.gmra.mrb[12].mxu0 %vm934_vm10, %v919_v23 }
 0x173   :  { %v386_v24 = vpop.permute.xlu1 %385  ;;  %4433 = vmatpush3.bf16.msra.mxu1 %v4432_v19 }
 0x174   :  { %v384_v25 = vpop.permute.xlu0 %383  ;;  %v819_v63 = vsel %vm803_vm4, %v802_v62, %v386_v24  ;;  %v5858_v24 = vld [vmem:[%s7272_s2] ss:$0 sm:$0xff]  ;;  %4435 = vmatprep.subr.bf16.mxu1 %v4434_v44 }
 0x175   :  { %v818_v0 = vsel %vm803_vm4, %v801_v15, %v384_v25  ;;  %v1843_v25 = vld [vmem:[%s7273_s3 + $0x50] sm:$0xff] }
 0x177   :  { %v450_v6 = vpop.permute.xlu1 %449 }
 0x178   :  { %v448_v26 = vpop.permute.xlu0 %447  ;;  %v836_v3 = vsel %vm820_vm5, %v819_v63, %v450_v6  ;;  %v1844_v6 = vld [vmem:[%s7273_s3 + $0x58] sm:$0xff] }
 0x179   :  { %v835_v4 = vsel %vm820_vm5, %v818_v0, %v448_v26  ;;  %v4436_v26 = vpack.c.bf16 %v1844_v6, %v1843_v25 }
 0x17b   :  { %v514_v33 = vpop.permute.xlu1 %513  ;;  %4437 = vmatpush3.bf16.msra.mxu1 %v4436_v26 }
 0x17c   :  { %v512_v34 = vpop.permute.xlu0 %511  ;;  %v853_v9 = vsel %vm837_vm6, %v836_v3, %v514_v33  ;;  %v1861_v33 = vld [vmem:[%s7273_s3 + $0xe0] sm:$0xff] }
 0x17d   :  { %v852_v10 = vsel %vm837_vm6, %v835_v4, %v512_v34  ;;  %v1862_v34 = vld [vmem:[%s7273_s3 + $0xe8] sm:$0xff] }
 0x17e   :  { %v4438_v37 = vpack.c.bf16 %v1862_v34, %v1861_v33 }
 0x17f   :  { %v578_v32 = vpop.permute.xlu1 %577 }
 0x180   :  { %v576_v43 = vpop.permute.xlu0 %575  ;;  %v870_v14 = vsel %vm854_vm7, %v853_v9, %v578_v32  ;;  %4439 = vmatprep.subr.bf16.mxu1 %v4438_v37 }
 0x181   :  { %v869_v51 = vsel %vm854_vm7, %v852_v10, %v576_v43  ;;  %4441 = vmatpush3.bf16.msra.mxu1 %v4440_v42  ;;  %v1863_v43 = vld [vmem:[%s7273_s3 + $0xf0] sm:$0xff]  ;;  %s5086_s3 = smov 64  }
 0x182   :  { %v4442_v5 = vpack.c.bf16 %v1864_v45, %v1863_v43 }
 0x183   :  { %v642_v54 = vpop.permute.xlu1 %641 }
 0x184   :  { %v640_v56 = vpop.permute.xlu0 %639  ;;  %v887_v17 = vsel %vm871_vm8, %v870_v14, %v642_v54  ;;  %4443 = vmatprep.subr.bf16.mxu1 %v4442_v5 }
 0x185   :  { %v886_v18 = vsel %vm871_vm8, %v869_v51, %v640_v56  ;;  %4445 = vmatpush3.bf16.msra.mxu1 %v4444_v48  ;;  %v1342_v48 = vld [vmem:[#allocation3 + $0x92] sm:$0xff] }
 0x187   :  { %v706_v7 = vpop.permute.xlu1 %705 }
 0x188   :  { %v704_v8 = vpop.permute.xlu0 %703  ;;  %v904_v20 = vsel %vm888_vm9, %v887_v17, %v706_v7 }
 0x189   :  { %v903_v21 = vsel %vm888_vm9, %v886_v18, %v704_v8 }
 0x18b   :  { %v770_v11 = vpop.permute.xlu1 %769 }
 0x18c   :  { %v768_v40 = vpop.permute.xlu0 %767  ;;  %v921_v22 = vsel %vm905_vm2, %v904_v20, %v770_v11 }
 0x18d   :  { %v920_v23 = vsel %vm905_vm2, %v903_v21, %v768_v40 }
 0x18e   :  { %4242 = vmatprep.mubr.msk.f32.mxu0 %vm934_vm10, %v920_v23 }
 0x18f   :  { %4243 = vmatmul.mubr.msk.f32.gmra.mrb[14].mxu0 %vm934_vm10, %v921_v22 }
 0x191   :  { %v4223_v28 = vpop.f32.mrb[0].mxu0 }
 0x192   :  { %v1059_v30 = vadd.f32 %v4223_v28, %v5858_v24  ;;  %v1053_v31 = vpop.f32.mrb[1].mxu0 }
 0x193   :  { %v1054_v16 = vadd.f32 %v5858_v24, %v1053_v31 }
 0x194   :  { %v1133_v41 = vmax.f32 %v1059_v30, 0.0 }
 0x195   :  { %v1132_v32 = vmax.f32 %v1054_v16, 0.0 }
 0x196   :  { %1191 = vst.msk [vmem:[#allocation3 + $0x21] sm:$0xff] %vm905_vm2, %v1133_v41 }
 0x197   :  { %1190 = vst.msk [vmem:[#allocation3 + $0x11] sm:$0xff] %vm905_vm2, %v1132_v32 }
 0x19d   :  { %v1335_v35 = vld [vmem:[#allocation3 + $0x22] sm:$0xff] }
 0x19e   :  { %v5934_v52 = vld [vmem:[#allocation3 + $0x20] sm:$0xff]  ;;  %4253 = vmatprep.mubr.msk.f32.mxu0 %vm905_vm2, %v1335_v35  ;;  %v1286_v53 = vld [vmem:[#allocation3 + $0x12] sm:$0xff] }
 0x19f   :  { %v4641_v36 = vpack.i.bf16 %v1238_v49, %v5934_v52  ;;  %v4646_v54 = vpack.i.bf16 %v1222_v50, %v1286_v53  ;;  %v5938_v56 = vld [vmem:[#allocation3 + $0x11] sm:$0xff]  ;;  %v5943_v58 = vld [vmem:[#allocation3 + $0x21] sm:$0xff] }
 0x1a0   :  { %v5941_v57 = vld [vmem:[#allocation3 + $0x10] sm:$0xff]  ;;  %v4656_v59 = vpack.i.bf16 %v5938_v56, %v1335_v35 }
 0x1a1   :  { %4642 = vrot.lane.b32.xlu1 %v4641_v36, %s5086_s3  ;;  %4647 = vrot.lane.b32.xlu0 %v4646_v54, %s5085_s14  ;;  %v4651_v60 = vpack.i.bf16 %v5941_v57, %v5943_v58 }
 0x1a5   :  { %4657 = vrot.lane.b32.xlu1 %v4656_v59, %s5085_s14  ;;  %v4226_v61 = vpop.f32.mrb[2].mxu0  ;;  %4652 = vrot.lane.b32.xlu0 %v4651_v60, %s5087_s29  ;;  %v1310_v59 = vld [vmem:[#allocation3 + $0x90] sm:$0xff] }
 0x1a6   :  { %v1069_v15 = vadd.f32 %v4226_v61, %v5858_v24  ;;  %v1063_v62 = vpop.f32.mrb[3].mxu0 }
 0x1a7   :  { %v1064_v63 = vadd.f32 %v5858_v24, %v1063_v62 }
 0x1a8   :  { %v1135_v0 = vmax.f32 %v1069_v15, 0.0 }
 0x1a9   :  { %v1134_v1 = vmax.f32 %v1064_v63, 0.0 }
 0x1aa   :  { %1193 = vst.msk [vmem:[#allocation3 + $0x41] sm:$0xff] %vm905_vm2, %v1135_v0 }
 0x1ab   :  { %1192 = vst.msk [vmem:[#allocation3 + $0x31] sm:$0xff] %vm905_vm2, %v1134_v1 }
 0x1b1   :  { %v5955_v3 = vld [vmem:[#allocation3 + $0x40] sm:$0xff] }
 0x1b2   :  { %v1336_v4 = vld [vmem:[#allocation3 + $0x32] sm:$0xff]  ;;  %v4661_v7 = vpack.i.bf16 %v1335_v35, %v5955_v3  ;;  %v1337_v27 = vld [vmem:[#allocation3 + $0x42] sm:$0xff] }
 0x1b3   :  { %v5958_v8 = vld [vmem:[#allocation3 + $0x30] sm:$0xff]  ;;  %4254 = vmatmul.mubr.msk.f32.vlgmr.msra.gmra.mrb[16].mxu0 %vm905_vm2, %v1336_v4  ;;  %v4676_v10 = vpack.i.bf16 %v5943_v58, %v1336_v4  ;;  %v5971_v12 = vld [vmem:[#allocation3 + $0x41] sm:$0xff] }
 0x1b4   :  { %v4666_v29 = vpack.i.bf16 %v1286_v53, %v5958_v8  ;;  %v5962_v55 = vld [vmem:[#allocation3 + $0x31] sm:$0xff]  ;;  %4256 = vmatprep.mubr.msk.f32.mxu0 %vm905_vm2, %v1337_v27  ;;  %4662 = vrot.lane.b32.xlu1 %v4661_v7, %s5086_s3  ;;  %v4681_v14 = vpack.i.bf16 %v5958_v8, %v5971_v12  ;;  %v1206_v7 = vld [vmem:[#allocation3] sm:$0xff] }
 0x1b5   :  { %v4671_v9 = vpack.i.bf16 %v5934_v52, %v5962_v55  ;;  %v4686_v13 = vpack.i.bf16 %v5962_v55, %v1337_v27 }
 0x1b6   :  { %4667 = vrot.lane.b32.xlu0 %v4666_v29, %s5086_s3 }
 0x1b8   :  { %4672 = vrot.lane.b32.xlu1 %v4671_v9, %s5087_s29 }
 0x1ba   :  { %4677 = vrot.lane.b32.xlu0 %v4676_v10, %s5085_s14 }
 0x1bc   :  { %4687 = vrot.lane.b32.xlu1 %v4686_v13, %s5085_s14 }
 0x1be   :  { %4682 = vrot.lane.b32.xlu0 %v4681_v14, %s5087_s29 }
 0x1c5   :  { %v4229_v51 = vpop.f32.mrb[4].mxu0 }
 0x1c6   :  { %v1079_v17 = vadd.f32 %v4229_v51, %v5858_v24  ;;  %v1073_v18 = vpop.f32.mrb[5].mxu0 }
 0x1c7   :  { %v1074_v19 = vadd.f32 %v5858_v24, %v1073_v18 }
 0x1c8   :  { %v1137_v20 = vmax.f32 %v1079_v17, 0.0 }
 0x1c9   :  { %v1136_v21 = vmax.f32 %v1074_v19, 0.0 }
 0x1ca   :  { %1195 = vst.msk [vmem:[#allocation3 + $0x61] sm:$0xff] %vm905_vm2, %v1137_v20 }
 0x1cb   :  { %1194 = vst.msk [vmem:[#allocation3 + $0x51] sm:$0xff] %vm905_vm2, %v1136_v21 }
 0x1d1   :  { %v5983_v11 = vld [vmem:[#allocation3 + $0x60] sm:$0xff] }
 0x1d2   :  { %v1338_v40 = vld [vmem:[#allocation3 + $0x52] sm:$0xff]  ;;  %v4691_v44 = vpack.i.bf16 %v1337_v27, %v5983_v11  ;;  %v1339_v23 = vld [vmem:[#allocation3 + $0x62] sm:$0xff] }
 0x1d3   :  { %v5986_v22 = vld [vmem:[#allocation3 + $0x50] sm:$0xff]  ;;  %4257 = vmatmul.mubr.msk.f32.gmra.mrb[18].mxu0 %vm905_vm2, %v1338_v40  ;;  %v4706_v28 = vpack.i.bf16 %v5971_v12, %v1338_v40  ;;  %v5999_v30 = vld [vmem:[#allocation3 + $0x61] sm:$0xff] }
 0x1d4   :  { %v4696_v25 = vpack.i.bf16 %v1336_v4, %v5986_v22  ;;  %v5990_v6 = vld [vmem:[#allocation3 + $0x51] sm:$0xff]  ;;  %4259 = vmatprep.mubr.msk.f32.mxu0 %vm905_vm2, %v1339_v23  ;;  %4692 = vrot.lane.b32.xlu1 %v4691_v44, %s5086_s3  ;;  %v4711_v33 = vpack.i.bf16 %v5986_v22, %v5999_v30 }
 0x1d5   :  { %v4701_v26 = vpack.i.bf16 %v5955_v3, %v5990_v6  ;;  %v4716_v31 = vpack.i.bf16 %v5990_v6, %v1339_v23 }
 0x1d6   :  { %4697 = vrot.lane.b32.xlu0 %v4696_v25, %s5086_s3  ;;  %v1246_v25 = vld [vmem:[#allocation3 + $0xa2] sm:$0xff] }
 0x1d8   :  { %4702 = vrot.lane.b32.xlu1 %v4701_v26, %s5087_s29  ;;  %v1230_v26 = vld [vmem:[#allocation3 + $0xa1] sm:$0xff] }
 0x1da   :  { %4707 = vrot.lane.b32.xlu0 %v4706_v28, %s5085_s14 }
 0x1dc   :  { %4717 = vrot.lane.b32.xlu1 %v4716_v31, %s5085_s14 }
 0x1de   :  { %4712 = vrot.lane.b32.xlu0 %v4711_v33, %s5087_s29 }
 0x1e2   :  { %v4232_v34 = vpop.f32.mrb[6].mxu0 }
 0x1e3   :  { %v1089_v16 = vadd.f32 %v4232_v34, %v5858_v24  ;;  %v1083_v37 = vpop.f32.mrb[7].mxu0 }
 0x1e4   :  { %v1084_v38 = vadd.f32 %v5858_v24, %v1083_v37 }
 0x1e5   :  { %v1139_v39 = vmax.f32 %v1089_v16, 0.0 }
 0x1e6   :  { %v1138_v41 = vmax.f32 %v1084_v38, 0.0 }
 0x1e7   :  { %1197 = vst.msk [vmem:[#allocation3 + $0x81] sm:$0xff] %vm905_vm2, %v1139_v39 }
 0x1e8   :  { %1196 = vst.msk [vmem:[#allocation3 + $0x71] sm:$0xff] %vm905_vm2, %v1138_v41 }
 0x1ee   :  { %v1309_v42 = vld [vmem:[#allocation3 + $0x80] sm:$0xff] }
 0x1ef   :  { %v1340_v32 = vld [vmem:[#allocation3 + $0x72] sm:$0xff]  ;;  %v4721_v43 = vpack.i.bf16 %v1339_v23, %v1309_v42  ;;  %v1341_v5 = vld [vmem:[#allocation3 + $0x82] sm:$0xff]  ;;  %v4726_v49 = vpack.i.bf16 %v1309_v42, %v1326_v47 }
 0x1f0   :  { %v6011_v45 = vld [vmem:[#allocation3 + $0x70] sm:$0xff]  ;;  %4260 = vmatmul.mubr.msk.f32.gmra.mrb[20].mxu0 %vm905_vm2, %v1340_v32  ;;  %v4741_v50 = vpack.i.bf16 %v5999_v30, %v1340_v32  ;;  %v6023_v36 = vld [vmem:[#allocation3 + $0x81] sm:$0xff]  ;;  %v4756_v61 = vpack.i.bf16 %v1340_v32, %v1310_v59 }
 0x1f1   :  { %v4731_v46 = vpack.i.bf16 %v1338_v40, %v6011_v45  ;;  %4262 = vmatprep.mubr.msk.f32.mxu0 %vm905_vm2, %v1341_v5  ;;  %4722 = vrot.lane.b32.xlu1 %v4721_v43, %s5086_s3  ;;  %v6019_v35 = vld [vmem:[#allocation3 + $0x71] sm:$0xff]  ;;  %v4746_v54 = vpack.i.bf16 %v6011_v45, %v6023_v36 }
 0x1f2   :  { %v4736_v53 = vpack.i.bf16 %v5983_v11, %v6019_v35  ;;  %v4751_v60 = vpack.i.bf16 %v6019_v35, %v1341_v5 }
 0x1f3   :  { %4732 = vrot.lane.b32.xlu0 %v4731_v46, %s5086_s3 }
 0x1f4   :  { %4263 = vmatmul.mubr.msk.f32.gmra.mrb[22].mxu0 %vm905_vm2, %v1342_v48 }
 0x1f5   :  { %4727 = vrot.lane.b32.xlu1 %v4726_v49, %s5087_s29 }
 0x1f7   :  { %4742 = vrot.lane.b32.xlu0 %v4741_v50, %s5085_s14 }
 0x1f9   :  { %4737 = vrot.lane.b32.xlu1 %v4736_v53, %s5087_s29 }
 0x1fb   :  { %4747 = vrot.lane.b32.xlu0 %v4746_v54, %s5087_s29 }
 0x1fd   :  { %4752 = vrot.lane.b32.xlu1 %v4751_v60, %s5085_s14 }
 0x1ff   :  { %4757 = vrot.lane.b32.xlu0 %v4756_v61, %s5086_s3 }
 0x211   :  { %v4235_v15 = vpop.f32.mrb[8].mxu0 }
 0x212   :  { %v1099_v62 = vadd.f32 %v4235_v15, %v5858_v24  ;;  %v1093_v63 = vpop.f32.mrb[9].mxu0 }
 0x213   :  { %v1094_v0 = vadd.f32 %v5858_v24, %v1093_v63  ;;  %v4648_v4 = vpop.permute.xlu0 %4647  ;;  %v4643_v27 = vpop.permute.xlu1 %4642 }
 0x214   :  { %v1141_v1 = vmax.f32 %v1099_v62, 0.0  ;;  %v4650_v9 = vunpack.i.h.bf16 %v4648_v4  ;;  %v4649_v10 = vunpack.i.l.bf16 %v4648_v4  ;;  %v4645_v51 = vunpack.i.h.bf16 %v4643_v27 }
 0x215   :  { %v1140_v29 = vmax.f32 %v1094_v0, 0.0  ;;  %v4644_v17 = vunpack.i.l.bf16 %v4643_v27 }
 0x216   :  { %1199 = vst.msk [vmem:[#allocation3 + $0xc1] sm:$0xff] %vm905_vm2, %v1141_v1  ;;  %v1785_v13 = vsel %vm905_vm2, %v5938_v56, %v4649_v10  ;;  %v1735_v14 = vsel %vm905_vm2, %v1206_v7, %v4650_v9 }
 0x217   :  { %1198 = vst.msk [vmem:[#allocation3 + $0xb1] sm:$0xff] %vm905_vm2, %v1140_v29  ;;  %v4653_v18 = vpop.permute.xlu0 %4652  ;;  %v1801_v21 = vsel %vm1751_vm12, %v1785_v13, %v4644_v17  ;;  %v1752_v40 = vsel %vm1751_vm12, %v1735_v14, %v4645_v51  ;;  %v4658_v41 = vpop.permute.xlu1 %4657 }
 0x218   :  { %v4655_v19 = vunpack.i.h.bf16 %v4653_v18  ;;  %v4654_v20 = vunpack.i.l.bf16 %v4653_v18  ;;  %v4660_v48 = vunpack.i.h.bf16 %v4658_v41  ;;  %v4659_v49 = vunpack.i.l.bf16 %v4658_v41 }
 0x21a   :  { %v1817_v44 = vsel %vm1768_vm13, %v1801_v21, %v4654_v20  ;;  %v1769_v23 = vsel %vm1768_vm13, %v1752_v40, %v4655_v19  ;;  %v1786_v0 = vsel %vm905_vm2, %v5943_v58, %v4659_v49  ;;  %v1736_v1 = vsel %vm905_vm2, %v5941_v57, %v4660_v48 }
 0x21b   :  { %1988 = vmatprep.mubr.f32.mxu1 %v1817_v44 }
 0x21c   :  { %1989 = vmatmul.mubr.f32.vlgmr.msra.gmra.mrb[0].mxu1 %v1769_v23 }
 0x21d   :  { %v6046_v56 = vld [vmem:[#allocation3 + $0xc2] sm:$0xff] }
 0x21e   :  { %v6048_v28 = vld [vmem:[#allocation3 + $0xc0] sm:$0xff]  ;;  %4265 = vmatprep.mubr.msk.f32.mxu0 %vm905_vm2, %v6046_v56  ;;  %v6053_v33 = vld [vmem:[#allocation3 + $0xb2] sm:$0xff] }
 0x21f   :  { %v4761_v31 = vpack.i.bf16 %v1246_v25, %v6048_v28  ;;  %v4766_v34 = vpack.i.bf16 %v1230_v26, %v6053_v33  ;;  %v6056_v16 = vld [vmem:[#allocation3 + $0xb1] sm:$0xff]  ;;  %v6061_v38 = vld [vmem:[#allocation3 + $0xc1] sm:$0xff] }
 0x220   :  { %v6059_v37 = vld [vmem:[#allocation3 + $0xb0] sm:$0xff]  ;;  %v4776_v39 = vpack.i.bf16 %v6056_v16, %v6046_v56 }
 0x221   :  { %4762 = vrot.lane.b32.xlu1 %v4761_v31, %s5086_s3  ;;  %4767 = vrot.lane.b32.xlu0 %v4766_v34, %s5085_s14  ;;  %v4771_v42 = vpack.i.bf16 %v6059_v37, %v6061_v38 }
 0x225   :  { %4777 = vrot.lane.b32.xlu1 %v4776_v39, %s5085_s14  ;;  %v4238_v32 = vpop.f32.mrb[10].mxu0  ;;  %4772 = vrot.lane.b32.xlu0 %v4771_v42, %s5087_s29 }
 0x226   :  { %v1109_v43 = vadd.f32 %v4238_v32, %v5858_v24  ;;  %v1103_v5 = vpop.f32.mrb[11].mxu0  ;;  %v4663_v47 = vpop.permute.xlu1 %4662 }
 0x227   :  { %v1104_v46 = vadd.f32 %v5858_v24, %v1103_v5  ;;  %v4665_v14 = vunpack.i.h.bf16 %v4663_v47  ;;  %v4664_v51 = vunpack.i.l.bf16 %v4663_v47 }
 0x228   :  { %v1143_v50 = vmax.f32 %v1109_v43, 0.0  ;;  %v4668_v53 = vpop.permute.xlu0 %4667 }
 0x229   :  { %v1142_v54 = vmax.f32 %v1104_v46, 0.0  ;;  %v4670_v59 = vunpack.i.h.bf16 %v4668_v53  ;;  %v4669_v60 = vunpack.i.l.bf16 %v4668_v53 }
 0x22a   :  { %1201 = vst.msk [vmem:[#allocation3 + $0xe1] sm:$0xff] %vm905_vm2, %v1143_v50  ;;  %v4673_v61 = vpop.permute.xlu1 %4672 }
 0x22b   :  { %1200 = vst.msk [vmem:[#allocation3 + $0xd1] sm:$0xff] %vm905_vm2, %v1142_v54  ;;  %v4675_v15 = vunpack.i.h.bf16 %v4673_v61  ;;  %v4674_v62 = vunpack.i.l.bf16 %v4673_v61  ;;  %v1802_v27 = vsel %vm1751_vm12, %v1786_v0, %v4669_v60  ;;  %v1753_v29 = vsel %vm1751_vm12, %v1736_v1, %v4670_v59 }
 0x22c   :  { %v4678_v63 = vpop.permute.xlu0 %4677 }
 0x22d   :  { %v4680_v4 = vunpack.i.h.bf16 %v4678_v63  ;;  %v4679_v7 = vunpack.i.l.bf16 %v4678_v63  ;;  %v1818_v9 = vsel %vm1768_vm13, %v1802_v27, %v4674_v62  ;;  %v1770_v10 = vsel %vm1768_vm13, %v1753_v29, %v4675_v15 }
 0x22e   :  { %1993 = vmatprep.mubr.f32.mxu1 %v1818_v9  ;;  %v4688_v42 = vpop.permute.xlu1 %4687 }
 0x22f   :  { %v1787_v13 = vsel %vm905_vm2, %v5962_v55, %v4679_v7  ;;  %v1737_v58 = vsel %vm905_vm2, %v5934_v52, %v4680_v4  ;;  %1994 = vmatmul.mubr.f32.gmra.mrb[2].mxu1 %v1770_v10  ;;  %v4690_v48 = vunpack.i.h.bf16 %v4688_v42  ;;  %v4689_v49 = vunpack.i.l.bf16 %v4688_v42 }
 0x230   :  { %v4683_v57 = vpop.permute.xlu0 %4682  ;;  %v1803_v20 = vsel %vm1751_vm12, %v1787_v13, %v4664_v51  ;;  %v1754_v55 = vsel %vm1751_vm12, %v1737_v58, %v4665_v14 }
 0x231   :  { %v4685_v17 = vunpack.i.h.bf16 %v4683_v57  ;;  %v4684_v18 = vunpack.i.l.bf16 %v4683_v57  ;;  %v6086_v19 = vld [vmem:[#allocation3 + $0xe0] sm:$0xff]  ;;  %v1788_v0 = vsel %vm905_vm2, %v5971_v12, %v4689_v49  ;;  %v1738_v1 = vsel %vm905_vm2, %v5958_v8, %v4690_v48 }
 0x232   :  { %v6089_v21 = vld [vmem:[#allocation3 + $0xd2] sm:$0xff]  ;;  %v4781_v40 = vpack.i.bf16 %v6046_v56, %v6086_v19  ;;  %v6099_v23 = vld [vmem:[#allocation3 + $0xe2] sm:$0xff] }
 0x233   :  { %v6094_v44 = vld [vmem:[#allocation3 + $0xd0] sm:$0xff]  ;;  %v1819_v52 = vsel %vm1768_vm13, %v1803_v20, %v4684_v18  ;;  %4266 = vmatmul.mubr.msk.f32.gmra.mrb[24].mxu0 %vm905_vm2, %v6089_v21  ;;  %v1771_v25 = vsel %vm1768_vm13, %v1754_v55, %v4685_v17  ;;  %v4796_v34 = vpack.i.bf16 %v6061_v38, %v6089_v21 }
 0x234   :  { %v4786_v26 = vpack.i.bf16 %v6053_v33, %v6094_v44  ;;  %1998 = vmatprep.mubr.f32.mxu1 %v1819_v52  ;;  %4268 = vmatprep.mubr.msk.f32.mxu0 %vm905_vm2, %v6099_v23  ;;  %v6106_v56 = vld [vmem:[#allocation3 + $0xd1] sm:$0xff]  ;;  %v6115_v33 = vld [vmem:[#allocation3 + $0xe1] sm:$0xff] }
 0x235   :  { %4782 = vrot.lane.b32.xlu1 %v4781_v40, %s5086_s3  ;;  %1999 = vmatmul.mubr.f32.gmra.mrb[4].mxu1 %v1771_v25  ;;  %v4791_v31 = vpack.i.bf16 %v6048_v28, %v6106_v56  ;;  %v4806_v39 = vpack.i.bf16 %v6106_v56, %v6099_v23  ;;  %v4801_v41 = vpack.i.bf16 %v6094_v44, %v6115_v33 }
 0x236   :  { %4787 = vrot.lane.b32.xlu0 %v4786_v26, %s5086_s3 }
 0x239   :  { %4792 = vrot.lane.b32.xlu1 %v4791_v31, %s5087_s29 }
 0x23a   :  { %4797 = vrot.lane.b32.xlu0 %v4796_v34, %s5085_s14 }
 0x23d   :  { %4807 = vrot.lane.b32.xlu1 %v4806_v39, %s5085_s14 }
 0x23e   :  { %4802 = vrot.lane.b32.xlu0 %v4801_v41, %s5087_s29 }
 0x245   :  { %v4241_v32 = vpop.f32.mrb[12].mxu0 }
 0x246   :  { %v1119_v43 = vadd.f32 %v4241_v32, %v5858_v24  ;;  %v1113_v5 = vpop.f32.mrb[13].mxu0  ;;  %v4693_v47 = vpop.permute.xlu1 %4692 }
 0x247   :  { %v1114_v46 = vadd.f32 %v5858_v24, %v1113_v5  ;;  %v4695_v58 = vunpack.i.h.bf16 %v4693_v47  ;;  %v4694_v14 = vunpack.i.l.bf16 %v4693_v47 }
 0x248   :  { %v1145_v50 = vmax.f32 %v1119_v43, 0.0  ;;  %v4698_v53 = vpop.permute.xlu0 %4697 }
 0x249   :  { %v1144_v54 = vmax.f32 %v1114_v46, 0.0  ;;  %v4700_v59 = vunpack.i.h.bf16 %v4698_v53  ;;  %v4699_v60 = vunpack.i.l.bf16 %v4698_v53 }
 0x24a   :  { %1203 = vst.msk [vmem:[#allocation3 + $0x101] sm:$0xff] %vm905_vm2, %v1145_v50  ;;  %v4703_v61 = vpop.permute.xlu1 %4702 }
 0x24b   :  { %1202 = vst.msk [vmem:[#allocation3 + $0xf1] sm:$0xff] %vm905_vm2, %v1144_v54  ;;  %v4705_v15 = vunpack.i.h.bf16 %v4703_v61  ;;  %v4704_v62 = vunpack.i.l.bf16 %v4703_v61  ;;  %v1804_v27 = vsel %vm1751_vm12, %v1788_v0, %v4699_v60  ;;  %v1755_v29 = vsel %vm1751_vm12, %v1738_v1, %v4700_v59 }
 0x24c   :  { %v4708_v63 = vpop.permute.xlu0 %4707 }
 0x24d   :  { %v4710_v4 = vunpack.i.h.bf16 %v4708_v63  ;;  %v4709_v7 = vunpack.i.l.bf16 %v4708_v63  ;;  %v1820_v9 = vsel %vm1768_vm13, %v1804_v27, %v4704_v62  ;;  %v1772_v10 = vsel %vm1768_vm13, %v1755_v29, %v4705_v15 }
 0x24e   :  { %2003 = vmatprep.mubr.f32.mxu1 %v1820_v9  ;;  %v4718_v42 = vpop.permute.xlu1 %4717 }
 0x24f   :  { %v1789_v13 = vsel %vm905_vm2, %v5990_v6, %v4709_v7  ;;  %v1739_v12 = vsel %vm905_vm2, %v5955_v3, %v4710_v4  ;;  %2004 = vmatmul.mubr.f32.gmra.mrb[6].mxu1 %v1772_v10  ;;  %v4719_v53 = vunpack.i.l.bf16 %v4718_v42  ;;  %v4720_v59 = vunpack.i.h.bf16 %v4718_v42 }
 0x250   :  { %v4713_v8 = vpop.permute.xlu0 %4712  ;;  %v1805_v18 = vsel %vm1751_vm12, %v1789_v13, %v4694_v14  ;;  %v1756_v6 = vsel %vm1751_vm12, %v1739_v12, %v4695_v58 }
 0x251   :  { %v4715_v51 = vunpack.i.h.bf16 %v4713_v8  ;;  %v4714_v57 = vunpack.i.l.bf16 %v4713_v8  ;;  %v6140_v17 = vld [vmem:[#allocation3 + $0x100] sm:$0xff]  ;;  %v1740_v9 = vsel %vm905_vm2, %v5986_v22, %v4720_v59 }
 0x252   :  { %v6143_v20 = vld [vmem:[#allocation3 + $0xf2] sm:$0xff]  ;;  %v4811_v40 = vpack.i.bf16 %v6099_v23, %v6140_v17  ;;  %v6153_v52 = vld [vmem:[#allocation3 + $0x102] sm:$0xff] }
 0x253   :  { %v6148_v55 = vld [vmem:[#allocation3 + $0xf0] sm:$0xff]  ;;  %v1821_v3 = vsel %vm1768_vm13, %v1805_v18, %v4714_v57  ;;  %4269 = vmatmul.mubr.msk.f32.gmra.mrb[26].mxu0 %vm905_vm2, %v6143_v20  ;;  %v1773_v25 = vsel %vm1768_vm13, %v1756_v6, %v4715_v51  ;;  %v4826_v34 = vpack.i.bf16 %v6115_v33, %v6143_v20 }
 0x254   :  { %v4816_v26 = vpack.i.bf16 %v6089_v21, %v6148_v55  ;;  %2008 = vmatprep.mubr.f32.mxu1 %v1821_v3  ;;  %4271 = vmatprep.mubr.msk.f32.mxu0 %vm905_vm2, %v6153_v52  ;;  %v6160_v23 = vld [vmem:[#allocation3 + $0xf1] sm:$0xff]  ;;  %v6169_v21 = vld [vmem:[#allocation3 + $0x101] sm:$0xff] }
 0x255   :  { %4812 = vrot.lane.b32.xlu1 %v4811_v40, %s5086_s3  ;;  %2009 = vmatmul.mubr.f32.gmra.mrb[8].mxu1 %v1773_v25  ;;  %v4821_v31 = vpack.i.bf16 %v6086_v19, %v6160_v23  ;;  %v4836_v39 = vpack.i.bf16 %v6160_v23, %v6153_v52  ;;  %v4831_v41 = vpack.i.bf16 %v6148_v55, %v6169_v21 }
 0x256   :  { %4817 = vrot.lane.b32.xlu0 %v4816_v26, %s5086_s3 }
 0x259   :  { %4822 = vrot.lane.b32.xlu1 %v4821_v31, %s5087_s29 }
 0x25a   :  { %4827 = vrot.lane.b32.xlu0 %v4826_v34, %s5085_s14 }
 0x25d   :  { %4837 = vrot.lane.b32.xlu1 %v4836_v39, %s5085_s14 }
 0x25e   :  { %4832 = vrot.lane.b32.xlu0 %v4831_v41, %s5087_s29 }
 0x262   :  { %v4244_v32 = vpop.f32.mrb[14].mxu0 }
 0x263   :  { %v1129_v43 = vadd.f32 %v4244_v32, %v5858_v24  ;;  %v1123_v5 = vpop.f32.mrb[15].mxu0  ;;  %v4723_v47 = vpop.permute.xlu1 %4722 }
 0x264   :  { %v1124_v46 = vadd.f32 %v5858_v24, %v1123_v5  ;;  %v1790_v24 = vsel %vm905_vm2, %v5999_v30, %v4719_v53  ;;  %v4724_v4 = vunpack.i.l.bf16 %v4723_v47  ;;  %v1350_v53 = vld [vmem:[#allocation3 + $0x132] sm:$0xff] }
 0x265   :  { %v1147_v48 = vmax.f32 %v1129_v43, 0.0  ;;  %v4733_v49 = vpop.permute.xlu0 %4732 }
 0x266   :  { %v1146_v50 = vmax.f32 %v1124_v46, 0.0  ;;  %v4735_v61 = vunpack.i.h.bf16 %v4733_v49  ;;  %v4734_v15 = vunpack.i.l.bf16 %v4733_v49 }
 0x267   :  { %1205 = vst.msk [vmem:[#allocation3 + $0x121] sm:$0xff] %vm905_vm2, %v1147_v48  ;;  %v6182_v54 = vpop.permute.xlu1 %4727 }
 0x268   :  { %1204 = vst.msk [vmem:[#allocation3 + $0x111] sm:$0xff] %vm905_vm2, %v1146_v50  ;;  %v1806_v13 = vsel %vm1751_vm12, %v1790_v24, %v4734_v15  ;;  %v1757_v12 = vsel %vm1751_vm12, %v1740_v9, %v4735_v61  ;;  %v4729_v32 = vunpack.i.l.bf16 %v6182_v54  ;;  %v1318_v15 = vld [vmem:[#allocation3 + $0x130] sm:$0xff] }
 0x269   :  { %v4743_v60 = vpop.permute.xlu0 %4742 }
 0x26a   :  { %v4744_v62 = vunpack.i.l.bf16 %v4743_v60  ;;  %v4745_v63 = vunpack.i.h.bf16 %v4743_v60 }
 0x26b   :  { %v4738_v0 = vpop.permute.xlu1 %4737 }
 0x26c   :  { %v1791_v1 = vsel %vm905_vm2, %v6019_v35, %v4744_v62  ;;  %v4740_v7 = vunpack.i.h.bf16 %v4738_v0  ;;  %v4739_v27 = vunpack.i.l.bf16 %v4738_v0  ;;  %v1741_v25 = vsel %vm905_vm2, %v5983_v11, %v4745_v63 }
 0x26d   :  { %v4748_v29 = vpop.permute.xlu0 %4747  ;;  %v1807_v51 = vsel %vm1751_vm12, %v1791_v1, %v4724_v4  ;;  %v1214_v4 = vld [vmem:[#allocation3 + $0xa0] sm:$0xff] }
 0x26e   :  { %v4749_v10 = vunpack.i.l.bf16 %v4748_v29  ;;  %v6192_v58 = vld [vmem:[#allocation3 + $0x120] sm:$0xff]  ;;  %v1822_v14 = vsel %vm1768_vm13, %v1806_v13, %v4739_v27  ;;  %v1774_v35 = vsel %vm1768_vm13, %v1757_v12, %v4740_v7  ;;  %v4750_v22 = vunpack.i.h.bf16 %v4748_v29 }
 0x26f   :  { %v6195_v30 = vld [vmem:[#allocation3 + $0x112] sm:$0xff]  ;;  %v4841_v8 = vpack.i.bf16 %v6153_v52, %v6192_v58  ;;  %v4753_v18 = vpop.permute.xlu1 %4752  ;;  %2013 = vmatprep.mubr.f32.mxu1 %v1822_v14  ;;  %v1349_v40 = vld [vmem:[#allocation3 + $0x122] sm:$0xff]  ;;  %v4725_v52 = vunpack.i.h.bf16 %v4723_v47 }
 0x270   :  { %v6201_v57 = vld [vmem:[#allocation3 + $0x110] sm:$0xff]  ;;  %4272 = vmatmul.mubr.msk.f32.gmra.mrb[28].mxu0 %vm905_vm2, %v6195_v30  ;;  %v1823_v6 = vsel %vm1768_vm13, %v1807_v51, %v4749_v10  ;;  %v4755_v26 = vunpack.i.h.bf16 %v4753_v18  ;;  %v4754_v31 = vunpack.i.l.bf16 %v4753_v18  ;;  %2014 = vmatmul.mubr.f32.gmra.mrb[10].mxu1 %v1774_v35  ;;  %v4856_v49 = vpack.i.bf16 %v6169_v21, %v6195_v30 }
 0x271   :  { %v4846_v3 = vpack.i.bf16 %v6143_v20, %v6201_v57  ;;  %v4758_v34 = vpop.permute.xlu0 %4757  ;;  %4274 = vmatprep.mubr.msk.f32.mxu0 %vm905_vm2, %v1349_v40  ;;  %v6211_v39 = vld [vmem:[#allocation3 + $0x111] sm:$0xff]  ;;  %4842 = vrot.lane.b32.xlu1 %v4841_v8, %s5086_s3  ;;  %v1758_v11 = vsel %vm1751_vm12, %v1741_v25, %v4725_v52  ;;  %v4871_v63 = vpack.i.bf16 %v6195_v30, %v1318_v15 }
 0x272   :  { %v4760_v41 = vunpack.i.h.bf16 %v4758_v34  ;;  %v4759_v42 = vunpack.i.l.bf16 %v4758_v34  ;;  %2018 = vmatprep.mubr.f32.mxu1 %v1823_v6  ;;  %v1792_v20 = vsel %vm905_vm2, %v6023_v36, %v4754_v31  ;;  %v1742_v43 = vsel %vm905_vm2, %v6011_v45, %v4755_v26  ;;  %v6231_v45 = vld [vmem:[#allocation3 + $0x121] sm:$0xff] }
 0x273   :  { %4847 = vrot.lane.b32.xlu0 %v4846_v3, %s5086_s3  ;;  %v1775_v5 = vsel %vm1768_vm13, %v1758_v11, %v4750_v22  ;;  %v4851_v46 = vpack.i.bf16 %v6140_v17, %v6211_v39  ;;  %v4730_v36 = vunpack.i.h.bf16 %v6182_v54  ;;  %v4866_v60 = vpack.i.bf16 %v6211_v39, %v1349_v40  ;;  %v1334_v54 = vld [vmem:[#allocation3 + $0x131] sm:$0xff] }
 0x274   :  { %v1808_v47 = vsel %vm1751_vm12, %v1792_v20, %v4759_v42  ;;  %2019 = vmatmul.mubr.f32.gmra.mrb[12].mxu1 %v1775_v5  ;;  %v1759_v50 = vsel %vm1751_vm12, %v1742_v43, %v4760_v41  ;;  %4275 = vmatmul.mubr.msk.f32.gmra.mrb[30].mxu0 %vm905_vm2, %v1350_v53  ;;  %v4861_v61 = vpack.i.bf16 %v6201_v57, %v6231_v45 }
 0x275   :  { %v1824_v48 = vsel %vm1768_vm13, %v1808_v47, %v4729_v32  ;;  %4852 = vrot.lane.b32.xlu1 %v4851_v46, %s5087_s29  ;;  %v1776_v59 = vsel %vm1768_vm13, %v1759_v50, %v4730_v36  ;;  %v4876_v62 = vpack.i.bf16 %v6192_v58, %v1334_v54 }
 0x276   :  { %2023 = vmatprep.mubr.f32.mxu1 %v1824_v48 }
 0x277   :  { %4857 = vrot.lane.b32.xlu0 %v4856_v49, %s5085_s14 }
 0x278   :  { %2024 = vmatmul.mubr.f32.gmra.mrb[14].mxu1 %v1776_v59 }
 0x279   :  { %4867 = vrot.lane.b32.xlu1 %v4866_v60, %s5085_s14 }
 0x27b   :  { %4862 = vrot.lane.b32.xlu0 %v4861_v61, %s5087_s29 }
 0x27d   :  { %4877 = vrot.lane.b32.xlu1 %v4876_v62, %s5087_s29 }
 0x27f   :  { %4872 = vrot.lane.b32.xlu0 %v4871_v63, %s5086_s3 }
 0x286   :  { %v6285_v0 = vpop.f32.mrb[16].mxu0 }
 0x287   :  { %v6287_v24 = vpop.f32.mrb[17].mxu0 }
 0x293   :  { %v4768_v1 = vpop.permute.xlu0 %4767  ;;  %v4763_v7 = vpop.permute.xlu1 %4762 }
 0x294   :  { %v4770_v27 = vunpack.i.h.bf16 %v4768_v1  ;;  %v4769_v29 = vunpack.i.l.bf16 %v4768_v1  ;;  %v4765_v13 = vunpack.i.h.bf16 %v4763_v7  ;;  %v4764_v12 = vunpack.i.l.bf16 %v4763_v7 }
 0x296   :  { %v1793_v9 = vsel %vm905_vm2, %v6056_v16, %v4769_v29  ;;  %v1743_v10 = vsel %vm905_vm2, %v1214_v4, %v4770_v27 }
 0x297   :  { %v4773_v58 = vpop.permute.xlu0 %4772  ;;  %v1809_v35 = vsel %vm1751_vm12, %v1793_v9, %v4764_v12  ;;  %v1760_v8 = vsel %vm1751_vm12, %v1743_v10, %v4765_v13  ;;  %v4778_v18 = vpop.permute.xlu1 %4777 }
 0x298   :  { %v4775_v14 = vunpack.i.h.bf16 %v4773_v58  ;;  %v4774_v30 = vunpack.i.l.bf16 %v4773_v58  ;;  %v4780_v6 = vunpack.i.h.bf16 %v4778_v18  ;;  %v4779_v3 = vunpack.i.l.bf16 %v4778_v18 }
 0x29a   :  { %v1825_v51 = vsel %vm1768_vm13, %v1809_v35, %v4774_v30  ;;  %v1777_v22 = vsel %vm1768_vm13, %v1760_v8, %v4775_v14  ;;  %v1794_v11 = vsel %vm905_vm2, %v6061_v38, %v4779_v3  ;;  %v1744_v20 = vsel %vm905_vm2, %v6059_v37, %v4780_v6 }
 0x29b   :  { %2028 = vmatprep.mubr.f32.mxu1 %v1825_v51 }
 0x29c   :  { %2029 = vmatmul.mubr.f32.gmra.mrb[16].mxu1 %v1777_v22 }
 0x2a6   :  { %v6296_v40 = vpop.f32.mrb[18].mxu0 }
 0x2a7   :  { %v4783_v16 = vpop.permute.xlu1 %4782  ;;  %v6298_v25 = vpop.f32.mrb[19].mxu0 }
 0x2a8   :  { %v4788_v52 = vpop.permute.xlu0 %4787  ;;  %v4785_v36 = vunpack.i.h.bf16 %v4783_v16  ;;  %v4784_v53 = vunpack.i.l.bf16 %v4783_v16 }
 0x2a9   :  { %v4790_v26 = vunpack.i.h.bf16 %v4788_v52  ;;  %v4789_v31 = vunpack.i.l.bf16 %v4788_v52 }
 0x2ab   :  { %v4793_v34 = vpop.permute.xlu1 %4792  ;;  %v1810_v46 = vsel %vm1751_vm12, %v1794_v11, %v4789_v31  ;;  %v1761_v47 = vsel %vm1751_vm12, %v1744_v20, %v4790_v26 }
 0x2ac   :  { %v4795_v41 = vunpack.i.h.bf16 %v4793_v34  ;;  %v4794_v42 = vunpack.i.l.bf16 %v4793_v34  ;;  %v4798_v32 = vpop.permute.xlu0 %4797 }
 0x2ad   :  { %v4800_v43 = vunpack.i.h.bf16 %v4798_v32  ;;  %v4799_v5 = vunpack.i.l.bf16 %v4798_v32 }
 0x2ae   :  { %v1826_v48 = vsel %vm1768_vm13, %v1810_v46, %v4794_v42  ;;  %v1778_v49 = vsel %vm1768_vm13, %v1761_v47, %v4795_v41  ;;  %v2754_v46 = vld [vmem:[%s7275_s5 + $0x8] sm:$0xff] }
 0x2af   :  { %2033 = vmatprep.mubr.f32.mxu1 %v1826_v48  ;;  %v1795_v50 = vsel %vm905_vm2, %v6106_v56, %v4799_v5  ;;  %v1745_v38 = vsel %vm905_vm2, %v6048_v28, %v4800_v43  ;;  %v4808_v56 = vpop.permute.xlu1 %4807  ;;  %v2753_v43 = vld [vmem:[%s7275_s5] sm:$0xff]  ;;  %v2771_v48 = vld [vmem:[%s7275_s5 + $0x90] sm:$0xff] }
 0x2b0   :  { %v4803_v37 = vpop.permute.xlu0 %4802  ;;  %2034 = vmatmul.mubr.f32.gmra.mrb[18].mxu1 %v1778_v49  ;;  %v1811_v61 = vsel %vm1751_vm12, %v1795_v50, %v4784_v53  ;;  %v1762_v54 = vsel %vm1751_vm12, %v1745_v38, %v4785_v36  ;;  %v4810_v4 = vunpack.i.h.bf16 %v4808_v56  ;;  %v4809_v7 = vunpack.i.l.bf16 %v4808_v56  ;;  %v2772_v49 = vld [vmem:[%s7275_s5 + $0x98] sm:$0xff]  ;;  %v2755_v50 = vld [vmem:[%s7275_s5 + $0x10] sm:$0xff] }
 0x2b1   :  { %v4805_v59 = vunpack.i.h.bf16 %v4803_v37  ;;  %v4804_v60 = vunpack.i.l.bf16 %v4803_v37  ;;  %v4456_v47 = vpack.c.bf16 %v2754_v46, %v2753_v43  ;;  %v4458_v38 = vpack.c.bf16 %v2772_v49, %v2771_v48  ;;  %v2756_v36 = vld [vmem:[%s7275_s5 + $0x18] sm:$0xff] }
 0x2b2   :  { %v1796_v35 = vsel %vm905_vm2, %v6115_v33, %v4809_v7  ;;  %v1746_v8 = vsel %vm905_vm2, %v6094_v44, %v4810_v4  ;;  %v4460_v53 = vpack.c.bf16 %v2756_v36, %v2755_v50  ;;  %v2776_v56 = vld [vmem:[%s7275_s5 + $0xb8] sm:$0xff]  ;;  %v2759_v7 = vld [vmem:[%s7275_s5 + $0x30] sm:$0xff] }
 0x2b3   :  { %v1827_v15 = vsel %vm1768_vm13, %v1811_v61, %v4804_v60  ;;  %v1779_v62 = vsel %vm1768_vm13, %v1762_v54, %v4805_v59  ;;  %v2773_v59 = vld [vmem:[%s7275_s5 + $0xa0] sm:$0xff]  ;;  %v2774_v60 = vld [vmem:[%s7275_s5 + $0xa8] sm:$0xff] }
 0x2b4   :  { %2038 = vmatprep.mubr.f32.mxu1 %v1827_v15  ;;  %v2757_v61 = vld [vmem:[%s7275_s5 + $0x20] sm:$0xff]  ;;  %v4462_v54 = vpack.c.bf16 %v2774_v60, %v2773_v59  ;;  %v2758_v15 = vld [vmem:[%s7275_s5 + $0x28] sm:$0xff] }
 0x2b5   :  { %2039 = vmatmul.mubr.f32.gmra.mrb[20].mxu1 %v1779_v62  ;;  %v2775_v62 = vld [vmem:[%s7275_s5 + $0xb0] sm:$0xff] }
 0x2b6   :  { %v4466_v4 = vpack.c.bf16 %v2776_v56, %v2775_v62  ;;  %v6431_v62 = vld [vmem:[%s7274_s4] ss:$0 sm:$0xff] }
 0x2c3   :  { %v6316_v63 = vpop.f32.mrb[20].mxu0 }
 0x2c4   :  { %v6318_v28 = vpop.f32.mrb[21].mxu0 }
 0x2c7   :  { %v4813_v1 = vpop.permute.xlu1 %4812  ;;  %v6320_v29 = vpop.f32.mrb[22].mxu0 }
 0x2c8   :  { %v4818_v27 = vpop.permute.xlu0 %4817  ;;  %v6322_v13 = vpop.f32.mrb[23].mxu0  ;;  %v4815_v26 = vunpack.i.h.bf16 %v4813_v1  ;;  %v4814_v31 = vunpack.i.l.bf16 %v4813_v1  ;;  %v4464_v1 = vpack.c.bf16 %v2758_v15, %v2757_v61 }
 0x2c9   :  { %v4820_v9 = vunpack.i.h.bf16 %v4818_v27  ;;  %v4819_v10 = vunpack.i.l.bf16 %v4818_v27  ;;  %v2760_v27 = vld [vmem:[%s7275_s5 + $0x38] sm:$0xff] }
 0x2cb   :  { %v4823_v12 = vpop.permute.xlu1 %4822  ;;  %v1812_v18 = vsel %vm1751_vm12, %v1796_v35, %v4819_v10  ;;  %v1763_v16 = vsel %vm1751_vm12, %v1746_v8, %v4820_v9  ;;  %v2777_v9 = vld [vmem:[%s7275_s5 + $0xc0] sm:$0xff]  ;;  %v2778_v10 = vld [vmem:[%s7275_s5 + $0xc8] sm:$0xff] }
 0x2cc   :  { %v4825_v58 = vunpack.i.h.bf16 %v4823_v12  ;;  %v4824_v14 = vunpack.i.l.bf16 %v4823_v12  ;;  %v4828_v30 = vpop.permute.xlu0 %4827  ;;  %v4470_v8 = vpack.c.bf16 %v2778_v10, %v2777_v9  ;;  %v2781_v10 = vld [vmem:[%s7275_s5 + $0xe0] sm:$0xff] }
 0x2cd   :  { %v4830_v51 = vunpack.i.h.bf16 %v4828_v30  ;;  %v4829_v22 = vunpack.i.l.bf16 %v4828_v30 }
 0x2ce   :  { %v1828_v6 = vsel %vm1768_vm13, %v1812_v18, %v4824_v14  ;;  %v1780_v3 = vsel %vm1768_vm13, %v1763_v16, %v4825_v58  ;;  %v4468_v14 = vpack.c.bf16 %v2760_v27, %v2759_v7 }
 0x2cf   :  { %2043 = vmatprep.mubr.f32.mxu1 %v1828_v6  ;;  %v1797_v52 = vsel %vm905_vm2, %v6160_v23, %v4829_v22  ;;  %v1747_v33 = vsel %vm905_vm2, %v6086_v19, %v4830_v51  ;;  %v2769_v19 = vld [vmem:[%s7275_s5 + $0x80] sm:$0xff]  ;;  %v2770_v23 = vld [vmem:[%s7275_s5 + $0x88] sm:$0xff]  ;;  %v4838_v37 = vpop.permute.xlu1 %4837  ;;  %v2779_v6 = vld [vmem:[%s7275_s5 + $0xd0] sm:$0xff] }
 0x2d0   :  { %v4833_v44 = vpop.permute.xlu0 %4832  ;;  %2044 = vmatmul.mubr.f32.gmra.mrb[22].mxu1 %v1780_v3  ;;  %v1813_v42 = vsel %vm1751_vm12, %v1797_v52, %v4814_v31  ;;  %v1764_v32 = vsel %vm1751_vm12, %v1747_v33, %v4815_v26  ;;  %v4454_v5 = vpack.c.bf16 %v2770_v23, %v2769_v19  ;;  %v4839_v12 = vunpack.i.l.bf16 %v4838_v37  ;;  %v2761_v51 = vld [vmem:[%s7275_s5 + $0x40] sm:$0xff]  ;;  %v2762_v22 = vld [vmem:[%s7275_s5 + $0x48] sm:$0xff]  ;;  %v2780_v3 = vld [vmem:[%s7275_s5 + $0xd8] sm:$0xff] }
 0x2d1   :  { %v4835_v34 = vunpack.i.h.bf16 %v4833_v44  ;;  %v4834_v41 = vunpack.i.l.bf16 %v4833_v44  ;;  %v4840_v30 = vunpack.i.h.bf16 %v4838_v37  ;;  %v4472_v26 = vpack.c.bf16 %v2762_v22, %v2761_v51 }
 0x2d2   :  { %4455 = vmatprep.subr.bf16.mxu0 %v4454_v5  ;;  %v1798_v33 = vsel %vm905_vm2, %v6169_v21, %v4839_v12  ;;  %v2782_v12 = vld [vmem:[%s7275_s5 + $0xe8] sm:$0xff] }
 0x2d3   :  { %v1829_v11 = vsel %vm1768_vm13, %v1813_v42, %v4834_v41  ;;  %v1781_v20 = vsel %vm1768_vm13, %v1764_v32, %v4835_v34  ;;  %4457 = vmatpush3.bf16.msra.mxu0 %v4456_v47  ;;  %v1748_v41 = vsel %vm905_vm2, %v6148_v55, %v4840_v30  ;;  %v4474_v42 = vpack.c.bf16 %v2780_v3, %v2779_v6 }
 0x2d4   :  { %2048 = vmatprep.mubr.f32.mxu1 %v1829_v11  ;;  %4459 = vmatprep.subr.bf16.mxu0 %v4458_v38 }
 0x2d5   :  { %2049 = vmatmul.mubr.f32.gmra.mrb[24].mxu1 %v1781_v20 }
 0x2d7   :  { %4461 = vmatpush3.bf16.msra.mxu0 %v4460_v53 }
 0x2d8   :  { %4463 = vmatprep.subr.bf16.mxu0 %v4462_v54 }
 0x2db   :  { %4465 = vmatpush3.bf16.msra.mxu0 %v4464_v1 }
 0x2dc   :  { %4467 = vmatprep.subr.bf16.mxu0 %v4466_v4 }
 0x2df   :  { %4469 = vmatpush3.bf16.msra.mxu0 %v4468_v14 }
 0x2e0   :  { %4471 = vmatprep.subr.bf16.mxu0 %v4470_v8  ;;  %v2765_v8 = vld [vmem:[%s7275_s5 + $0x60] sm:$0xff] }
 0x2e3   :  { %v4843_v58 = vpop.permute.xlu1 %4842  ;;  %4473 = vmatpush3.bf16.msra.mxu0 %v4472_v26 }
 0x2e4   :  { %v4845_v46 = vunpack.i.h.bf16 %v4843_v58  ;;  %v4844_v47 = vunpack.i.l.bf16 %v4843_v58  ;;  %4475 = vmatprep.subr.bf16.mxu0 %v4474_v42 }
 0x2e5   :  { %v4848_v35 = vpop.permute.xlu0 %4847 }
 0x2e6   :  { %v4850_v18 = vunpack.i.h.bf16 %v4848_v35  ;;  %v4849_v16 = vunpack.i.l.bf16 %v4848_v35  ;;  %v4478_v35 = vpack.c.bf16 %v2782_v12, %v2781_v10 }
 0x2e7   :  { %v4853_v52 = vpop.permute.xlu1 %4852 }
 0x2e8   :  { %v4855_v31 = vunpack.i.h.bf16 %v4853_v52  ;;  %v4854_v44 = vunpack.i.l.bf16 %v4853_v52  ;;  %v1814_v20 = vsel %vm1751_vm12, %v1798_v33, %v4849_v16  ;;  %v1765_v19 = vsel %vm1751_vm12, %v1748_v41, %v4850_v18  ;;  %v2783_v52 = vld [vmem:[%s7275_s5 + $0xf0] sm:$0xff]  ;;  %v2784_v33 = vld [vmem:[%s7275_s5 + $0xf8] sm:$0xff]  ;;  %v2304_v41 = vld [vmem:[#allocation4 + $0x1] sm:$0xff] }
 0x2e9   :  { %v4858_v34 = vpop.permute.xlu0 %4857  ;;  %v4482_v26 = vpack.c.bf16 %v2784_v33, %v2783_v52 }
 0x2ea   :  { %v4860_v32 = vunpack.i.h.bf16 %v4858_v34  ;;  %v4859_v11 = vunpack.i.l.bf16 %v4858_v34  ;;  %v1830_v23 = vsel %vm1768_vm13, %v1814_v20, %v4854_v44  ;;  %v1782_v21 = vsel %vm1768_vm13, %v1765_v19, %v4855_v31  ;;  %v2767_v31 = vld [vmem:[%s7275_s5 + $0x70] sm:$0xff] }
 0x2eb   :  { %v4868_v43 = vpop.permute.xlu1 %4867  ;;  %2053 = vmatprep.mubr.f32.mxu1 %v1830_v23 }
 0x2ec   :  { %v1799_v5 = vsel %vm905_vm2, %v6211_v39, %v4859_v11  ;;  %v1749_v55 = vsel %vm905_vm2, %v6140_v17, %v4860_v32  ;;  %2054 = vmatmul.mubr.f32.gmra.mrb[26].mxu1 %v1782_v21  ;;  %v4869_v49 = vunpack.i.l.bf16 %v4868_v43  ;;  %v4870_v36 = vunpack.i.h.bf16 %v4868_v43  ;;  %v2763_v39 = vld [vmem:[%s7275_s5 + $0x50] sm:$0xff]  ;;  %v2764_v17 = vld [vmem:[%s7275_s5 + $0x58] sm:$0xff] }
 0x2ed   :  { %v4863_v48 = vpop.permute.xlu0 %4862  ;;  %v1815_v53 = vsel %vm1751_vm12, %v1799_v5, %v4844_v47  ;;  %v1766_v37 = vsel %vm1751_vm12, %v1749_v55, %v4845_v46  ;;  %v4476_v15 = vpack.c.bf16 %v2764_v17, %v2763_v39 }
 0x2ee   :  { %v4865_v50 = vunpack.i.h.bf16 %v4863_v48  ;;  %v4864_v38 = vunpack.i.l.bf16 %v4863_v48  ;;  %v1800_v9 = vsel %vm905_vm2, %v6231_v45, %v4869_v49  ;;  %v1750_v30 = vsel %vm905_vm2, %v6201_v57, %v4870_v36  ;;  %v2766_v45 = vld [vmem:[%s7275_s5 + $0x68] sm:$0xff] }
 0x2ef   :  { %v3881_v59 = vpop.f32.mrb[0].mxu1  ;;  %v4878_v60 = vpop.permute.xlu1 %4877  ;;  %4477 = vmatpush3.bf16.msra.mxu0 %v4476_v15  ;;  %v4480_v16 = vpack.c.bf16 %v2766_v45, %v2765_v8 }
 0x2f0   :  { %v1831_v61 = vsel %vm1768_vm13, %v1815_v53, %v4864_v38  ;;  %v1783_v54 = vsel %vm1768_vm13, %v1766_v37, %v4865_v50  ;;  %v3882_v56 = vpop.f32.mrb[1].mxu1  ;;  %v4880_v58 = vunpack.i.h.bf16 %v4878_v60  ;;  %v4879_v14 = vunpack.i.l.bf16 %v4878_v60  ;;  %4479 = vmatprep.subr.bf16.mxu0 %v4478_v35 }
 0x2f1   :  { %v4873_v1 = vpop.permute.xlu0 %4872  ;;  %2058 = vmatprep.mubr.f32.mxu1 %v1831_v61  ;;  %v3883_v4 = vadd.f32 %v3882_v56, %v3881_v59 }
 0x2f2   :  { %v4875_v7 = vunpack.i.h.bf16 %v4873_v1  ;;  %v4874_v27 = vunpack.i.l.bf16 %v4873_v1  ;;  %2059 = vmatmul.mubr.f32.gmra.mrb[28].mxu1 %v1783_v54 }
 0x2f3   :  { %v1991_v51 = vadd.f32 %v3883_v4, %v6431_v62  ;;  %4481 = vmatpush3.bf16.msra.mxu0 %v4480_v16 }
 0x2f4   :  { %v1816_v22 = vsel %vm1751_vm12, %v1800_v9, %v4874_v27  ;;  %v1767_v18 = vsel %vm1751_vm12, %v1750_v30, %v4875_v7  ;;  %4483 = vmatprep.subr.bf16.mxu0 %v4482_v26 }
 0x2f5   :  { %v1832_v6 = vsel %vm1768_vm13, %v1816_v22, %v4879_v14  ;;  %v1784_v57 = vsel %vm1768_vm13, %v1767_v18, %v4880_v58  ;;  %v2136_v3 = vadd.f32 %v6287_v24, %v1991_v51  ;;  %v2768_v24 = vld [vmem:[%s7275_s5 + $0x78] sm:$0xff] }
 0x2f6   :  { %2063 = vmatprep.mubr.f32.mxu1 %v1832_v6  ;;  %v4484_v34 = vpack.c.bf16 %v2768_v24, %v2767_v31 }
 0x2f7   :  { %2064 = vmatmul.mubr.f32.gmra.mrb[30].mxu1 %v1784_v57  ;;  %v2214_v44 = vmax.f32 %v2136_v3, 0.0 }
 0x2f8   :  { %4485 = vmatpush3.bf16.msra.mxu0 %v4484_v34 }
 0x2f9   :  { %2272 = vst.msk [vmem:[#allocation4 + $0x11] sm:$0xff] %vm1751_vm12, %v2214_v44 }
 0x300   :  { %v6468_v42 = vld [vmem:[#allocation4 + $0x10] sm:$0xff] }
 0x301   :  { %v4881_v32 = vpack.i.bf16 %v2304_v41, %v6468_v42  ;;  %v2305_v36 = vld [vmem:[#allocation4 + $0x11] sm:$0xff] }
 0x302   :  { %v3884_v11 = vpop.f32.mrb[2].mxu1 }
 0x303   :  { %4882 = vrot.lane.b32.xlu0 %v4881_v32, %s5086_s3  ;;  %v3885_v20 = vpop.f32.mrb[3].mxu1 }
 0x304   :  { %v3886_v19 = vadd.f32 %v3885_v20, %v3884_v11 }
 0x306   :  { %v6472_v23 = vpop.f32.mrb[24].mxu0  ;;  %v1996_v21 = vadd.f32 %v3886_v19, %v6431_v62 }
 0x307   :  { %v6475_v43 = vpop.f32.mrb[25].mxu0 }
 0x308   :  { %v3887_v5 = vpop.f32.mrb[4].mxu1  ;;  %v2141_v55 = vadd.f32 %v6285_v0, %v1996_v21 }
 0x309   :  { %v3888_v46 = vpop.f32.mrb[5].mxu1 }
 0x30a   :  { %v3889_v47 = vadd.f32 %v3888_v46, %v3887_v5  ;;  %v2215_v48 = vmax.f32 %v2141_v55, 0.0 }
 0x30c   :  { %v2001_v49 = vadd.f32 %v3889_v47, %v6431_v62  ;;  %2273 = vst.msk [vmem:[#allocation4 + $0x21] sm:$0xff] %vm1751_vm12, %v2215_v48 }
 0x30e   :  { %v2146_v50 = vadd.f32 %v6298_v25, %v2001_v49 }
 0x310   :  { %v2216_v38 = vmax.f32 %v2146_v50, 0.0 }
 0x312   :  { %2274 = vst.msk [vmem:[#allocation4 + $0x31] sm:$0xff] %vm1751_vm12, %v2216_v38 }
 0x313   :  { %v6482_v53 = vld [vmem:[#allocation4 + $0x20] sm:$0xff] }
 0x314   :  { %v4886_v37 = vpack.i.bf16 %v2305_v36, %v6482_v53  ;;  %v6486_v0 = vld [vmem:[#allocation4 + $0x21] sm:$0xff] }
 0x316   :  { %4887 = vrot.lane.b32.xlu1 %v4886_v37, %s5086_s3 }
 0x319   :  { %v6488_v39 = vld [vmem:[#allocation4 + $0x30] sm:$0xff] }
 0x31a   :  { %v4891_v17 = vpack.i.bf16 %v6486_v0, %v6488_v39  ;;  %v6503_v58 = vld [vmem:[#allocation4 + $0x31] sm:$0xff] }
 0x31c   :  { %4892 = vrot.lane.b32.xlu0 %v4891_v17, %s5086_s3 }
 0x322   :  { %v3890_v25 = vpop.f32.mrb[6].mxu1 }
 0x323   :  { %v3891_v59 = vpop.f32.mrb[7].mxu1 }
 0x324   :  { %v3892_v60 = vadd.f32 %v3891_v59, %v3890_v25  ;;  %v2320_v59 = vld [vmem:[#allocation4 + $0x2] sm:$0xff] }
 0x326   :  { %v6493_v61 = vpop.f32.mrb[26].mxu0  ;;  %v2006_v54 = vadd.f32 %v3892_v60, %v6431_v62  ;;  %v2288_v60 = vld [vmem:[#allocation4] sm:$0xff] }
 0x327   :  { %v6496_v15 = vpop.f32.mrb[27].mxu0 }
 0x328   :  { %v3893_v56 = vpop.f32.mrb[8].mxu1  ;;  %v2151_v1 = vadd.f32 %v6296_v40, %v2006_v54 }
 0x329   :  { %v3894_v4 = vpop.f32.mrb[9].mxu1 }
 0x32a   :  { %v3895_v7 = vadd.f32 %v3894_v4, %v3893_v56  ;;  %v2217_v27 = vmax.f32 %v2151_v1, 0.0 }
 0x32c   :  { %v2011_v9 = vadd.f32 %v3895_v7, %v6431_v62  ;;  %2275 = vst.msk [vmem:[#allocation4 + $0x41] sm:$0xff] %vm1751_vm12, %v2217_v27  ;;  %v2312_v27 = vld [vmem:[#allocation4 + $0xa1] sm:$0xff] }
 0x32e   :  { %v2156_v10 = vadd.f32 %v6318_v28, %v2011_v9 }
 0x330   :  { %v2218_v12 = vmax.f32 %v2156_v10, 0.0 }
 0x332   :  { %2276 = vst.msk [vmem:[#allocation4 + $0x51] sm:$0xff] %vm1751_vm12, %v2218_v12 }
 0x333   :  { %v6505_v14 = vld [vmem:[#allocation4 + $0x40] sm:$0xff] }
 0x334   :  { %v4896_v30 = vpack.i.bf16 %v6503_v58, %v6505_v14  ;;  %v6510_v40 = vld [vmem:[#allocation4 + $0x41] sm:$0xff] }
 0x336   :  { %4897 = vrot.lane.b32.xlu1 %v4896_v30, %s5086_s3 }
 0x339   :  { %v6512_v35 = vld [vmem:[#allocation4 + $0x50] sm:$0xff] }
 0x33a   :  { %v4901_v8 = vpack.i.bf16 %v6510_v40, %v6512_v35  ;;  %v6533_v21 = vld [vmem:[#allocation4 + $0x51] sm:$0xff] }
 0x33c   :  { %4902 = vrot.lane.b32.xlu0 %v4901_v8, %s5086_s3 }
 0x343   :  { %v6517_v28 = vpop.f32.mrb[28].mxu0  ;;  %v3896_v45 = vpop.f32.mrb[10].mxu1 }
 0x344   :  { %v6519_v51 = vpop.f32.mrb[29].mxu0  ;;  %v3897_v22 = vpop.f32.mrb[11].mxu1 }
 0x345   :  { %v3898_v18 = vadd.f32 %v3897_v22, %v3896_v45 }
 0x347   :  { %v2016_v16 = vadd.f32 %v3898_v18, %v6431_v62  ;;  %v3899_v6 = vpop.f32.mrb[12].mxu1  ;;  %v6523_v33 = vpop.f32.mrb[30].mxu0 }
 0x348   :  { %v3900_v57 = vpop.f32.mrb[13].mxu1  ;;  %v6526_v44 = vpop.f32.mrb[31].mxu0 }
 0x349   :  { %v2161_v3 = vadd.f32 %v6316_v63, %v2016_v16  ;;  %v3901_v52 = vadd.f32 %v3900_v57, %v3899_v6 }
 0x34b   :  { %v2219_v26 = vmax.f32 %v2161_v3, 0.0  ;;  %v2021_v31 = vadd.f32 %v3901_v52, %v6431_v62  ;;  %v3902_v24 = vpop.f32.mrb[14].mxu1 }
 0x34c   :  { %v3903_v34 = vpop.f32.mrb[15].mxu1 }
 0x34d   :  { %2277 = vst.msk [vmem:[#allocation4 + $0x61] sm:$0xff] %vm1751_vm12, %v2219_v26  ;;  %v2166_v41 = vadd.f32 %v6322_v13, %v2021_v31  ;;  %v3904_v32 = vadd.f32 %v3903_v34, %v3902_v24  ;;  %v6563_v26 = vld [vmem:[#allocation4 + $0x12] sm:$0xff] }
 0x34f   :  { %v2220_v11 = vmax.f32 %v2166_v41, 0.0  ;;  %v2026_v20 = vadd.f32 %v3904_v32, %v6431_v62 }
 0x351   :  { %2278 = vst.msk [vmem:[#allocation4 + $0x71] sm:$0xff] %vm1751_vm12, %v2220_v11  ;;  %v2171_v63 = vadd.f32 %v6320_v29, %v2026_v20  ;;  %v2801_v20 = vld [vmem:[%s7275_s5 + $0x180] sm:$0xff] }
 0x353   :  { %v2221_v19 = vmax.f32 %v2171_v63, 0.0  ;;  %v2802_v63 = vld [vmem:[%s7275_s5 + $0x188] sm:$0xff] }
 0x354   :  { %v6535_v5 = vld [vmem:[#allocation4 + $0x60] sm:$0xff] }
 0x355   :  { %2279 = vst.msk [vmem:[#allocation4 + $0x81] sm:$0xff] %vm1751_vm12, %v2221_v19  ;;  %v4906_v55 = vpack.i.bf16 %v6533_v21, %v6535_v5  ;;  %v6541_v13 = vld [vmem:[#allocation4 + $0x61] sm:$0xff] }
 0x357   :  { %4907 = vrot.lane.b32.xlu1 %v4906_v55, %s5086_s3  ;;  %v6578_v55 = vld [vmem:[#allocation4 + $0x22] sm:$0xff] }
 0x358   :  { %v6543_v46 = vld [vmem:[#allocation4 + $0x70] sm:$0xff] }
 0x359   :  { %v4911_v47 = vpack.i.bf16 %v6541_v13, %v6543_v46  ;;  %v6548_v29 = vld [vmem:[#allocation4 + $0x71] sm:$0xff] }
 0x35b   :  { %4912 = vrot.lane.b32.xlu0 %v4911_v47, %s5086_s3 }
 0x35c   :  { %v2343_v48 = vld [vmem:[#allocation4 + $0x80] sm:$0xff] }
 0x35d   :  { %v4916_v49 = vpack.i.bf16 %v6548_v29, %v2343_v48  ;;  %v2785_v48 = vld [vmem:[%s7275_s5 + $0x100] sm:$0xff] }
 0x35f   :  { %4917 = vrot.lane.b32.xlu1 %v4916_v49, %s5086_s3  ;;  %v2786_v49 = vld [vmem:[%s7275_s5 + $0x108] sm:$0xff] }
 0x36f   :  { %v3905_v50 = vpop.f32.mrb[16].mxu1 }
 0x370   :  { %v3906_v38 = vpop.f32.mrb[17].mxu1 }
 0x371   :  { %v3907_v36 = vadd.f32 %v3906_v38, %v3905_v50  ;;  %v4488_v50 = vpack.c.bf16 %v2786_v49, %v2785_v48  ;;  %v2803_v38 = vld [vmem:[%s7275_s5 + $0x190] sm:$0xff]  ;;  %v2792_v48 = vld [vmem:[%s7275_s5 + $0x138] sm:$0xff] }
 0x373   :  { %v2031_v37 = vadd.f32 %v3907_v36, %v6431_v62  ;;  %v2804_v36 = vld [vmem:[%s7275_s5 + $0x198] sm:$0xff] }
 0x375   :  { %v2176_v17 = vadd.f32 %v6475_v43, %v2031_v37  ;;  %v4883_v25 = vpop.permute.xlu0 %4882  ;;  %v2817_v37 = vld [vmem:[%s7275_s5 + $0x200] sm:$0xff] }
 0x376   :  { %v4885_v56 = vunpack.i.h.bf16 %v4883_v25  ;;  %v4884_v1 = vunpack.i.l.bf16 %v4883_v25 }
 0x377   :  { %v2222_v54 = vmax.f32 %v2176_v17, 0.0 }
 0x378   :  { %v2705_v4 = vsel %vm1751_vm12, %v2320_v59, %v4884_v1  ;;  %v2689_v7 = vsel %vm1751_vm12, %v2288_v60, %v4885_v56  ;;  %v4490_v59 = vpack.c.bf16 %v2804_v36, %v2803_v38  ;;  %v2787_v56 = vld [vmem:[%s7275_s5 + $0x110] sm:$0xff]  ;;  %v2788_v1 = vld [vmem:[%s7275_s5 + $0x118] sm:$0xff] }
 0x379   :  { %2280 = vst.msk [vmem:[#allocation4 + $0xb1] sm:$0xff] %vm1751_vm12, %v2222_v54  ;;  %2944 = vmatprep.mubr.f32.mxu0 %v2705_v4  ;;  %v2818_v54 = vld [vmem:[%s7275_s5 + $0x208] sm:$0xff] }
 0x37a   :  { %2945 = vmatmul.mubr.f32.vlgmr.msra.gmra.mrb[32].mxu0 %v2689_v7  ;;  %v4518_v4 = vpack.c.bf16 %v2818_v54, %v2817_v37  ;;  %v4492_v7 = vpack.c.bf16 %v2788_v1, %v2787_v56  ;;  %v2809_v1 = vld [vmem:[%s7275_s5 + $0x1c0] sm:$0xff] }
 0x37c   :  { %4519 = vmatprep.subr.bf16.mxu0 %v4518_v4 }
 0x37d   :  { %4521 = vmatpush3.bf16.msra.mxu0 %v4518_v4  ;;  %v2810_v4 = vld [vmem:[%s7275_s5 + $0x1c8] sm:$0xff] }
 0x380   :  { %v6557_v9 = vld [vmem:[#allocation4 + $0xb0] sm:$0xff] }
 0x381   :  { %v4921_v10 = vpack.i.bf16 %v2312_v27, %v6557_v9  ;;  %v6600_v17 = vld [vmem:[#allocation4 + $0xb1] sm:$0xff]  ;;  %v2805_v27 = vld [vmem:[%s7275_s5 + $0x1a0] sm:$0xff] }
 0x383   :  { %v3908_v43 = vpop.f32.mrb[18].mxu1  ;;  %4922 = vrot.lane.b32.xlu0 %v4921_v10, %s5086_s3  ;;  %v2806_v10 = vld [vmem:[%s7275_s5 + $0x1a8] sm:$0xff] }
 0x384   :  { %v3909_v12 = vpop.f32.mrb[19].mxu1 }
 0x385   :  { %v3910_v30 = vadd.f32 %v3909_v12, %v3908_v43  ;;  %v2789_v43 = vld [vmem:[%s7275_s5 + $0x120] sm:$0xff]  ;;  %v4494_v12 = vpack.c.bf16 %v2806_v10, %v2805_v27  ;;  %v4502_v27 = vpack.c.bf16 %v2810_v4, %v2809_v1  ;;  %v2823_v1 = vld [vmem:[%s7275_s5 + $0x230] sm:$0xff] }
 0x387   :  { %v2036_v8 = vadd.f32 %v3910_v30, %v6431_v62  ;;  %v2790_v30 = vld [vmem:[%s7275_s5 + $0x128] sm:$0xff] }
 0x388   :  { %v3911_v45 = vpop.f32.mrb[20].mxu1  ;;  %v4888_v16 = vpop.permute.xlu1 %4887 }
 0x389   :  { %v2181_v22 = vadd.f32 %v6472_v23, %v2036_v8  ;;  %v3912_v18 = vpop.f32.mrb[21].mxu1  ;;  %v4890_v57 = vunpack.i.h.bf16 %v4888_v16  ;;  %v4889_v3 = vunpack.i.l.bf16 %v4888_v16  ;;  %v2807_v8 = vld [vmem:[%s7275_s5 + $0x1b0] sm:$0xff] }
 0x38a   :  { %v3913_v6 = vadd.f32 %v3912_v18, %v3911_v45  ;;  %v2808_v45 = vld [vmem:[%s7275_s5 + $0x1b8] sm:$0xff] }
 0x38b   :  { %v2223_v52 = vmax.f32 %v2181_v22, 0.0  ;;  %v2706_v24 = vsel %vm1751_vm12, %v6563_v26, %v4889_v3  ;;  %v2690_v34 = vsel %vm1751_vm12, %v6468_v42, %v4890_v57  ;;  %v4486_v42 = vpack.c.bf16 %v2802_v63, %v2801_v20  ;;  %v2819_v22 = vld [vmem:[%s7275_s5 + $0x210] sm:$0xff]  ;;  %v2820_v18 = vld [vmem:[%s7275_s5 + $0x218] sm:$0xff] }
 0x38c   :  { %v2041_v31 = vadd.f32 %v3913_v6, %v6431_v62  ;;  %2949 = vmatprep.mubr.f32.mxu0 %v2706_v24  ;;  %v4496_v57 = vpack.c.bf16 %v2790_v30, %v2789_v43  ;;  %v4522_v3 = vpack.c.bf16 %v2820_v18, %v2819_v22  ;;  %v2793_v43 = vld [vmem:[%s7275_s5 + $0x140] sm:$0xff] }
 0x38d   :  { %2281 = vst.msk [vmem:[#allocation4 + $0xc1] sm:$0xff] %vm1751_vm12, %v2223_v52  ;;  %2950 = vmatmul.mubr.f32.gmra.mrb[34].mxu0 %v2690_v34  ;;  %4487 = vmatprep.subr.bf16.mxu1 %v4486_v42 }
 0x38e   :  { %v2186_v23 = vadd.f32 %v6496_v15, %v2041_v31  ;;  %v4893_v41 = vpop.permute.xlu0 %4892  ;;  %4489 = vmatpush3.bf16.msra.mxu1 %v4488_v50  ;;  %v4498_v31 = vpack.c.bf16 %v2808_v45, %v2807_v8  ;;  %4523 = vmatprep.subr.bf16.mxu0 %v4522_v3  ;;  %v6655_v50 = vld [vmem:[#allocation4 + $0x32] sm:$0xff]  ;;  %v2821_v45 = vld [vmem:[%s7275_s5 + $0x220] sm:$0xff] }
 0x38f   :  { %v4895_v32 = vunpack.i.h.bf16 %v4893_v41  ;;  %v4894_v11 = vunpack.i.l.bf16 %v4893_v41  ;;  %4491 = vmatprep.subr.bf16.mxu1 %v4490_v59  ;;  %4525 = vmatpush3.bf16.msra.mxu0 %v4522_v3  ;;  %v2811_v8 = vld [vmem:[%s7275_s5 + $0x1d0] sm:$0xff] }
 0x390   :  { %v2224_v19 = vmax.f32 %v2186_v23, 0.0 }
 0x391   :  { %v2707_v47 = vsel %vm1751_vm12, %v6578_v55, %v4894_v11  ;;  %v2691_v15 = vsel %vm1751_vm12, %v6482_v53, %v4895_v32 }
 0x392   :  { %2282 = vst.msk [vmem:[#allocation4 + $0xd1] sm:$0xff] %vm1751_vm12, %v2224_v19  ;;  %2954 = vmatprep.mubr.f32.mxu0 %v2707_v47  ;;  %4493 = vmatpush3.bf16.msra.mxu1 %v4492_v7 }
 0x393   :  { %2955 = vmatmul.mubr.f32.gmra.mrb[36].mxu0 %v2691_v15  ;;  %4495 = vmatprep.subr.bf16.mxu1 %v4494_v12  ;;  %v2791_v15 = vld [vmem:[%s7275_s5 + $0x130] sm:$0xff]  ;;  %v2794_v12 = vld [vmem:[%s7275_s5 + $0x148] sm:$0xff] }
 0x394   :  { %v6602_v25 = vld [vmem:[#allocation4 + $0xc0] sm:$0xff]  ;;  %v4500_v38 = vpack.c.bf16 %v2792_v48, %v2791_v15  ;;  %v4504_v30 = vpack.c.bf16 %v2794_v12, %v2793_v43 }
 0x395   :  { %v4926_v60 = vpack.i.bf16 %v6600_v17, %v6602_v25  ;;  %v6640_v16 = vld [vmem:[#allocation4 + $0xc1] sm:$0xff] }
 0x396   :  { %4497 = vmatpush3.bf16.msra.mxu1 %v4496_v57 }
 0x397   :  { %4927 = vrot.lane.b32.xlu1 %v4926_v60, %s5086_s3  ;;  %4499 = vmatprep.subr.bf16.mxu1 %v4498_v31  ;;  %v2795_v31 = vld [vmem:[%s7275_s5 + $0x150] sm:$0xff] }
 0x399   :  { %v6642_v6 = vld [vmem:[#allocation4 + $0xd0] sm:$0xff] }
 0x39a   :  { %v4931_v52 = vpack.i.bf16 %v6640_v16, %v6642_v6  ;;  %4501 = vmatpush3.bf16.msra.mxu1 %v4500_v38  ;;  %v6692_v22 = vld [vmem:[#allocation4 + $0xd1] sm:$0xff] }
 0x39b   :  { %4503 = vmatprep.subr.bf16.mxu1 %v4502_v27  ;;  %v2799_v27 = vld [vmem:[%s7275_s5 + $0x170] sm:$0xff] }
 0x39c   :  { %4932 = vrot.lane.b32.xlu0 %v4931_v52, %s5086_s3  ;;  %v2822_v52 = vld [vmem:[%s7275_s5 + $0x228] sm:$0xff] }
 0x39e   :  { %4505 = vmatpush3.bf16.msra.mxu1 %v4504_v30 }
 0x3a3   :  { %v3914_v24 = vpop.f32.mrb[22].mxu1 }
 0x3a4   :  { %v3915_v34 = vpop.f32.mrb[23].mxu1 }
 0x3a5   :  { %v3916_v23 = vadd.f32 %v3915_v34, %v3914_v24  ;;  %v2796_v24 = vld [vmem:[%s7275_s5 + $0x158] sm:$0xff]  ;;  %v4526_v34 = vpack.c.bf16 %v2822_v52, %v2821_v45 }
 0x3a7   :  { %v2046_v41 = vadd.f32 %v3916_v23, %v6431_v62  ;;  %v4508_v23 = vpack.c.bf16 %v2796_v24, %v2795_v31  ;;  %4527 = vmatprep.subr.bf16.mxu0 %v4526_v34  ;;  %v6750_v31 = vld [vmem:[#allocation4 + $0x52] sm:$0xff] }
 0x3a8   :  { %v3917_v32 = vpop.f32.mrb[24].mxu1  ;;  %v4898_v63 = vpop.permute.xlu1 %4897  ;;  %4529 = vmatpush3.bf16.msra.mxu0 %v4526_v34 }
 0x3a9   :  { %v2191_v11 = vadd.f32 %v6493_v61, %v2046_v41  ;;  %v3918_v20 = vpop.f32.mrb[25].mxu1  ;;  %v4900_v42 = vunpack.i.h.bf16 %v4898_v63  ;;  %v4899_v47 = vunpack.i.l.bf16 %v4898_v63  ;;  %v2813_v41 = vld [vmem:[%s7275_s5 + $0x1e0] sm:$0xff]  ;;  %v2798_v63 = vld [vmem:[%s7275_s5 + $0x168] sm:$0xff] }
 0x3aa   :  { %v3919_v19 = vadd.f32 %v3918_v20, %v3917_v32  ;;  %v2814_v32 = vld [vmem:[%s7275_s5 + $0x1e8] sm:$0xff] }
 0x3ab   :  { %v2225_v49 = vmax.f32 %v2191_v11, 0.0  ;;  %v2708_v61 = vsel %vm1751_vm12, %v6655_v50, %v4899_v47  ;;  %v2692_v37 = vsel %vm1751_vm12, %v6488_v39, %v4900_v42  ;;  %v6670_v39 = vld [vmem:[#allocation4 + $0x42] sm:$0xff]  ;;  %v4510_v20 = vpack.c.bf16 %v2814_v32, %v2813_v41 }
 0x3ac   :  { %v2051_v36 = vadd.f32 %v3919_v19, %v6431_v62  ;;  %2959 = vmatprep.mubr.f32.mxu0 %v2708_v61  ;;  %v2797_v11 = vld [vmem:[%s7275_s5 + $0x160] sm:$0xff] }
 0x3ad   :  { %2283 = vst.msk [vmem:[#allocation4 + $0xe1] sm:$0xff] %vm1751_vm12, %v2225_v49  ;;  %2960 = vmatmul.mubr.f32.gmra.mrb[38].mxu0 %v2692_v37  ;;  %v4512_v47 = vpack.c.bf16 %v2798_v63, %v2797_v11  ;;  %v6759_v63 = vld [vmem:[#allocation4 + $0x62] sm:$0xff] }
 0x3ae   :  { %v2196_v59 = vadd.f32 %v6519_v51, %v2051_v36  ;;  %v4903_v60 = vpop.permute.xlu0 %4902 }
 0x3af   :  { %v4905_v54 = vunpack.i.h.bf16 %v4903_v60  ;;  %v4904_v56 = vunpack.i.l.bf16 %v4903_v60 }
 0x3b0   :  { %v2226_v7 = vmax.f32 %v2196_v59, 0.0 }
 0x3b1   :  { %v2709_v10 = vsel %vm1751_vm12, %v6670_v39, %v4904_v56  ;;  %v2693_v51 = vsel %vm1751_vm12, %v6505_v14, %v4905_v54  ;;  %v2812_v14 = vld [vmem:[%s7275_s5 + $0x1d8] sm:$0xff]  ;;  %v2815_v54 = vld [vmem:[%s7275_s5 + $0x1f0] sm:$0xff] }
 0x3b2   :  { %2284 = vst.msk [vmem:[#allocation4 + $0xf1] sm:$0xff] %vm1751_vm12, %v2226_v7  ;;  %2964 = vmatprep.mubr.f32.mxu0 %v2709_v10  ;;  %v4506_v57 = vpack.c.bf16 %v2812_v14, %v2811_v8  ;;  %v2816_v56 = vld [vmem:[%s7275_s5 + $0x1f8] sm:$0xff] }
 0x3b3   :  { %2965 = vmatmul.mubr.f32.gmra.mrb[40].mxu0 %v2693_v51  ;;  %v4514_v7 = vpack.c.bf16 %v2816_v56, %v2815_v54  ;;  %v2800_v10 = vld [vmem:[%s7275_s5 + $0x178] sm:$0xff] }
 0x3b4   :  { %v6694_v18 = vld [vmem:[#allocation4 + $0xe0] sm:$0xff]  ;;  %4507 = vmatprep.subr.bf16.mxu1 %v4506_v57  ;;  %v4516_v12 = vpack.c.bf16 %v2800_v10, %v2799_v27  ;;  %v2408_v10 = vld [vmem:[#allocation4 + $0x91] sm:$0xff] }
 0x3b5   :  { %v4936_v3 = vpack.i.bf16 %v6692_v22, %v6694_v18  ;;  %v6720_v19 = vld [vmem:[#allocation4 + $0xe1] sm:$0xff]  ;;  %4509 = vmatpush3.bf16.msra.mxu1 %v4508_v23 }
 0x3b6   :  { %4511 = vmatprep.subr.bf16.mxu1 %v4510_v20  ;;  %v6807_v27 = vld [vmem:[#allocation4 + $0x82] sm:$0xff] }
 0x3b7   :  { %4937 = vrot.lane.b32.xlu1 %v4936_v3, %s5086_s3 }
 0x3b9   :  { %v6722_v42 = vld [vmem:[#allocation4 + $0xf0] sm:$0xff]  ;;  %4513 = vmatpush3.bf16.msra.mxu1 %v4512_v47 }
 0x3ba   :  { %v4941_v15 = vpack.i.bf16 %v6720_v19, %v6722_v42  ;;  %4515 = vmatprep.subr.bf16.mxu1 %v4514_v7  ;;  %v4971_v7 = vpack.i.bf16 %v6655_v50, %v6510_v40 }
 0x3bc   :  { %4942 = vrot.lane.b32.xlu0 %v4941_v15, %s5086_s3 }
 0x3bd   :  { %4517 = vmatpush3.bf16.msra.mxu1 %v4516_v12  ;;  %v2376_v12 = vld [vmem:[#allocation4 + $0xb2] sm:$0xff] }
 0x3bf   :  { %v3920_v48 = vpop.f32.mrb[26].mxu1 }
 0x3c0   :  { %v3921_v49 = vpop.f32.mrb[27].mxu1 }
 0x3c1   :  { %v3922_v38 = vadd.f32 %v3921_v49, %v3920_v48 }
 0x3c3   :  { %v2056_v36 = vadd.f32 %v3922_v38, %v6431_v62 }
 0x3c5   :  { %v3923_v61 = vpop.f32.mrb[28].mxu1  ;;  %v2201_v37 = vadd.f32 %v6517_v28, %v2056_v36  ;;  %v2824_v28 = vld [vmem:[%s7275_s5 + $0x238] sm:$0xff] }
 0x3c6   :  { %v3924_v59 = vpop.f32.mrb[29].mxu1  ;;  %v4530_v43 = vpack.c.bf16 %v2824_v28, %v2823_v1  ;;  %v4986_v28 = vpack.i.bf16 %v6759_v63, %v6548_v29  ;;  %v6819_v29 = vld [vmem:[#allocation4 + $0xc2] sm:$0xff] }
 0x3c7   :  { %v3925_v60 = vadd.f32 %v3924_v59, %v3923_v61  ;;  %v2227_v4 = vmax.f32 %v2201_v37, 0.0 }
 0x3c8   :  { %4531 = vmatprep.subr.bf16.mxu0 %v4530_v43 }
 0x3c9   :  { %v2061_v51 = vadd.f32 %v3925_v60, %v6431_v62  ;;  %2285 = vst.msk [vmem:[#allocation4 + $0x101] sm:$0xff] %vm1751_vm12, %v2227_v4  ;;  %v4908_v8 = vpop.permute.xlu1 %4907  ;;  %4533 = vmatpush3.bf16.msra.mxu0 %v4530_v43  ;;  %v5006_v43 = vpack.i.bf16 %v6819_v29, %v6692_v22 }
 0x3ca   :  { %v3926_v30 = vpop.f32.mrb[30].mxu1  ;;  %v4910_v45 = vunpack.i.h.bf16 %v4908_v8  ;;  %v4909_v57 = vunpack.i.l.bf16 %v4908_v8 }
 0x3cb   :  { %v2206_v14 = vadd.f32 %v6526_v44, %v2061_v51  ;;  %v3927_v3 = vpop.f32.mrb[31].mxu1  ;;  %v6812_v51 = vld [vmem:[#allocation4 + $0x81] sm:$0xff] }
 0x3cc   :  { %v3928_v52 = vadd.f32 %v3927_v3, %v3926_v30  ;;  %v2710_v34 = vsel %vm1751_vm12, %v6750_v31, %v4909_v57  ;;  %v2694_v23 = vsel %vm1751_vm12, %v6512_v35, %v4910_v45  ;;  %v6765_v35 = vld [vmem:[#allocation4 + $0xf1] sm:$0xff]  ;;  %v6826_v30 = vld [vmem:[#allocation4 + $0xe2] sm:$0xff] }
 0x3cd   :  { %v2228_v24 = vmax.f32 %v2206_v14, 0.0  ;;  %v4913_v32 = vpop.permute.xlu0 %4912  ;;  %2969 = vmatprep.mubr.f32.mxu0 %v2710_v34  ;;  %v5016_v8 = vpack.i.bf16 %v6826_v30, %v6765_v35  ;;  %v6831_v14 = vld [vmem:[#allocation4 + $0xd2] sm:$0xff] }
 0x3ce   :  { %v2066_v41 = vadd.f32 %v3928_v52, %v6431_v62  ;;  %v4915_v44 = vunpack.i.h.bf16 %v4913_v32  ;;  %v4914_v11 = vunpack.i.l.bf16 %v4913_v32  ;;  %2970 = vmatmul.mubr.f32.gmra.mrb[42].mxu0 %v2694_v23  ;;  %v5011_v45 = vpack.i.bf16 %v6831_v14, %v6720_v19  ;;  %v6841_v52 = vld [vmem:[#allocation4 + $0xf2] sm:$0xff] }
 0x3cf   :  { %2286 = vst.msk [vmem:[#allocation4 + $0x111] sm:$0xff] %vm1751_vm12, %v2228_v24  ;;  %v2416_v34 = vld [vmem:[#allocation4 + $0x131] sm:$0xff] }
 0x3d0   :  { %v2211_v20 = vadd.f32 %v6523_v33, %v2066_v41  ;;  %v2711_v47 = vsel %vm1751_vm12, %v6759_v63, %v4914_v11  ;;  %v2695_v15 = vsel %vm1751_vm12, %v6535_v5, %v4915_v44  ;;  %v6767_v62 = vld [vmem:[#allocation4 + $0x100] sm:$0xff]  ;;  %v6775_v5 = vld [vmem:[#allocation4 + $0x72] sm:$0xff] }
 0x3d1   :  { %v4918_v49 = vpop.permute.xlu1 %4917  ;;  %2974 = vmatprep.mubr.f32.mxu0 %v2711_v47  ;;  %v4946_v38 = vpack.i.bf16 %v6765_v35, %v6767_v62  ;;  %v6771_v61 = vld [vmem:[#allocation4 + $0x101] sm:$0xff]  ;;  %v4991_v40 = vpack.i.bf16 %v6775_v5, %v6812_v51 }
 0x3d2   :  { %v2229_v48 = vmax.f32 %v2211_v20, 0.0  ;;  %v4920_v36 = vunpack.i.h.bf16 %v4918_v49  ;;  %v4919_v33 = vunpack.i.l.bf16 %v4918_v49  ;;  %2975 = vmatmul.mubr.f32.gmra.mrb[44].mxu0 %v2695_v15  ;;  %v4951_v60 = vpack.i.bf16 %v6563_v26, %v6771_v61  ;;  %v6836_v57 = vld [vmem:[#allocation4 + $0x102] sm:$0xff] }
 0x3d3   :  { %4947 = vrot.lane.b32.xlu1 %v4946_v38, %s5086_s3  ;;  %v5021_v23 = vpack.i.bf16 %v6841_v52, %v6771_v61  ;;  %v2328_v44 = vld [vmem:[#allocation4 + $0xa2] sm:$0xff] }
 0x3d4   :  { %2287 = vst.msk [vmem:[#allocation4 + $0x121] sm:$0xff] %vm1751_vm12, %v2229_v48  ;;  %v2712_v37 = vsel %vm1751_vm12, %v6775_v5, %v4919_v33  ;;  %v2696_v59 = vsel %vm1751_vm12, %v6543_v46, %v4920_v36  ;;  %v2296_v11 = vld [vmem:[#allocation4 + $0xa0] sm:$0xff] }
 0x3d5   :  { %2979 = vmatprep.mubr.f32.mxu0 %v2712_v37 }
 0x3d6   :  { %v6783_v54 = vld [vmem:[#allocation4 + $0x110] sm:$0xff]  ;;  %2980 = vmatmul.mubr.f32.gmra.mrb[46].mxu0 %v2696_v59 }
 0x3d7   :  { %v4956_v56 = vpack.i.bf16 %v6486_v0, %v6783_v54  ;;  %v6787_v1 = vld [vmem:[#allocation4 + $0x111] sm:$0xff]  ;;  %4952 = vrot.lane.b32.xlu1 %v4951_v60, %s5086_s3  ;;  %v4976_v0 = vpack.i.bf16 %v6670_v39, %v6533_v21  ;;  %v4996_v21 = vpack.i.bf16 %v6807_v27, %v2408_v10 }
 0x3d8   :  { %v4961_v4 = vpack.i.bf16 %v6578_v55, %v6787_v1  ;;  %v5026_v3 = vpack.i.bf16 %v6836_v57, %v6787_v1  ;;  %v6852_v48 = vld [vmem:[#allocation4 + $0x112] sm:$0xff] }
 0x3d9   :  { %4957 = vrot.lane.b32.xlu0 %v4956_v56, %s5086_s3 }
 0x3db   :  { %v6793_v46 = vld [vmem:[#allocation4 + $0x120] sm:$0xff]  ;;  %4962 = vrot.lane.b32.xlu1 %v4961_v4, %s5086_s3 }
 0x3dc   :  { %v4966_v26 = vpack.i.bf16 %v6503_v58, %v6793_v46  ;;  %v4981_v58 = vpack.i.bf16 %v6750_v31, %v6541_v13  ;;  %v5001_v13 = vpack.i.bf16 %v2376_v12, %v6640_v16  ;;  %v6843_v24 = vld [vmem:[#allocation4 + $0x122] sm:$0xff] }
 0x3dd   :  { %v6848_v32 = vld [vmem:[#allocation4 + $0x121] sm:$0xff]  ;;  %v5036_v15 = vpack.i.bf16 %v6843_v24, %v2416_v34 }
 0x3de   :  { %4967 = vrot.lane.b32.xlu0 %v4966_v26, %s5086_s3  ;;  %v5031_v49 = vpack.i.bf16 %v6852_v48, %v6848_v32 }
 0x3df   :  { %4977 = vrot.lane.b32.xlu1 %v4976_v0, %s5086_s3 }
 0x3e2   :  { %4972 = vrot.lane.b32.xlu0 %v4971_v7, %s5086_s3 }
 0x3e3   :  { %4987 = vrot.lane.b32.xlu1 %v4986_v28, %s5086_s3 }
 0x3e6   :  { %4982 = vrot.lane.b32.xlu0 %v4981_v58, %s5086_s3 }
 0x3e7   :  { %4997 = vrot.lane.b32.xlu1 %v4996_v21, %s5086_s3 }
 0x3ea   :  { %4992 = vrot.lane.b32.xlu0 %v4991_v40, %s5086_s3 }
 0x3eb   :  { %5007 = vrot.lane.b32.xlu1 %v5006_v43, %s5086_s3 }
 0x3ee   :  { %5002 = vrot.lane.b32.xlu0 %v5001_v13, %s5086_s3 }
 0x3ef   :  { %5017 = vrot.lane.b32.xlu1 %v5016_v8, %s5086_s3 }
 0x3f2   :  { %5012 = vrot.lane.b32.xlu0 %v5011_v45, %s5086_s3 }
 0x3f3   :  { %5027 = vrot.lane.b32.xlu1 %v5026_v3, %s5086_s3 }
 0x3f5   :  { %v4923_v41 = vpop.permute.xlu0 %4922 }
 0x3f6   :  { %5022 = vrot.lane.b32.xlu0 %v5021_v23, %s5086_s3  ;;  %v4925_v20 = vunpack.i.h.bf16 %v4923_v41  ;;  %v4924_v47 = vunpack.i.l.bf16 %v4923_v41 }
 0x3f7   :  { %5037 = vrot.lane.b32.xlu1 %v5036_v15, %s5086_s3 }
 0x3f8   :  { %v2713_v38 = vsel %vm1751_vm12, %v2328_v44, %v4924_v47  ;;  %v2697_v36 = vsel %vm1751_vm12, %v2296_v11, %v4925_v20 }
 0x3f9   :  { %2984 = vmatprep.mubr.f32.mxu0 %v2713_v38 }
 0x3fa   :  { %5032 = vrot.lane.b32.xlu0 %v5031_v49, %s5086_s3  ;;  %2985 = vmatmul.mubr.f32.gmra.mrb[48].mxu0 %v2697_v36 }
 0x409   :  { %v4928_v33 = vpop.permute.xlu1 %4927 }
 0x40a   :  { %v4930_v37 = vunpack.i.h.bf16 %v4928_v33  ;;  %v4929_v59 = vunpack.i.l.bf16 %v4928_v33 }
 0x40c   :  { %v2714_v60 = vsel %vm1751_vm12, %v2376_v12, %v4929_v59  ;;  %v2698_v56 = vsel %vm1751_vm12, %v6557_v9, %v4930_v37 }
 0x40d   :  { %2989 = vmatprep.mubr.f32.mxu0 %v2714_v60  ;;  %v2352_v60 = vld [vmem:[#allocation4 + $0x11] sm:$0xff] }
 0x40e   :  { %v4933_v4 = vpop.permute.xlu0 %4932  ;;  %2990 = vmatmul.mubr.f32.gmra.mrb[50].mxu0 %v2698_v56 }
 0x40f   :  { %v4935_v26 = vunpack.i.h.bf16 %v4933_v4  ;;  %v4934_v0 = vunpack.i.l.bf16 %v4933_v4 }
 0x411   :  { %v2715_v7 = vsel %vm1751_vm12, %v6819_v29, %v4934_v0  ;;  %v2699_v28 = vsel %vm1751_vm12, %v6602_v25, %v4935_v26 }
 0x412   :  { %2994 = vmatprep.mubr.f32.mxu0 %v2715_v7 }
 0x413   :  { %2995 = vmatmul.mubr.f32.gmra.mrb[52].mxu0 %v2699_v28 }
 0x429   :  { %v4938_v10 = vpop.permute.xlu1 %4937 }
 0x42a   :  { %v4940_v58 = vunpack.i.h.bf16 %v4938_v10  ;;  %v4939_v21 = vunpack.i.l.bf16 %v4938_v10 }
 0x42c   :  { %v2716_v40 = vsel %vm1751_vm12, %v6831_v14, %v4939_v21  ;;  %v2700_v9 = vsel %vm1751_vm12, %v6642_v6, %v4940_v58 }
 0x42d   :  { %2999 = vmatprep.mubr.f32.mxu0 %v2716_v40 }
 0x42e   :  { %v4943_v43 = vpop.permute.xlu0 %4942  ;;  %3000 = vmatmul.mubr.f32.gmra.mrb[54].mxu0 %v2700_v9 }
 0x42f   :  { %v4945_v12 = vunpack.i.h.bf16 %v4943_v43  ;;  %v4944_v13 = vunpack.i.l.bf16 %v4943_v43 }
 0x431   :  { %v2717_v8 = vsel %vm1751_vm12, %v6826_v30, %v4944_v13  ;;  %v2701_v45 = vsel %vm1751_vm12, %v6694_v18, %v4945_v12  ;;  %v2353_v12 = vld [vmem:[#allocation4 + $0x21] sm:$0xff] }
 0x432   :  { %3004 = vmatprep.mubr.f32.mxu0 %v2717_v8 }
 0x433   :  { %3005 = vmatmul.mubr.f32.gmra.mrb[56].mxu0 %v2701_v45 }
 0x445   :  { %v4948_v3 = vpop.permute.xlu1 %4947 }
 0x446   :  { %v4950_v34 = vunpack.i.h.bf16 %v4948_v3  ;;  %v4949_v23 = vunpack.i.l.bf16 %v4948_v3 }
 0x448   :  { %v2718_v41 = vsel %vm1751_vm12, %v6841_v52, %v4949_v23  ;;  %v2702_v44 = vsel %vm1751_vm12, %v6722_v42, %v4950_v34 }
 0x449   :  { %v4953_v11 = vpop.permute.xlu1 %4952  ;;  %3009 = vmatprep.mubr.f32.mxu0 %v2718_v41  ;;  %v2387_v41 = vld [vmem:[#allocation4 + $0x40] sm:$0xff] }
 0x44a   :  { %v4955_v20 = vunpack.i.h.bf16 %v4953_v11  ;;  %v4954_v47 = vunpack.i.l.bf16 %v4953_v11  ;;  %3010 = vmatmul.mubr.f32.gmra.mrb[58].mxu0 %v2702_v44  ;;  %v2354_v44 = vld [vmem:[#allocation4 + $0x31] sm:$0xff] }
 0x44b   :  { %v4958_v15 = vpop.permute.xlu0 %4957 }
 0x44c   :  { %v4960_v49 = vunpack.i.h.bf16 %v4958_v15  ;;  %v4959_v38 = vunpack.i.l.bf16 %v4958_v15  ;;  %v2703_v4 = vsel %vm1751_vm12, %v6767_v62, %v4954_v47  ;;  %v2721_v26 = vsel %vm1751_vm12, %v2352_v60, %v4955_v20  ;;  %v2389_v60 = vld [vmem:[#allocation4 + $0x60] sm:$0xff] }
 0x44d   :  { %v3981_v36 = vpop.f32.mrb[32].mxu0  ;;  %v4963_v33 = vpop.permute.xlu1 %4962 }
 0x44e   :  { %v2719_v37 = vsel %vm1751_vm12, %v6836_v57, %v4959_v38  ;;  %v2737_v59 = vsel %vm1751_vm12, %v6482_v53, %v4960_v49  ;;  %v3982_v56 = vpop.f32.mrb[33].mxu0  ;;  %v4965_v0 = vunpack.i.h.bf16 %v4963_v33  ;;  %v4964_v7 = vunpack.i.l.bf16 %v4963_v33  ;;  %v2386_v53 = vld [vmem:[#allocation4 + $0x30] sm:$0xff] }
 0x44f   :  { %3014 = vmatprep.mubr.f32.mxu0 %v2719_v37  ;;  %3089 = vmatprep.mubr.f32.mxu1 %v2737_v59  ;;  %v6886_v28 = vadd.f32 %v3982_v56, %v3981_v36  ;;  %v2388_v49 = vld [vmem:[#allocation4 + $0x50] sm:$0xff] }
 0x450   :  { %v4968_v10 = vpop.permute.xlu0 %4967  ;;  %3015 = vmatmul.mubr.f32.gmra.mrb[60].mxu0 %v2703_v4  ;;  %3090 = vmatmul.mubr.f32.vlgmr.msra.gmra.mrb[32].mxu1 %v2721_v26  ;;  %v2704_v8 = vsel %vm1751_vm12, %v6783_v54, %v4964_v7  ;;  %v2722_v45 = vsel %vm1751_vm12, %v2353_v12, %v4965_v0  ;;  %v2356_v26 = vld [vmem:[#allocation4 + $0x51] sm:$0xff] }
 0x451   :  { %v4970_v58 = vunpack.i.h.bf16 %v4968_v10  ;;  %v4969_v21 = vunpack.i.l.bf16 %v4968_v10  ;;  %v4978_v40 = vpop.permute.xlu1 %4977  ;;  %v2390_v7 = vld [vmem:[#allocation4 + $0x70] sm:$0xff] }
 0x452   :  { %v4979_v3 = vunpack.i.l.bf16 %v4978_v40  ;;  %v4980_v47 = vunpack.i.h.bf16 %v4978_v40 }
 0x453   :  { %v2720_v9 = vsel %vm1751_vm12, %v6852_v48, %v4969_v21  ;;  %v2738_v43 = vsel %vm1751_vm12, %v2386_v53, %v4970_v58 }
 0x454   :  { %v4973_v13 = vpop.permute.xlu0 %4972  ;;  %3019 = vmatprep.mubr.f32.mxu0 %v2720_v9  ;;  %3094 = vmatprep.mubr.f32.mxu1 %v2738_v43  ;;  %v2740_v36 = vsel %vm1751_vm12, %v2388_v49, %v4979_v3  ;;  %v2357_v9 = vld [vmem:[#allocation4 + $0x61] sm:$0xff] }
 0x455   :  { %v4975_v34 = vunpack.i.h.bf16 %v4973_v13  ;;  %v4974_v23 = vunpack.i.l.bf16 %v4973_v13  ;;  %3020 = vmatmul.mubr.f32.gmra.mrb[62].mxu0 %v2704_v8  ;;  %3095 = vmatmul.mubr.f32.gmra.mrb[34].mxu1 %v2722_v45  ;;  %v4988_v33 = vpop.permute.xlu1 %4987  ;;  %v2391_v13 = vld [vmem:[#allocation4 + $0x80] sm:$0xff] }
 0x456   :  { %4293 = vmatprep.mubr.msk.f32.mxu0 %vm1751_vm12, %v6578_v55  ;;  %v2355_v55 = vld [vmem:[#allocation4 + $0x41] sm:$0xff]  ;;  %v4989_v56 = vunpack.i.l.bf16 %v4988_v33  ;;  %v4990_v0 = vunpack.i.h.bf16 %v4988_v33 }
 0x457   :  { %v2739_v11 = vsel %vm1751_vm12, %v2387_v41, %v4974_v23  ;;  %v2723_v20 = vsel %vm1751_vm12, %v2354_v44, %v4975_v34  ;;  %v2724_v59 = vsel %vm1751_vm12, %v2355_v55, %v4980_v47  ;;  %v2358_v23 = vld [vmem:[#allocation4 + $0x71] sm:$0xff] }
 0x458   :  { %v4983_v15 = vpop.permute.xlu0 %4982  ;;  %3099 = vmatprep.mubr.f32.mxu1 %v2739_v11  ;;  %v2726_v12 = vsel %vm1751_vm12, %v2357_v9, %v4990_v0  ;;  %v2400_v9 = vld [vmem:[#allocation4 + $0x130] sm:$0xff] }
 0x459   :  { %v4984_v38 = vunpack.i.l.bf16 %v4983_v15  ;;  %3100 = vmatmul.mubr.f32.gmra.mrb[36].mxu1 %v2723_v20  ;;  %4294 = vmatmul.mubr.msk.f32.vlgmr.msra.gmra.mrb[64].mxu0 %vm1751_vm12, %v6655_v50  ;;  %v4985_v37 = vunpack.i.h.bf16 %v4983_v15  ;;  %v4998_v21 = vpop.permute.xlu1 %4997 }
 0x45a   :  { %3104 = vmatprep.mubr.f32.mxu1 %v2740_v36  ;;  %4296 = vmatprep.mubr.msk.f32.mxu0 %vm1751_vm12, %v6670_v39  ;;  %v4999_v8 = vunpack.i.l.bf16 %v4998_v21  ;;  %v5000_v41 = vunpack.i.h.bf16 %v4998_v21 }
 0x45b   :  { %v2741_v4 = vsel %vm1751_vm12, %v2389_v60, %v4984_v38  ;;  %v2725_v39 = vsel %vm1751_vm12, %v2356_v26, %v4985_v37 }
 0x45c   :  { %v4993_v50 = vpop.permute.xlu0 %4992  ;;  %v2728_v49 = vsel %vm1751_vm12, %v6812_v51, %v5000_v41 }
 0x45d   :  { %3105 = vmatmul.mubr.f32.gmra.mrb[38].mxu1 %v2724_v59  ;;  %4297 = vmatmul.mubr.msk.f32.gmra.mrb[66].mxu0 %vm1751_vm12, %v6750_v31  ;;  %v4994_v10 = vunpack.i.l.bf16 %v4993_v50  ;;  %v2742_v31 = vsel %vm1751_vm12, %v2390_v7, %v4989_v56  ;;  %v4995_v43 = vunpack.i.h.bf16 %v4993_v50  ;;  %v5008_v15 = vpop.permute.xlu1 %5007 }
 0x45e   :  { %3109 = vmatprep.mubr.f32.mxu1 %v2741_v4  ;;  %4299 = vmatprep.mubr.msk.f32.mxu0 %vm1751_vm12, %v6759_v63  ;;  %v2424_v63 = vld [vmem:[#allocation4 + $0x92] sm:$0xff]  ;;  %v5009_v38 = vunpack.i.l.bf16 %v5008_v15  ;;  %v5010_v33 = vunpack.i.h.bf16 %v5008_v15 }
 0x45f   :  { %v2727_v11 = vsel %vm1751_vm12, %v2358_v23, %v4995_v43 }
 0x460   :  { %v3984_v58 = vpop.f32.mrb[34].mxu0  ;;  %v5003_v45 = vpop.permute.xlu0 %5002  ;;  %v2746_v51 = vsel %vm1751_vm12, %v6642_v6, %v5009_v38 }
 0x461   :  { %3110 = vmatmul.mubr.f32.gmra.mrb[40].mxu1 %v2725_v39  ;;  %4300 = vmatmul.mubr.msk.f32.gmra.mrb[68].mxu0 %vm1751_vm12, %v6775_v5  ;;  %v3985_v40 = vpop.f32.mrb[35].mxu0  ;;  %v2743_v5 = vsel %vm1751_vm12, %v2391_v13, %v4994_v10  ;;  %v5004_v20 = vunpack.i.l.bf16 %v5003_v45 }
 0x462   :  { %3114 = vmatprep.mubr.f32.mxu1 %v2742_v31  ;;  %4302 = vmatprep.mubr.msk.f32.mxu0 %vm1751_vm12, %v6807_v27  ;;  %v6915_v53 = vadd.f32 %v3985_v40, %v3984_v58  ;;  %v2392_v27 = vld [vmem:[#allocation4 + $0x90] sm:$0xff] }
 0x463   :  { %v2744_v47 = vsel %vm1751_vm12, %v2392_v27, %v4999_v8  ;;  %v2745_v36 = vsel %vm1751_vm12, %v6602_v25, %v5004_v20  ;;  %v2432_v25 = vld [vmem:[#allocation4 + $0x132] sm:$0xff] }
 0x465   :  { %3115 = vmatmul.mubr.f32.gmra.mrb[42].mxu1 %v2726_v12  ;;  %4303 = vmatmul.mubr.msk.f32.gmra.mrb[70].mxu0 %vm1751_vm12, %v2424_v63 }
 0x466   :  { %v3987_v3 = vpop.f32.mrb[36].mxu0  ;;  %3119 = vmatprep.mubr.f32.mxu1 %v2743_v5  ;;  %4305 = vmatprep.mubr.msk.f32.mxu0 %vm1751_vm12, %v6819_v29  ;;  %v5005_v29 = vunpack.i.h.bf16 %v5003_v45 }
 0x467   :  { %v3988_v34 = vpop.f32.mrb[37].mxu0 }
 0x468   :  { %v6922_v44 = vadd.f32 %v3988_v34, %v3987_v3 }
 0x469   :  { %3120 = vmatmul.mubr.f32.gmra.mrb[44].mxu1 %v2727_v11  ;;  %4306 = vmatmul.mubr.msk.f32.gmra.mrb[72].mxu0 %vm1751_vm12, %v6831_v14  ;;  %v5013_v14 = vpop.permute.xlu0 %5012 }
 0x46a   :  { %3124 = vmatprep.mubr.f32.mxu1 %v2744_v47  ;;  %4308 = vmatprep.mubr.msk.f32.mxu0 %vm1751_vm12, %v6826_v30  ;;  %v2729_v30 = vsel %vm1751_vm12, %v6600_v17, %v5005_v29  ;;  %v5014_v55 = vunpack.i.l.bf16 %v5013_v14  ;;  %v5015_v37 = vunpack.i.h.bf16 %v5013_v14 }
 0x46c   :  { %v2747_v17 = vsel %vm1751_vm12, %v6694_v18, %v5014_v55  ;;  %v2731_v60 = vsel %vm1751_vm12, %v6692_v22, %v5015_v37 }
 0x46d   :  { %3125 = vmatmul.mubr.f32.gmra.mrb[46].mxu1 %v2728_v49  ;;  %4309 = vmatmul.mubr.msk.f32.gmra.mrb[74].mxu0 %vm1751_vm12, %v6841_v52  ;;  %v5018_v52 = vpop.permute.xlu1 %5017 }
 0x46e   :  { %3129 = vmatprep.mubr.f32.mxu1 %v2745_v36  ;;  %4311 = vmatprep.mubr.msk.f32.mxu0 %vm1751_vm12, %v6836_v57  ;;  %v2730_v57 = vsel %vm1751_vm12, %v6640_v16, %v5010_v33  ;;  %v5019_v59 = vunpack.i.l.bf16 %v5018_v52  ;;  %v5020_v6 = vunpack.i.h.bf16 %v5018_v52  ;;  %v3332_v33 = vld [vmem:[%s7278_s8] sm:$0x3f] }
 0x470   :  { %v2732_v50 = vsel %vm1751_vm12, %v6720_v19, %v5020_v6  ;;  %v7003_v6 = vld [vmem:[%s7276_s6] ss:$0 sm:$0xff] }
 0x471   :  { %3130 = vmatmul.mubr.f32.gmra.mrb[48].mxu1 %v2729_v30  ;;  %4312 = vmatmul.mubr.msk.f32.gmra.mrb[76].mxu0 %vm1751_vm12, %v6852_v48  ;;  %v5023_v48 = vpop.permute.xlu0 %5022  ;;  %v5028_v4 = vpop.permute.xlu1 %5027  ;;  %v5090_v30 = vmov 0  }
 0x472   :  { %3134 = vmatprep.mubr.f32.mxu1 %v2746_v51  ;;  %4314 = vmatprep.mubr.msk.f32.mxu0 %vm1751_vm12, %v6843_v24  ;;  %v5024_v56 = vunpack.i.l.bf16 %v5023_v48  ;;  %v2748_v24 = vsel %vm1751_vm12, %v6722_v42, %v5019_v59  ;;  %v5025_v16 = vunpack.i.h.bf16 %v5023_v48  ;;  %v5029_v18 = vunpack.i.l.bf16 %v5028_v4 }
 0x473   :  { %v5030_v39 = vunpack.i.h.bf16 %v5028_v4  ;;  %5041 = vset.pattern.permute.xlu0 %v5090_v30 }
 0x474   :  { %v2749_v26 = vsel %vm1751_vm12, %v6767_v62, %v5024_v56  ;;  %v2733_v22 = vsel %vm1751_vm12, %v6765_v35, %v5025_v16  ;;  %v2750_v42 = vsel %vm1751_vm12, %v6783_v54, %v5029_v18  ;;  %3335 = vperm.xlu0 %5041, %v3332_v33   ;;  %v2947_v16 = vadd.f32 %v6886_v28, %v7003_v6 }
 0x475   :  { %3135 = vmatmul.mubr.f32.gmra.mrb[50].mxu1 %v2730_v57  ;;  %4315 = vmatmul.mubr.msk.f32.gmra.mrb[78].mxu0 %vm1751_vm12, %v2432_v25  ;;  %v5033_v0 = vpop.permute.xlu0 %5032  ;;  %v5038_v58 = vpop.permute.xlu1 %5037  ;;  %v2734_v62 = vsel %vm1751_vm12, %v6771_v61, %v5030_v39  ;;  %v2957_v28 = vadd.f32 %v6922_v44, %v7003_v6 }
 0x476   :  { %3139 = vmatprep.mubr.f32.mxu1 %v2747_v17  ;;  %v5034_v7 = vunpack.i.l.bf16 %v5033_v0  ;;  %v5035_v21 = vunpack.i.h.bf16 %v5033_v0  ;;  %v5039_v40 = vunpack.i.l.bf16 %v5038_v58  ;;  %v5040_v12 = vunpack.i.h.bf16 %v5038_v58 }
 0x478   :  { %v2751_v35 = vsel %vm1751_vm12, %v6793_v46, %v5034_v7  ;;  %v2735_v13 = vsel %vm1751_vm12, %v6787_v1, %v5035_v21  ;;  %v2752_v8 = vsel %vm1751_vm12, %v2400_v9, %v5039_v40  ;;  %v2736_v61 = vsel %vm1751_vm12, %v6848_v32, %v5040_v12 }
 0x479   :  { %3140 = vmatmul.mubr.f32.gmra.mrb[52].mxu1 %v2731_v60  ;;  %v5088_v1 = vmov 0.0|0.0  }
 0x47a   :  { %3144 = vmatprep.mubr.f32.mxu1 %v2748_v24  ;;  %4534 = vmatprep.subr.bf16.mxu1 %v5088_v1 }
 0x47d   :  { %3145 = vmatmul.mubr.f32.gmra.mrb[54].mxu1 %v2732_v50 }
 0x47e   :  { %3149 = vmatprep.mubr.f32.mxu1 %v2749_v26 }
 0x480   :  { %v3990_v10 = vpop.f32.mrb[38].mxu0 }
 0x481   :  { %3150 = vmatmul.mubr.f32.gmra.mrb[56].mxu1 %v2733_v22  ;;  %v3991_v31 = vpop.f32.mrb[39].mxu0 }
 0x482   :  { %3154 = vmatprep.mubr.f32.mxu1 %v2750_v42  ;;  %v6963_v19 = vadd.f32 %v3991_v31, %v3990_v10  ;;  %v2952_v10 = vadd.f32 %v6915_v53, %v7003_v6 }
 0x485   :  { %3155 = vmatmul.mubr.f32.gmra.mrb[58].mxu1 %v2734_v62 }
 0x486   :  { %v3993_v63 = vpop.f32.mrb[40].mxu0  ;;  %3159 = vmatprep.mubr.f32.mxu1 %v2751_v35 }
 0x487   :  { %v3994_v43 = vpop.f32.mrb[41].mxu0 }
 0x488   :  { %v6969_v54 = vadd.f32 %v3994_v43, %v3993_v63 }
 0x489   :  { %3160 = vmatmul.mubr.f32.gmra.mrb[60].mxu1 %v2735_v13 }
 0x48a   :  { %3164 = vmatprep.mubr.f32.mxu1 %v2752_v8 }
 0x48d   :  { %3165 = vmatmul.mubr.f32.gmra.mrb[62].mxu1 %v2736_v61 }
 0x48e   :  { %4349 = vmatprep.mubr.msk.f32.mxu1 %vm5089_vm15, %v5077_v2 }
 0x4a1   :  { %v3996_v5 = vpop.f32.mrb[42].mxu0 }
 0x4a2   :  { %v3997_v46 = vpop.f32.mrb[43].mxu0 }
 0x4a3   :  { %v6976_v45 = vadd.f32 %v3997_v46, %v3996_v5 }
 0x4a5   :  { %v3999_v3 = vpop.f32.mrb[44].mxu0 }
 0x4a6   :  { %v4000_v27 = vpop.f32.mrb[45].mxu0 }
 0x4a7   :  { %v6978_v34 = vadd.f32 %v4000_v27, %v3999_v3  ;;  %v2962_v3 = vadd.f32 %v6963_v19, %v7003_v6 }
 0x4a9   :  { %v4002_v23 = vpop.f32.mrb[46].mxu0 }
 0x4aa   :  { %v4003_v41 = vpop.f32.mrb[47].mxu0 }
 0x4ab   :  { %v6980_v11 = vadd.f32 %v4003_v41, %v4002_v23 }
 0x4cd   :  { %v4005_v20 = vpop.f32.mrb[48].mxu0 }
 0x4ce   :  { %v4006_v47 = vpop.f32.mrb[49].mxu0 }
 0x4cf   :  { %v6983_v15 = vadd.f32 %v4006_v47, %v4005_v20 }
 0x4e1   :  { %v4008_v32 = vpop.f32.mrb[50].mxu0 }
 0x4e2   :  { %v4009_v29 = vpop.f32.mrb[51].mxu0 }
 0x4e3   :  { %v6985_v49 = vadd.f32 %v4009_v29, %v4008_v32 }
 0x4e6   :  { %v4011_v38 = vpop.f32.mrb[52].mxu0 }
 0x4e7   :  { %v4012_v36 = vpop.f32.mrb[53].mxu0 }
 0x4e8   :  { %v6987_v14 = vadd.f32 %v4012_v36, %v4011_v38  ;;  %v2967_v38 = vadd.f32 %v6969_v54, %v7003_v6 }
 0x501   :  { %v4014_v55 = vpop.f32.mrb[54].mxu0 }
 0x502   :  { %v4015_v51 = vpop.f32.mrb[55].mxu0 }
 0x503   :  { %v6994_v52 = vadd.f32 %v4015_v51, %v4014_v55 }
 0x506   :  { %v4017_v25 = vpop.f32.mrb[56].mxu0 }
 0x507   :  { %v4018_v37 = vpop.f32.mrb[57].mxu0 }
 0x508   :  { %v6996_v57 = vadd.f32 %v4018_v37, %v4017_v25 }
 0x51d   :  { %v4020_v59 = vpop.f32.mrb[58].mxu0 }
 0x51e   :  { %v4021_v17 = vpop.f32.mrb[59].mxu0 }
 0x51f   :  { %v6998_v48 = vadd.f32 %v4021_v17, %v4020_v59  ;;  %v2972_v17 = vadd.f32 %v6976_v45, %v7003_v6 }
 0x523   :  { %v4023_v60 = vpop.f32.mrb[60].mxu0  ;;  %v4061_v56 = vpop.f32.mrb[32].mxu1 }
 0x524   :  { %v4024_v24 = vpop.f32.mrb[61].mxu0  ;;  %v4062_v4 = vpop.f32.mrb[33].mxu1 }
 0x525   :  { %v7007_v50 = vadd.f32 %v4024_v24, %v4023_v60  ;;  %v4063_v18 = vadd.f32 %v4062_v4, %v4061_v56 }
 0x527   :  { %v3092_v26 = vadd.f32 %v4063_v18, %v2947_v16 }
 0x528   :  { %v4026_v0 = vpop.f32.mrb[62].mxu0  ;;  %v4064_v39 = vpop.f32.mrb[34].mxu1 }
 0x529   :  { %v4027_v22 = vpop.f32.mrb[63].mxu0  ;;  %v4065_v7 = vpop.f32.mrb[35].mxu1 }
 0x52a   :  { %v7011_v42 = vadd.f32 %v4027_v22, %v4026_v0  ;;  %v4066_v58 = vadd.f32 %v4065_v7, %v4064_v39  ;;  %v2977_v0 = vadd.f32 %v6978_v34, %v7003_v6 }
 0x52c   :  { %v4067_v31 = vpop.f32.mrb[36].mxu1  ;;  %v3097_v21 = vadd.f32 %v4066_v58, %v2952_v10  ;;  %v4295_v62 = vpop.f32.mrb[64].mxu0 }
 0x52d   :  { %v4068_v40 = vpop.f32.mrb[37].mxu1  ;;  %v3236_v35 = vpop.f32.mrb[65].mxu0 }
 0x52e   :  { %v3242_v63 = vadd.f32 %v4295_v62, %v3097_v21  ;;  %v4069_v9 = vadd.f32 %v4068_v40, %v4067_v31  ;;  %v3237_v43 = vadd.f32 %v3236_v35, %v3092_v26  ;;  %v2982_v40 = vadd.f32 %v6980_v11, %v7003_v6 }
 0x530   :  { %v3316_v12 = vmax.f32 %v3242_v63, 0.0  ;;  %v3315_v13 = vmax.f32 %v3237_v43, 0.0  ;;  %v4070_v8 = vpop.f32.mrb[38].mxu1  ;;  %v4298_v61 = vpop.f32.mrb[66].mxu0  ;;  %v3102_v5 = vadd.f32 %v4069_v9, %v2957_v28 }
 0x531   :  { %v4071_v53 = vpop.f32.mrb[39].mxu1  ;;  %v3246_v46 = vpop.f32.mrb[67].mxu0 }
 0x532   :  { %v4535_v27 = vpack.c.bf16 %v3316_v12, %v3315_v13  ;;  %v4072_v23 = vadd.f32 %v4071_v53, %v4070_v8  ;;  %v3247_v41 = vadd.f32 %v3246_v46, %v3102_v5  ;;  %v2987_v8 = vadd.f32 %v6983_v15, %v7003_v6 }
 0x533   :  { %v2997_v15 = vadd.f32 %v6987_v14, %v7003_v6  ;;  %v3007_v14 = vadd.f32 %v6996_v57, %v7003_v6  ;;  %v3017_v57 = vadd.f32 %v7007_v50, %v7003_v6 }
 0x534   :  { %v3107_v20 = vadd.f32 %v4072_v23, %v2962_v3  ;;  %v4073_v47 = vpop.f32.mrb[40].mxu1  ;;  %v4301_v32 = vpop.f32.mrb[68].mxu0  ;;  %4536 = vmatpush3.bf16.xpose.msra.mxu1 %v4535_v27  ;;  %v3317_v30 = vmax.f32 %v3247_v41, 0.0 }
 0x535   :  { %v4074_v44 = vpop.f32.mrb[41].mxu1  ;;  %v3256_v29 = vpop.f32.mrb[69].mxu0  ;;  %4537 = vmatprep.subr.bf16.mxu1 %v5088_v1 }
 0x536   :  { %v3252_v36 = vadd.f32 %v4298_v61, %v3107_v20  ;;  %v4075_v33 = vadd.f32 %v4074_v44, %v4073_v47  ;;  %v2992_v20 = vadd.f32 %v6985_v49, %v7003_v6  ;;  %v3002_v49 = vadd.f32 %v6994_v52, %v7003_v6 }
 0x537   :  { %v3012_v52 = vadd.f32 %v6998_v48, %v7003_v6  ;;  %v3022_v48 = vadd.f32 %v7011_v42, %v7003_v6  ;;  %v3569_v6 = vld [vmem:[%s7281_s11] sm:$0xff]  ;;  %v3570_v42 = vld [vmem:[%s7281_s11 + $0x8] sm:$0xff] }
 0x538   :  { %v3318_v55 = vmax.f32 %v3252_v36, 0.0  ;;  %v3112_v51 = vadd.f32 %v4075_v33, %v2967_v38  ;;  %v4076_v19 = vpop.f32.mrb[42].mxu1  ;;  %v4304_v25 = vpop.f32.mrb[70].mxu0 }
 0x539   :  { %v4077_v37 = vpop.f32.mrb[43].mxu1  ;;  %v3266_v59 = vpop.f32.mrb[71].mxu0 }
 0x53a   :  { %v4538_v60 = vpack.c.bf16 %v3318_v55, %v3317_v30  ;;  %v3257_v56 = vadd.f32 %v3256_v29, %v3112_v51  ;;  %v4078_v24 = vadd.f32 %v4077_v37, %v4076_v19 }
 0x53c   :  { %v3117_v4 = vadd.f32 %v4078_v24, %v2972_v17  ;;  %v4079_v16 = vpop.f32.mrb[44].mxu1  ;;  %v4307_v18 = vpop.f32.mrb[72].mxu0  ;;  %4539 = vmatpush3.bf16.xpose.msra.mxu1 %v4538_v60  ;;  %v3319_v7 = vmax.f32 %v3257_v56, 0.0 }
 0x53d   :  { %v4080_v54 = vpop.f32.mrb[45].mxu1  ;;  %v3276_v26 = vpop.f32.mrb[73].mxu0  ;;  %4540 = vmatprep.subr.bf16.mxu1 %v5088_v1 }
 0x53e   :  { %v3262_v39 = vadd.f32 %v4301_v32, %v3117_v4  ;;  %v4081_v22 = vadd.f32 %v4080_v54, %v4079_v16 }
 0x540   :  { %v3320_v10 = vmax.f32 %v3262_v39, 0.0  ;;  %v3122_v58 = vadd.f32 %v4081_v22, %v2977_v0  ;;  %v4082_v45 = vpop.f32.mrb[46].mxu1  ;;  %v4310_v31 = vpop.f32.mrb[74].mxu0 }
 0x541   :  { %v4083_v21 = vpop.f32.mrb[47].mxu1  ;;  %v3286_v62 = vpop.f32.mrb[75].mxu0 }
 0x542   :  { %v4541_v35 = vpack.c.bf16 %v3320_v10, %v3319_v7  ;;  %v3267_v28 = vadd.f32 %v3266_v59, %v3122_v58  ;;  %v4084_v63 = vadd.f32 %v4083_v21, %v4082_v45 }
 0x544   :  { %v3127_v9 = vadd.f32 %v4084_v63, %v2982_v40  ;;  %v4085_v43 = vpop.f32.mrb[48].mxu1  ;;  %v4313_v12 = vpop.f32.mrb[76].mxu0  ;;  %4542 = vmatpush3.bf16.xpose.msra.mxu1 %v4541_v35  ;;  %v3321_v53 = vmax.f32 %v3267_v28, 0.0 }
 0x545   :  { %v4086_v34 = vpop.f32.mrb[49].mxu1  ;;  %v3296_v13 = vpop.f32.mrb[77].mxu0  ;;  %4543 = vmatprep.subr.bf16.mxu1 %v5088_v1 }
 0x546   :  { %v3272_v61 = vadd.f32 %v4304_v25, %v3127_v9  ;;  %v4087_v5 = vadd.f32 %v4086_v34, %v4085_v43 }
 0x548   :  { %v3322_v46 = vmax.f32 %v3272_v61, 0.0  ;;  %v3132_v3 = vadd.f32 %v4087_v5, %v2987_v8  ;;  %v4088_v11 = vpop.f32.mrb[50].mxu1  ;;  %v4316_v27 = vpop.f32.mrb[78].mxu0 }
 0x549   :  { %v4089_v23 = vpop.f32.mrb[51].mxu1  ;;  %v3306_v41 = vpop.f32.mrb[79].mxu0 }
 0x54a   :  { %v4544_v47 = vpack.c.bf16 %v3322_v46, %v3321_v53  ;;  %v3277_v32 = vadd.f32 %v3276_v26, %v3132_v3  ;;  %v4090_v44 = vadd.f32 %v4089_v23, %v4088_v11  ;;  %v3331_v46 = vld [vmem:[%s7277_s7] sm:$0x3f]  ;;  %v4591_v11 = vpack.c.bf16 %v3570_v42, %v3569_v6  ;;  %v3336_v6 = vpop.permute.xlu0 %3335 }
 0x54b   :  { %v3463_v3 = vld [vmem:[%s7279_s9 + $0x80] sm:$0xff] }
 0x54c   :  { %v3137_v29 = vadd.f32 %v4090_v44, %v2992_v20  ;;  %v4091_v38 = vpop.f32.mrb[52].mxu1  ;;  %4545 = vmatpush3.bf16.xpose.msra.mxu1 %v4544_v47  ;;  %v3323_v55 = vmax.f32 %v3277_v32, 0.0  ;;  %v3447_v23 = vld [vmem:[%s7279_s9] sm:$0xff]  ;;  %v3571_v32 = vld [vmem:[%s7281_s11 + $0x10] sm:$0xff]  ;;  %v3572_v44 = vld [vmem:[%s7281_s11 + $0x18] sm:$0xff] }
 0x54d   :  { %v4092_v36 = vpop.f32.mrb[53].mxu1  ;;  %4546 = vmatprep.subr.bf16.mxu1 %v5088_v1 }
 0x54e   :  { %v3282_v33 = vadd.f32 %v4307_v18, %v3137_v29  ;;  %v4093_v30 = vadd.f32 %v4092_v36, %v4091_v38  ;;  %v3465_v29 = vld [vmem:[%s7279_s9 + $0x90] sm:$0xff]  ;;  %v4594_v38 = vpack.c.bf16 %v3572_v44, %v3571_v32  ;;  %v3466_v36 = vld [vmem:[%s7279_s9 + $0x98] sm:$0xff] }
 0x550   :  { %v3324_v51 = vmax.f32 %v3282_v33, 0.0  ;;  %v3142_v19 = vadd.f32 %v4093_v30, %v2997_v15  ;;  %v4094_v25 = vpop.f32.mrb[54].mxu1  ;;  %v3449_v15 = vld [vmem:[%s7279_s9 + $0x10] sm:$0xff]  ;;  %v3450_v33 = vld [vmem:[%s7279_s9 + $0x18] sm:$0xff]  ;;  %v4562_v30 = vpack.c.bf16 %v3466_v36, %v3465_v29 }
 0x551   :  { %v4095_v37 = vpop.f32.mrb[55].mxu1  ;;  %v3461_v29 = vld [vmem:[%s7279_s9 + $0x70] sm:$0xff] }
 0x552   :  { %v4547_v59 = vpack.c.bf16 %v3324_v51, %v3323_v55  ;;  %v3287_v17 = vadd.f32 %v3286_v62, %v3142_v19  ;;  %v4096_v60 = vadd.f32 %v4095_v37, %v4094_v25  ;;  %v3573_v55 = vld [vmem:[%s7281_s11 + $0x20] sm:$0xff]  ;;  %v3574_v51 = vld [vmem:[%s7281_s11 + $0x28] sm:$0xff]  ;;  %v4564_v25 = vpack.c.bf16 %v3450_v33, %v3449_v15 }
 0x553   :  { %v3467_v19 = vld [vmem:[%s7279_s9 + $0xa0] sm:$0xff]  ;;  %v3468_v37 = vld [vmem:[%s7279_s9 + $0xa8] sm:$0xff] }
 0x554   :  { %v3147_v56 = vadd.f32 %v4096_v60, %v3002_v49  ;;  %v4097_v24 = vpop.f32.mrb[56].mxu1  ;;  %4548 = vmatpush3.bf16.xpose.msra.mxu1 %v4547_v59  ;;  %v3325_v54 = vmax.f32 %v3287_v17, 0.0  ;;  %v4566_v49 = vpack.c.bf16 %v3468_v37, %v3467_v19  ;;  %v3451_v59 = vld [vmem:[%s7279_s9 + $0x20] sm:$0xff]  ;;  %v3452_v17 = vld [vmem:[%s7279_s9 + $0x28] sm:$0xff]  ;;  %v4597_v60 = vpack.c.bf16 %v3574_v51, %v3573_v55 }
 0x555   :  { %v4098_v4 = vpop.f32.mrb[57].mxu1  ;;  %4549 = vmatprep.subr.bf16.mxu1 %v5088_v1 }
 0x556   :  { %v3292_v16 = vadd.f32 %v4310_v31, %v3147_v56  ;;  %v4099_v18 = vadd.f32 %v4098_v4, %v4097_v24  ;;  %v3469_v56 = vld [vmem:[%s7279_s9 + $0xb0] sm:$0xff]  ;;  %v3470_v24 = vld [vmem:[%s7279_s9 + $0xb8] sm:$0xff] }
 0x557   :  { %v3575_v4 = vld [vmem:[%s7281_s11 + $0x30] sm:$0xff] }
 0x558   :  { %v3326_v26 = vmax.f32 %v3292_v16, 0.0  ;;  %v3152_v0 = vadd.f32 %v4099_v18, %v3007_v14  ;;  %v4100_v39 = vpop.f32.mrb[58].mxu1  ;;  %v3576_v14 = vld [vmem:[%s7281_s11 + $0x38] sm:$0xff]  ;;  %v4568_v16 = vpack.c.bf16 %v3452_v17, %v3451_v59  ;;  %v4570_v18 = vpack.c.bf16 %v3470_v24, %v3469_v56 }
 0x559   :  { %v4101_v22 = vpop.f32.mrb[59].mxu1 }
 0x55a   :  { %v4550_v7 = vpack.c.bf16 %v3326_v26, %v3325_v54  ;;  %v3297_v10 = vadd.f32 %v3296_v13, %v3152_v0  ;;  %v4102_v58 = vadd.f32 %v4101_v22, %v4100_v39  ;;  %v3453_v54 = vld [vmem:[%s7279_s9 + $0x30] sm:$0xff]  ;;  %v3454_v26 = vld [vmem:[%s7279_s9 + $0x38] sm:$0xff]  ;;  %v4600_v0 = vpack.c.bf16 %v3576_v14, %v3575_v4  ;;  %v3471_v39 = vld [vmem:[%s7279_s9 + $0xc0] sm:$0xff] }
 0x55b   :  { %v3472_v22 = vld [vmem:[%s7279_s9 + $0xc8] sm:$0xff]  ;;  %v3663_v4 = vld [vmem:[%s7283_s13] sm:$0xff] }
 0x55c   :  { %v3157_v45 = vadd.f32 %v4102_v58, %v3012_v52  ;;  %v4103_v21 = vpop.f32.mrb[60].mxu1  ;;  %4551 = vmatpush3.bf16.xpose.msra.mxu1 %v4550_v7  ;;  %v3327_v35 = vmax.f32 %v3297_v10, 0.0  ;;  %v3577_v52 = vld [vmem:[%s7281_s11 + $0x40] sm:$0xff]  ;;  %v3578_v7 = vld [vmem:[%s7281_s11 + $0x48] sm:$0xff]  ;;  %v4572_v10 = vpack.c.bf16 %v3454_v26, %v3453_v54  ;;  %v4574_v58 = vpack.c.bf16 %v3472_v22, %v3471_v39 }
 0x55d   :  { %v4104_v62 = vpop.f32.mrb[61].mxu1  ;;  %4552 = vmatprep.subr.bf16.mxu1 %v5088_v1  ;;  %v3664_v14 = vld [vmem:[%s7283_s13 + $0x8] sm:$0xff] }
 0x55e   :  { %v3302_v31 = vadd.f32 %v4313_v12, %v3157_v45  ;;  %v4105_v40 = vadd.f32 %v4104_v62, %v4103_v21  ;;  %v3455_v45 = vld [vmem:[%s7279_s9 + $0x40] sm:$0xff]  ;;  %v3456_v21 = vld [vmem:[%s7279_s9 + $0x48] sm:$0xff]  ;;  %v4603_v62 = vpack.c.bf16 %v3578_v7, %v3577_v52  ;;  %v4615_v39 = vpack.c.bf16 %v3664_v14, %v3663_v4  ;;  %v3665_v52 = vld [vmem:[%s7283_s13 + $0x10] sm:$0xff] }
 0x55f   :  { %v3666_v7 = vld [vmem:[%s7283_s13 + $0x18] sm:$0xff] }
 0x560   :  { %v3328_v28 = vmax.f32 %v3302_v31, 0.0  ;;  %v4106_v63 = vpop.f32.mrb[62].mxu1  ;;  %v3162_v9 = vadd.f32 %v4105_v40, %v3017_v57  ;;  %v3473_v57 = vld [vmem:[%s7279_s9 + $0xd0] sm:$0xff]  ;;  %v3474_v31 = vld [vmem:[%s7279_s9 + $0xd8] sm:$0xff] }
 0x561   :  { %v4107_v43 = vpop.f32.mrb[63].mxu1  ;;  %v3579_v40 = vld [vmem:[%s7281_s11 + $0x50] sm:$0xff] }
 0x562   :  { %v4553_v34 = vpack.c.bf16 %v3328_v28, %v3327_v35  ;;  %v4108_v13 = vadd.f32 %v4107_v43, %v4106_v63  ;;  %v3307_v8 = vadd.f32 %v3306_v41, %v3162_v9  ;;  %v3448_v41 = vld [vmem:[%s7279_s9 + $0x8] sm:$0xff]  ;;  %v3580_v35 = vld [vmem:[%s7281_s11 + $0x58] sm:$0xff]  ;;  %v4576_v28 = vpack.c.bf16 %v3456_v21, %v3455_v45  ;;  %v3457_v43 = vld [vmem:[%s7279_s9 + $0x50] sm:$0xff] }
 0x563   :  { %v4560_v47 = vpack.c.bf16 %v3448_v41, %v3447_v23  ;;  %v4578_v63 = vpack.c.bf16 %v3474_v31, %v3473_v57  ;;  %v4606_v9 = vpack.c.bf16 %v3580_v35, %v3579_v40  ;;  %v3477_v41 = vld [vmem:[%s7279_s9 + $0xf0] sm:$0xff]  ;;  %v3667_v45 = vld [vmem:[%s7283_s13 + $0x20] sm:$0xff]  ;;  %v3668_v21 = vld [vmem:[%s7283_s13 + $0x28] sm:$0xff] }
 0x564   :  { %v3167_v61 = vadd.f32 %v4108_v13, %v3022_v48  ;;  %4554 = vmatpush3.bf16.xpose.msra.mxu1 %v4553_v34  ;;  %v3329_v53 = vmax.f32 %v3307_v8, 0.0  ;;  %v3458_v48 = vld [vmem:[%s7279_s9 + $0x58] sm:$0xff]  ;;  %v3581_v13 = vld [vmem:[%s7281_s11 + $0x60] sm:$0xff]  ;;  %v3582_v8 = vld [vmem:[%s7281_s11 + $0x68] sm:$0xff] }
 0x565   :  { %4555 = vmatprep.subr.bf16.mxu1 %v5088_v1  ;;  %v4580_v34 = vpack.c.bf16 %v3458_v48, %v3457_v43  ;;  %v3670_v57 = vld [vmem:[%s7283_s13 + $0x38] sm:$0xff]  ;;  %v3825_v40 = vld [vmem:[%s7282_s12] ss:$0 sm:$0xff] }
 0x566   :  { %v3312_v5 = vadd.f32 %v4316_v27, %v3167_v61  ;;  %v3464_v27 = vld [vmem:[%s7279_s9 + $0x88] sm:$0xff]  ;;  %v4609_v61 = vpack.c.bf16 %v3582_v8, %v3581_v13 }
 0x567   :  { %v4558_v20 = vpack.c.bf16 %v3464_v27, %v3463_v3  ;;  %v3583_v3 = vld [vmem:[%s7281_s11 + $0x70] sm:$0xff] }
 0x568   :  { %v3330_v50 = vmax.f32 %v3312_v5, 0.0  ;;  %v3475_v5 = vld [vmem:[%s7279_s9 + $0xe0] sm:$0xff] }
 0x569   :  { %4559 = vmatprep.subr.bf16.mxu0 %v4558_v20  ;;  %v3478_v20 = vld [vmem:[%s7279_s9 + $0xf8] sm:$0xff] }
 0x56a   :  { %v4556_v12 = vpack.c.bf16 %v3330_v50, %v3329_v53  ;;  %4561 = vmatpush3.bf16.msra.mxu0 %v4560_v47  ;;  %v3476_v53 = vld [vmem:[%s7279_s9 + $0xe8] sm:$0xff]  ;;  %v4586_v44 = vpack.c.bf16 %v3478_v20, %v3477_v41 }
 0x56b   :  { %4563 = vmatprep.subr.bf16.mxu0 %v4562_v30  ;;  %v4582_v50 = vpack.c.bf16 %v3476_v53, %v3475_v5 }
 0x56c   :  { %4557 = vmatpush3.bf16.xpose.msra.mxu1 %v4556_v12  ;;  %v3459_v12 = vld [vmem:[%s7279_s9 + $0x60] sm:$0xff] }
 0x56d   :  { %4590 = vmatprep.subr.bf16.mxu1 %v5088_v1 }
 0x56e   :  { %4565 = vmatpush3.bf16.msra.mxu0 %v4564_v25 }
 0x56f   :  { %4567 = vmatprep.subr.bf16.mxu0 %v4566_v49 }
 0x572   :  { %4569 = vmatpush3.bf16.msra.mxu0 %v4568_v16 }
 0x573   :  { %4350 = vmatmul.mubr.f32.vlgmr.msra.gmra.mrb[64].mxu1 %v3331_v46  ;;  %4571 = vmatprep.subr.bf16.mxu0 %v4570_v18  ;;  %v3460_v46 = vld [vmem:[%s7279_s9 + $0x68] sm:$0xff] }
 0x574   :  { %4384 = vmatprep.mubr.msk.f32.mxu1 %vm5089_vm15, %v5077_v2  ;;  %4592 = vmatpush3.bf16.msra.mxu1 %v4591_v11  ;;  %v4584_v42 = vpack.c.bf16 %v3460_v46, %v3459_v12  ;;  %v3584_v11 = vld [vmem:[%s7281_s11 + $0x78] sm:$0xff]  ;;  %v3826_v46 = vld [vmem:[#allocation5] ss:$0 sm:$0xff] }
 0x575   :  { %4593 = vmatprep.subr.bf16.mxu1 %v5088_v1  ;;  %v4612_v27 = vpack.c.bf16 %v3584_v11, %v3583_v3 }
 0x576   :  { %4573 = vmatpush3.bf16.msra.mxu0 %v4572_v10 }
 0x577   :  { %4575 = vmatprep.subr.bf16.mxu0 %v4574_v58  ;;  %v4618_v58 = vpack.c.bf16 %v3666_v7, %v3665_v52 }
 0x578   :  { %4595 = vmatpush3.bf16.msra.mxu1 %v4594_v38  ;;  %v3462_v38 = vld [vmem:[%s7279_s9 + $0x78] sm:$0xff] }
 0x579   :  { %4596 = vmatprep.subr.bf16.mxu1 %v5088_v1  ;;  %v4588_v36 = vpack.c.bf16 %v3462_v38, %v3461_v29 }
 0x57a   :  { %4577 = vmatpush3.bf16.msra.mxu0 %v4576_v28 }
 0x57b   :  { %4579 = vmatprep.subr.bf16.mxu0 %v4578_v63 }
 0x57c   :  { %4598 = vmatpush3.bf16.msra.mxu1 %v4597_v60 }
 0x57d   :  { %4599 = vmatprep.subr.bf16.mxu1 %v5088_v1 }
 0x57e   :  { %4581 = vmatpush3.bf16.msra.mxu0 %v4580_v34 }
 0x57f   :  { %4583 = vmatprep.subr.bf16.mxu0 %v4582_v50 }
 0x580   :  { %4601 = vmatpush3.bf16.msra.mxu1 %v4600_v0 }
 0x581   :  { %4602 = vmatprep.subr.bf16.mxu1 %v5088_v1 }
 0x582   :  { %4585 = vmatpush3.bf16.msra.mxu0 %v4584_v42 }
 0x583   :  { %4587 = vmatprep.subr.bf16.mxu0 %v4586_v44 }
 0x584   :  { %4604 = vmatpush3.bf16.msra.mxu1 %v4603_v62  ;;  %v4621_v62 = vpack.c.bf16 %v3668_v21, %v3667_v45 }
 0x585   :  { %4605 = vmatprep.subr.bf16.mxu1 %v5088_v1 }
 0x586   :  { %4589 = vmatpush3.bf16.msra.mxu0 %v4588_v36 }
 0x587   :  { %4614 = vmatprep.subr.bf16.mxu0 %v5088_v1 }
 0x588   :  { %4607 = vmatpush3.bf16.msra.mxu1 %v4606_v9 }
 0x589   :  { %4608 = vmatprep.subr.bf16.mxu1 %v5088_v1 }
 0x58c   :  { %4610 = vmatpush3.bf16.msra.mxu1 %v4609_v61 }
 0x58d   :  { %4611 = vmatprep.subr.bf16.mxu1 %v5088_v1 }
 0x590   :  { %4613 = vmatpush3.bf16.msra.mxu1 %v4612_v27 }
 0x646   :  { %v3404_v23 = vpop.f32.mrb[64].mxu1 }
 0x647   :  { %v3405_v47 = vadd.f32 %v3404_v23, %v3336_v6  ;;  %v4351_v32 = vpop.f32.mrb[65].mxu1 }
 0x649   :  { %v3408_v15 = vmax.f32 %v3405_v47, 0.0 }
 0x64b   :  { %v3416_v33 = vrot.slane %v3408_v15, 3  ;;  %v3410_v30 = vrot.slane %v3408_v15, 1  ;;  %v3414_v51 = vrot.slane %v3408_v15, 2 }
 0x64d   :  { %3417 = vrot.lane.b32.xlu0 %v3416_v33, %s5086_s3  ;;  %v5042_v55 = vpack.i.bf16 %v3408_v15, %v3410_v30 }
 0x64f   :  { %5043 = vrot.lane.b32.xlu1 %v5042_v55, %s5086_s3 }
 0x653   :  { %3426 = vrot.lane.b32.xlu1 %v3414_v51, %s5086_s3 }
 0x6bf   :  { %v3418_v17 = vpop.permute.xlu0 %3417 }
 0x6c0   :  { %v3421_v0 = vsel %vm1751_vm12, %v3414_v51, %v3418_v17 }
 0x6c1   :  { %v5044_v19 = vpop.permute.xlu1 %5043 }
 0x6c2   :  { %v5046_v25 = vunpack.i.h.bf16 %v5044_v19  ;;  %v5045_v37 = vunpack.i.l.bf16 %v5044_v19 }
 0x6c4   :  { %v3430_v49 = vsel %vm1751_vm12, %v5046_v25, %v3410_v30  ;;  %v3420_v59 = vsel %vm1751_vm12, %v3408_v15, %v5045_v37 }
 0x6c5   :  { %v3444_v60 = vrot.slane %v3430_v49, 3  ;;  %v3442_v56 = vrot.slane %v3420_v59, 4  ;;  %v3427_v24 = vpop.permute.xlu1 %3426  ;;  %v3434_v16 = vrot.slane %v3430_v49, 7 }
 0x6c6   :  { %v3431_v18 = vsel %vm1751_vm12, %v3427_v24, %v3416_v33 }
 0x6c7   :  { %v3435_v54 = vrot.slane %v3431_v18, 7  ;;  %v3446_v26 = vsel %vm3438_vm0, %v3442_v56, %v3444_v60  ;;  %v3439_v10 = vsel %vm3438_vm0, %v3420_v59, %v3434_v16 }
 0x6c8   :  { %4385 = vmatmul.mubr.f32.vlgmr.msra.gmra.mrb[66].mxu1 %v3446_v26 }
 0x6c9   :  { %v3440_v22 = vsel %vm3438_vm0, %v3421_v0, %v3435_v54 }
 0x6ca   :  { %3550 = vmatprep.mubr.f32.mxu0 %v3440_v22 }
 0x6cb   :  { %3551 = vmatmul.mubr.f32.vlgmr.msra.gmra.mrb[80].mxu0 %v3439_v10 }
 0x6cc   :  { %4616 = vmatpush3.bf16.msra.mxu0 %v4615_v39  ;;  %4403 = vmatprep.mubr.msk.f32.mxu0 %vm5089_vm15, %v5077_v2  ;;  %v3669_v2 = vld [vmem:[%s7283_s13 + $0x30] sm:$0xff]  ;;  %s5091_s13 = smov [#allocation6]  }
 0x6cd   :  { %4617 = vmatprep.subr.bf16.mxu0 %v5088_v1  ;;  %v4624_v31 = vpack.c.bf16 %v3670_v57, %v3669_v2  ;;  %s3760_s6 = sshll.u32 %s5091_s13, 4  ;;  %s3761_s6 = int_to_ptr.vmem [resolvable:$true] %s3760_s6 }
 0x6ce   :  { %s5053_s8 = scalar_lea.vmem %s3761_s6, 32  ;;  %p5058_p1 = scmp.lt.s32.totalorder %s3761_s6, %s3761_s6 }
 0x6cf   :  { %p5054_p0 = scmp.ne.s32.totalorder %s3761_s6, %s5053_s8  ;;  %p5059_p2 = scmp.lt.s32.totalorder %s5053_s8, %s5053_s8 }
 0x6d0   :  { %4619 = vmatpush3.bf16.msra.mxu0 %v4618_v58 }
 0x6d1   :  { %4620 = vmatprep.subr.bf16.mxu0 %v5088_v1  ;;  %p5060_p3 = por %p5059_p2, %p5058_p1 }
 0x6d3   :  { %p5061_p4 = pnand %p5060_p3, %p5054_p0 }
 0x6d4   :  { %4622 = vmatpush3.bf16.msra.mxu0 %v4621_v62 }
 0x6d5   :  { %4623 = vmatprep.subr.bf16.mxu0 %v5088_v1  ;;  %v3824_v1 = vld [vmem:[%s7280_s10] ss:$0 sm:$0xff] }
 0x6d8   :  { %4625 = vmatpush3.bf16.msra.mxu0 %v4624_v31 }
 0x79b   :  { %v3658_v35 = vpop.f32.mrb[66].mxu1 }
 0x79c   :  { %v3659_v28 = vadd.f32 %v3825_v40, %v3658_v35  ;;  %v4386_v63 = vpop.f32.mrb[67].mxu1 }
 0x79e   :  { %v3662_v9 = vmax.f32 %v3659_v28, 0.0  ;;  %v4182_v43 = vpop.f32.mrb[80].mxu0 }
 0x79f   :  { %v4183_v48 = vpop.f32.mrb[81].mxu0 }
 0x7a0   :  { %v4184_v34 = vadd.f32 %v4183_v48, %v4182_v43  ;;  %4404 = vmatmul.mubr.msk.f32.vlgmr.msra.gmra.mrb[82].mxu0 %vm1751_vm12, %v3662_v9 }
 0x7a2   :  { %v3553_v13 = vadd.f32 %v4184_v34, %v3824_v1 }
 0x7a4   :  { %v3556_v8 = vsel %vm2231_vm14, %v3553_v13, -inf }
 0x7a5   :  { %3557 = vmax.xlane.f32.xlu1 %v3556_v8 }
 0x832   :  { %v3558_v61 = vpop.xlane.xlu1 %3557 }
 0x833   :  { %v3559_v5 = vsub.f32 %v3553_v13, %v3558_v61 }
 0x835   :  { %v3560_v53 = vmul.f32 1.442695, %v3559_v5 }
 0x837   :  { %5047 = vpow2.f32 %v3560_v53 }
 0x841   :  { %v5048_v50 = vpop.eup %5047 }
 0x842   :  { %v3562_v12 = vsel %vm2231_vm14, %v5048_v50, 0.0 }
 0x843   :  { %3563 = vadd.xlane.f32.xlu0 %v3562_v12 }
 0x873   :  { %v3747_v6 = vpop.f32.mrb[82].mxu0 }
 0x874   :  { %v3748_v42 = vadd.f32 %v3826_v46, %v3747_v6  ;;  %v4405_v3 = vpop.f32.mrb[83].mxu0 }
 0x876   :  { %5049 = vtanh.f32 %v3748_v42 }
 0x880   :  { %v5050_v11 = vpop.eup %5049 }
 0x881   :  { %3753 = vst.msk [vmem:[%s7286_s16] sm:$0x3] %vm3752_vm1, %v5050_v11 }
 0x8d0   :  { %v3564_v27 = vpop.xlane.xlu0 %3563 }
 0x8d1   :  { %5051 = vlog2.f32 %v3564_v27 }
 0x8db   :  { %v5052_v23 = vpop.eup %5051 }
 0x8dc   :  { %v3566_v41 = vmul.f32 0.6931472, %v5052_v23 }
 0x8de   :  { %v3567_v20 = vsub.f32 %v3559_v5, %v3566_v41 }
 0x8e0   :  { %3568 = vst.msk [vmem:[#allocation6] sm:$0x3] %vm2231_vm14, %v3567_v20 }
 0x8e1   :  { %5064 = shalt.err (!%p5061_p4)
}
 0x8e2   :  { %s5065_s16 = scalar_lea.hbm %s7285_s15, 32 }
 0x8e3   :  { %p5066_p5 = scmp.ne.s32.totalorder %s7285_s15, %s5065_s16  ;;  %p5069_p6 = scmp.lt.u32.totalorder %s5065_s16, %s7285_s15 }
 0x8e5   :  { %p5071_p7 = pnand %p5069_p6, %p5066_p5 }
 0x8e7   :  { %5074 = shalt.err (!%p5071_p7)
}
 0x8e8   :  { %3763 = dma.vmem_to_hbm [thread:$0]  %s3761_s6, 32, %s7285_s15, [#allocation7]  }
 0x8e9   :  { %5075 = dma.done.wait [#allocation7], 32  }
 0x8ea   :  { %5076 = vsyncadd [#allocation7], 4294967264 }
 0x8eb   :  { %3771 = vsyncpa [#allocation7], 1 }

</bundles_post_ra>
